<compile_context>
chip_gen: v6e
topology: v6e:2x2x1
jax: 0.10.0
libtpu: 0.0.40
codegen_flags: <defaults>
</compile_context>

<pallas_src>
import functools
import math

import jax
import jax.numpy as jnp
from jax import lax
from jax.experimental import pallas as pl
from jax.experimental.pallas import tpu as pltpu

LEAKY_SLOPE = 0.01   # F.leaky_relu default
BN_EPS = 1e-5        # nn.BatchNorm2d default


# ---------------------------------------------------------------------------
# In-kernel helpers
# ---------------------------------------------------------------------------
def _im2col_dot(pad_ref, w_ref, b_ref, H, W, KH, KW):
    """One deep-K MXU matmul over all KHxKW taps.

    pad_ref: (H+KH-1, W+KW-1, Cin) zero-padded image (VMEM scratch ref)
    w_ref  : (KH*KW*Cin, Cout)
    b_ref  : (1, Cout)
    returns (H*W, Cout) f32
    """
    Cin = pad_ref.shape[-1]
    cols = []
    for ky in range(KH):
        for kx in range(KW):
            cols.append(pad_ref[ky:ky + H, kx:kx + W, :].reshape(H * W, Cin))
    patch = jnp.concatenate(cols, axis=-1)                 # (H*W, KH*KW*Cin)
    return jnp.dot(patch, w_ref[...],
                   preferred_element_type=jnp.float32) + b_ref[...]


def _bn_scale_shift(st, gamma, beta, inv_count):
    """Training-mode BN (batch stats, biased var) folded into scale/shift.

    st: (N, 2, C) per-batch [sum, sumsq]; gamma/beta: (1, C).
    """
    ssum = jnp.sum(st[:, 0, :], axis=0, keepdims=True)     # (1, C)
    ssq = jnp.sum(st[:, 1, :], axis=0, keepdims=True)      # (1, C)
    mean = ssum * inv_count
    var = ssq * inv_count - mean * mean
    scale = gamma * lax.rsqrt(var + BN_EPS)
    shift = beta - mean * scale
    return scale, shift


def _leaky(x):
    return jnp.where(x >= 0, x, LEAKY_SLOPE * x)


# ---------------------------------------------------------------------------
# Pallas kernels
# ---------------------------------------------------------------------------
def _conv3x3_kernel(x_ref, w_ref, b_ref, y_ref, pad_ref, *, H, W):
    # Plain 3x3 conv, padding=1.  x_ref: (1,H,W,Cin), y_ref: (1,H,W,Cout).
    pad_ref[...] = jnp.zeros_like(pad_ref)
    pad_ref[1:H + 1, 1:W + 1, :] = x_ref[0]
    y2d = _im2col_dot(pad_ref, w_ref, b_ref, H, W, 3, 3)
    y_ref[0] = y2d.reshape(H, W, y2d.shape[-1])


def _conv3x3_stats_kernel(x_ref, w_ref, b_ref, y_ref, st_ref, pad_ref, *, H, W):
    # 3x3 conv + per-batch-element [sum, sumsq] stats for the following BN.
    pad_ref[...] = jnp.zeros_like(pad_ref)
    pad_ref[1:H + 1, 1:W + 1, :] = x_ref[0]
    y2d = _im2col_dot(pad_ref, w_ref, b_ref, H, W, 3, 3)
    y_ref[0] = y2d.reshape(H, W, y2d.shape[-1])
    s = jnp.sum(y2d, axis=0, keepdims=True)
    ss = jnp.sum(y2d * y2d, axis=0, keepdims=True)
    st_ref[0] = jnp.concatenate([s, ss], axis=0)           # (2, Cout)


def _bn_conv3x3_stats_kernel(y1_ref, st1_ref, g_ref, be_ref, w_ref, b_ref,
                             y2_ref, st2_ref, pad_ref, *, H, W, inv_count):
    # x11 = leaky(bn1(y1)) computed in VMEM, then 3x3 conv (padding=1) on it,
    # plus stats for bn2.  No HBM round-trip of x11.
    scale, shift = _bn_scale_shift(st1_ref[...], g_ref[...], be_ref[...],
                                   inv_count)
    a = _leaky(y1_ref[0] * scale[None] + shift[None])      # (H, W, C)
    pad_ref[...] = jnp.zeros_like(pad_ref)
    pad_ref[1:H + 1, 1:W + 1, :] = a
    y2d = _im2col_dot(pad_ref, w_ref, b_ref, H, W, 3, 3)
    y2_ref[0] = y2d.reshape(H, W, y2d.shape[-1])
    s = jnp.sum(y2d, axis=0, keepdims=True)
    ss = jnp.sum(y2d * y2d, axis=0, keepdims=True)
    st2_ref[0] = jnp.concatenate([s, ss], axis=0)


def _bn_skip_ds_kernel(y2_ref, st2_ref, x_ref, g_ref, be_ref,
                       sw_ref, sb_ref, dw_ref, db_ref, o_ref,
                       *, H, W, Ho, KH, inv_count):
    # x12 = leaky(bn2(y2)) + (x @ skip_w + skip_b)   (1x1 skip conv fused)
    # xp  = ds_conv(x12)  with kernel (KH,1), stride (KH,1): non-overlapping
    #       windows -> tap-fused matmul with K = KH*C.
    C = y2_ref.shape[-1]
    Cin = x_ref.shape[-1]
    scale, shift = _bn_scale_shift(st2_ref[...], g_ref[...], be_ref[...],
                                   inv_count)
    y2 = y2_ref[0].reshape(H * W, C)
    a = _leaky(y2 * scale + shift)
    skip = jnp.dot(x_ref[0].reshape(H * W, Cin), sw_ref[...],
                   preferred_element_type=jnp.float32) + sb_ref[...]
    x12 = (a + skip).reshape(H, W, C)
    xr = x12[:Ho * KH].reshape(Ho, KH, W, C)
    cols = [xr[:, ky].reshape(Ho * W, C) for ky in range(KH)]
    patch = jnp.concatenate(cols, axis=-1)                 # (Ho*W, KH*C)
    out = jnp.dot(patch, dw_ref[...],
                  preferred_element_type=jnp.float32) + db_ref[...]
    o_ref[0] = out.reshape(Ho, W, C)


# ---------------------------------------------------------------------------
# Pallas wrappers
# ---------------------------------------------------------------------------
def _const_spec(shape):
    nd = len(shape)
    return pl.BlockSpec(shape, lambda n, _nd=nd: (0,) * _nd)


def conv3x3(x, w_hwio, b, *, with_stats):
    """3x3 conv, stride 1, padding 1.  x: (N,H,W,Cin) NHWC."""
    N, H, W, Cin = x.shape
    KH, KW, _, Cout = w_hwio.shape
    w2 = w_hwio.reshape(KH * KW * Cin, Cout)
    b2 = b.reshape(1, Cout)
    in_specs = [
        pl.BlockSpec((1, H, W, Cin), lambda n: (n, 0, 0, 0)),
        _const_spec((KH * KW * Cin, Cout)),
        _const_spec((1, Cout)),
    ]
    scratch = [pltpu.VMEM((H + 2, W + 2, Cin), jnp.float32)]
    if with_stats:
        kern = functools.partial(_conv3x3_stats_kernel, H=H, W=W)
        out_shape = (jax.ShapeDtypeStruct((N, H, W, Cout), jnp.float32),
                     jax.ShapeDtypeStruct((N, 2, Cout), jnp.float32))
        out_specs = (pl.BlockSpec((1, H, W, Cout), lambda n: (n, 0, 0, 0)),
                     pl.BlockSpec((1, 2, Cout), lambda n: (n, 0, 0)))
    else:
        kern = functools.partial(_conv3x3_kernel, H=H, W=W)
        out_shape = jax.ShapeDtypeStruct((N, H, W, Cout), jnp.float32)
        out_specs = pl.BlockSpec((1, H, W, Cout), lambda n: (n, 0, 0, 0))
    return pl.pallas_call(
        kern, out_shape=out_shape, grid=(N,),
        in_specs=in_specs, out_specs=out_specs,
        scratch_shapes=scratch,
        compiler_params=pltpu.CompilerParams(dimension_semantics=("parallel",)),
    )(x, w2, b2)


def bn_conv3x3_stats(y1, st1, gamma, beta, w_hwio, b):
    """Fused leaky(bn(y1)) -> 3x3 conv (padding 1) -> stats for next BN."""
    N, H, W, C = y1.shape
    KH, KW, _, Cout = w_hwio.shape
    w2 = w_hwio.reshape(KH * KW * C, Cout)
    b2 = b.reshape(1, Cout)
    g2 = gamma.reshape(1, C)
    be2 = beta.reshape(1, C)
    inv_count = 1.0 / float(N * H * W)
    kern = functools.partial(_bn_conv3x3_stats_kernel, H=H, W=W,
                             inv_count=inv_count)
    return pl.pallas_call(
        kern,
        out_shape=(jax.ShapeDtypeStruct((N, H, W, Cout), jnp.float32),
                   jax.ShapeDtypeStruct((N, 2, Cout), jnp.float32)),
        grid=(N,),
        in_specs=[
            pl.BlockSpec((1, H, W, C), lambda n: (n, 0, 0, 0)),
            _const_spec((N, 2, C)),
            _const_spec((1, C)),
            _const_spec((1, C)),
            _const_spec((KH * KW * C, Cout)),
            _const_spec((1, Cout)),
        ],
        out_specs=(pl.BlockSpec((1, H, W, Cout), lambda n: (n, 0, 0, 0)),
                   pl.BlockSpec((1, 2, Cout), lambda n: (n, 0, 0))),
        scratch_shapes=[pltpu.VMEM((H + 2, W + 2, C), jnp.float32)],
        compiler_params=pltpu.CompilerParams(dimension_semantics=("parallel",)),
    )(y1, st1, g2, be2, w2, b2)


def bn_skip_ds(y2, st2, x, gamma, beta, skip_w, skip_b, ds_w, ds_b, KH=3):
    """Fused leaky(bn2(y2)) + 1x1 skip(x) + downsample conv (KH,1)/(KH,1)."""
    N, H, W, C = y2.shape
    Cin = x.shape[-1]
    Ho = (H - KH) // KH + 1
    sw = jnp.transpose(skip_w[:, :, 0, 0], (1, 0))                    # (Cin, C)
    sb = skip_b.reshape(1, C)
    dw = jnp.transpose(ds_w[:, :, :, 0], (2, 1, 0)).reshape(KH * C, C)
    db = ds_b.reshape(1, C)
    g2 = gamma.reshape(1, C)
    be2 = beta.reshape(1, C)
    inv_count = 1.0 / float(N * H * W)
    kern = functools.partial(_bn_skip_ds_kernel, H=H, W=W, Ho=Ho, KH=KH,
                             inv_count=inv_count)
    return pl.pallas_call(
        kern,
        out_shape=jax.ShapeDtypeStruct((N, Ho, W, C), jnp.float32),
        grid=(N,),
        in_specs=[
            pl.BlockSpec((1, H, W, C), lambda n: (n, 0, 0, 0)),
            _const_spec((N, 2, C)),
            pl.BlockSpec((1, H, W, Cin), lambda n: (n, 0, 0, 0)),
            _const_spec((1, C)),
            _const_spec((1, C)),
            _const_spec((Cin, C)),
            _const_spec((1, C)),
            _const_spec((KH * C, C)),
            _const_spec((1, C)),
        ],
        out_specs=pl.BlockSpec((1, Ho, W, C), lambda n: (n, 0, 0, 0)),
        compiler_params=pltpu.CompilerParams(dimension_semantics=("parallel",)),
    )(y2, st2, x, g2, be2, sw, sb, dw, db)


# ---------------------------------------------------------------------------
# Model (parameter setup + forward composition = glue)
# ---------------------------------------------------------------------------
def _oihw_to_hwio(w):  # (Cout, Cin, KH, KW) -> (KH, KW, Cin, Cout)
    return jnp.transpose(w, (2, 3, 1, 0))


def init_conv(key, cout, cin, kh, kw):
    k1, k2 = jax.random.split(key)
    bound = 1.0 / math.sqrt(cin * kh * kw)
    w = jax.random.uniform(k1, (cout, cin, kh, kw), jnp.float32, -bound, bound)
    b = jax.random.uniform(k2, (cout,), jnp.float32, -bound, bound)
    return w, b


def init_block(key, inp, out):
    ks = jax.random.split(key, 8)
    p = {}
    p['conv1_w'], p['conv1_b'] = init_conv(ks[0], out, inp, 3, 3)
    p['conv2_w'], p['conv2_b'] = init_conv(ks[1], out, out, 3, 3)
    p['skip_w'], p['skip_b'] = init_conv(ks[2], out, inp, 1, 1)
    p['ds_w'], p['ds_b'] = init_conv(ks[3], out, out, 3, 1)
    p['bn1_g'] = 1.0 + 0.1 * jax.random.normal(ks[4], (out,), jnp.float32)
    p['bn1_b'] = 0.1 * jax.random.normal(ks[5], (out,), jnp.float32)
    p['bn2_g'] = 1.0 + 0.1 * jax.random.normal(ks[6], (out,), jnp.float32)
    p['bn2_b'] = 0.1 * jax.random.normal(ks[7], (out,), jnp.float32)
    return p


def init_encode(key, nb_channels):
    f = 16
    ks = jax.random.split(key, 5)
    params = {
        'block1': init_block(ks[0], nb_channels, f),
        'block2': init_block(ks[1], f, 2 * f),
        'block3': init_block(ks[2], 2 * f, 3 * f),
    }
    params['conv2_w'], params['conv2_b'] = init_conv(ks[3], 2 * f, 2 * f, 3, 3)
    params['conv3_w'], params['conv3_b'] = init_conv(ks[4], f, f, 3, 3)
    return params


def block_forward(p, x):
    """x: (N, H, W, Cin) NHWC.  Mirrors `block.forward` with 3 fused kernels."""
    y1, st1 = conv3x3(x, _oihw_to_hwio(p['conv1_w']), p['conv1_b'],
                      with_stats=True)
    y2, st2 = bn_conv3x3_stats(y1, st1, p['bn1_g'], p['bn1_b'],
                               _oihw_to_hwio(p['conv2_w']), p['conv2_b'])
    xp = bn_skip_ds(y2, st2, x, p['bn2_g'], p['bn2_b'],
                    p['skip_w'], p['skip_b'], p['ds_w'], p['ds_b'])
    # torch size() of x12 is NCHW
    size = (x.shape[0], y2.shape[3], x.shape[1], x.shape[2])
    return xp, xp, size


def encode_forward(params, x_nchw):
    """Mirrors `Encode.forward`.  Input/outputs are NCHW like PyTorch."""
    x = jnp.transpose(x_nchw, (0, 2, 3, 1)).astype(jnp.float32)  # -> NHWC
    x1, idx1, s1 = block_forward(params['block1'], x)
    x2, idx2, s2 = block_forward(params['block2'], x1)
    x3, idx3, s3 = block_forward(params['block3'], x2)
    c2 = conv3x3(x2, _oihw_to_hwio(params['conv2_w']), params['conv2_b'],
                 with_stats=False)
    c3 = conv3x3(x1, _oihw_to_hwio(params['conv3_w']), params['conv3_b'],
                 with_stats=False)
    to_nchw = lambda t: jnp.transpose(t, (0, 3, 1, 2))
    return (to_nchw(x3),
            [to_nchw(idx1), to_nchw(idx2), to_nchw(idx3)],
            [s1, s2, s3],
            [to_nchw(x1), to_nchw(c3), to_nchw(c2)])


# ---------------------------------------------------------------------------
# Pure-JAX reference (NCHW, same math) for correctness checking
# ---------------------------------------------------------------------------
def _conv_ref(x, w, b, stride=(1, 1), pad=(0, 0)):
    out = lax.conv_general_dilated(
        x, w, window_strides=stride,
        padding=[(pad[0], pad[0]), (pad[1], pad[1])],
        dimension_numbers=('NCHW', 'OIHW', 'NCHW'),
        precision=lax.Precision.HIGHEST)
    return out + b[None, :, None, None]


def _bn_leaky_ref(y, g, b):
    mean = jnp.mean(y, axis=(0, 2, 3), keepdims=True)
    var = jnp.mean(jnp.square(y - mean), axis=(0, 2, 3), keepdims=True)
    out = (y - mean) * lax.rsqrt(var + BN_EPS) * g[None, :, None, None] \
        + b[None, :, None, None]
    return jnp.where(out >= 0, out, LEAKY_SLOPE * out)


def _block_ref(p, x):
    x11 = _bn_leaky_ref(_conv_ref(x, p['conv1_w'], p['conv1_b'], pad=(1, 1)),
                        p['bn1_g'], p['bn1_b'])
    x12 = _bn_leaky_ref(_conv_ref(x11, p['conv2_w'], p['conv2_b'], pad=(1, 1)),
                        p['bn2_g'], p['bn2_b'])
    x12 = x12 + _conv_ref(x, p['skip_w'], p['skip_b'], pad=(0, 0))
    xp = _conv_ref(x12, p['ds_w'], p['ds_b'], stride=(3, 1), pad=(0, 0))
    return xp, xp, tuple(x12.shape)


def _encode_ref(params, x):
    x1, idx1, s1 = _block_ref(params['block1'], x)
    x2, idx2, s2 = _block_ref(params['block2'], x1)
    x3, idx3, s3 = _block_ref(params['block3'], x2)
    c2 = _conv_ref(x2, params['conv2_w'], params['conv2_b'], pad=(1, 1))
    c3 = _conv_ref(x1, params['conv3_w'], params['conv3_b'], pad=(1, 1))
    return x3, [idx1, idx2, idx3], [s1, s2, s3], [x1, c3, c2]


# ---------------------------------------------------------------------------
if __name__ == "__main__":
    key = jax.random.PRNGKey(0)
    k_in, k_par = jax.random.split(key)

    # Small shapes: batch=2, nb_channels=4, H=27 (divisible by 3 three times), W=16.
    N, C, H, W = 2, 4, 27, 16
    x = jax.random.normal(k_in, (N, C, H, W), jnp.float32)
    params = init_encode(k_par, nb_channels=C)

    out = encode_forward(params, x)
    jax.block_until_ready(out[0])

    ref = _encode_ref(params, x)

    def check(name, a, b):
        assert a.shape == b.shape, f"{name}: shape {a.shape} vs {b.shape}"
        err = float(jnp.max(jnp.abs(a - b)))
        assert jnp.allclose(a, b, rtol=1e-3, atol=1e-3), f"{name}: max abs err {err}"

    check("x3", out[0], ref[0])
    for i in range(3):
        check(f"idx{i+1}", out[1][i], ref[1][i])
    for i in range(3):
        assert tuple(out[2][i]) == tuple(ref[2][i]), f"size s{i+1} mismatch"
    names = ["x1", "c3", "c2"]
    for i in range(3):
        check(names[i], out[3][i], ref[3][i])

    print("KERNEL_OK")
</pallas_src>

<mosaic_0001>
module attributes {stable_mosaic.version = 11 : i64} {
  func.func @_conv3x3_stats_kernel(%arg0: i32, %arg1: memref<1x27x16x4xf32, #tpu.memory_space<vmem>>, %arg2: memref<36x16xf32, #tpu.memory_space<vmem>>, %arg3: memref<1x16xf32, #tpu.memory_space<vmem>>, %arg4: memref<1x27x16x16xf32, #tpu.memory_space<vmem>>, %arg5: memref<1x2x16xf32, #tpu.memory_space<vmem>>, %arg6: memref<29x18x4xf32, #tpu.memory_space<vmem>>) attributes {dimension_semantics = [#tpu.dimension_semantics<parallel>], iteration_bounds = array<i64: 2>, scalar_prefetch = 0 : i64, scratch_operands = 1 : i64, tpu.core_type = #tpu.core_type<tc>, window_params = [{transform_indices = @transform_0, window_bounds = array<i64: 1, 27, 16, 4>}, {pipeline_mode = #tpu.pipeline_mode<synchronous>, transform_indices = @transform_1, window_bounds = array<i64: 36, 16>}, {pipeline_mode = #tpu.pipeline_mode<synchronous>, transform_indices = @transform_2, window_bounds = array<i64: 1, 16>}, {transform_indices = @transform_3, window_bounds = array<i64: 1, 27, 16, 16>}, {transform_indices = @transform_4, window_bounds = array<i64: 1, 2, 16>}]} {
    %cst = arith.constant 0.000000e+00 : f32
    %0 = vector.broadcast %cst : f32 to vector<29x18x4xf32>
    %c0 = arith.constant 0 : index
    %c0_0 = arith.constant 0 : index
    %c0_1 = arith.constant 0 : index
    %1 = vector.load %arg6[%c0, %c0_0, %c0_1] : memref<29x18x4xf32, #tpu.memory_space<vmem>>, vector<29x18x4xf32>
    tpu.vector_store %arg6[%c0, %c0_0, %c0_1], %0 {strides = array<i32>} : memref<29x18x4xf32, #tpu.memory_space<vmem>>, vector<29x18x4xf32>,
    %c0_2 = arith.constant 0 : index
    %c0_3 = arith.constant 0 : index
    %c0_4 = arith.constant 0 : index
    %c0_5 = arith.constant 0 : index
    %2 = vector.load %arg1[%c0_2, %c0_3, %c0_4, %c0_5] : memref<1x27x16x4xf32, #tpu.memory_space<vmem>>, vector<1x27x16x4xf32>
    %3 = vector.shape_cast %2 : vector<1x27x16x4xf32> to vector<27x16x4xf32>
    %c1 = arith.constant 1 : index
    %c1_6 = arith.constant 1 : index
    %c0_7 = arith.constant 0 : index
    %4 = vector.load %arg6[%c1, %c1_6, %c0_7] : memref<29x18x4xf32, #tpu.memory_space<vmem>>, vector<27x16x4xf32>
    tpu.vector_store %arg6[%c1, %c1_6, %c0_7], %3 {strides = array<i32>} : memref<29x18x4xf32, #tpu.memory_space<vmem>>, vector<27x16x4xf32>,
    %c0_8 = arith.constant 0 : index
    %c0_9 = arith.constant 0 : index
    %c0_10 = arith.constant 0 : index
    %5 = vector.load %arg6[%c0_8, %c0_9, %c0_10] : memref<29x18x4xf32, #tpu.memory_space<vmem>>, vector<27x16x4xf32>
    %6 = vector.shape_cast %5 : vector<27x16x4xf32> to vector<432x4xf32>
    %c0_11 = arith.constant 0 : index
    %c1_12 = arith.constant 1 : index
    %c0_13 = arith.constant 0 : index
    %7 = vector.load %arg6[%c0_11, %c1_12, %c0_13] : memref<29x18x4xf32, #tpu.memory_space<vmem>>, vector<27x16x4xf32>
    %8 = vector.shape_cast %7 : vector<27x16x4xf32> to vector<432x4xf32>
    %c0_14 = arith.constant 0 : index
    %c2 = arith.constant 2 : index
    %c0_15 = arith.constant 0 : index
    %9 = vector.load %arg6[%c0_14, %c2, %c0_15] : memref<29x18x4xf32, #tpu.memory_space<vmem>>, vector<27x16x4xf32>
    %10 = vector.shape_cast %9 : vector<27x16x4xf32> to vector<432x4xf32>
    %c1_16 = arith.constant 1 : index
    %c0_17 = arith.constant 0 : index
    %c0_18 = arith.constant 0 : index
    %11 = vector.load %arg6[%c1_16, %c0_17, %c0_18] : memref<29x18x4xf32, #tpu.memory_space<vmem>>, vector<27x16x4xf32>
    %12 = vector.shape_cast %11 : vector<27x16x4xf32> to vector<432x4xf32>
    %c1_19 = arith.constant 1 : index
    %c1_20 = arith.constant 1 : index
    %c0_21 = arith.constant 0 : index
    %13 = vector.load %arg6[%c1_19, %c1_20, %c0_21] : memref<29x18x4xf32, #tpu.memory_space<vmem>>, vector<27x16x4xf32>
    %14 = vector.shape_cast %13 : vector<27x16x4xf32> to vector<432x4xf32>
    %c1_22 = arith.constant 1 : index
    %c2_23 = arith.constant 2 : index
    %c0_24 = arith.constant 0 : index
    %15 = vector.load %arg6[%c1_22, %c2_23, %c0_24] : memref<29x18x4xf32, #tpu.memory_space<vmem>>, vector<27x16x4xf32>
    %16 = vector.shape_cast %15 : vector<27x16x4xf32> to vector<432x4xf32>
    %c2_25 = arith.constant 2 : index
    %c0_26 = arith.constant 0 : index
    %c0_27 = arith.constant 0 : index
    %17 = vector.load %arg6[%c2_25, %c0_26, %c0_27] : memref<29x18x4xf32, #tpu.memory_space<vmem>>, vector<27x16x4xf32>
    %18 = vector.shape_cast %17 : vector<27x16x4xf32> to vector<432x4xf32>
    %c2_28 = arith.constant 2 : index
    %c1_29 = arith.constant 1 : index
    %c0_30 = arith.constant 0 : index
    %19 = vector.load %arg6[%c2_28, %c1_29, %c0_30] : memref<29x18x4xf32, #tpu.memory_space<vmem>>, vector<27x16x4xf32>
    %20 = vector.shape_cast %19 : vector<27x16x4xf32> to vector<432x4xf32>
    %c2_31 = arith.constant 2 : index
    %c2_32 = arith.constant 2 : index
    %c0_33 = arith.constant 0 : index
    %21 = vector.load %arg6[%c2_31, %c2_32, %c0_33] : memref<29x18x4xf32, #tpu.memory_space<vmem>>, vector<27x16x4xf32>
    %22 = vector.shape_cast %21 : vector<27x16x4xf32> to vector<432x4xf32>
    %23 = tpu.concatenate %6, %8, %10, %12, %14, %16, %18, %20, %22 in 1 : vector<432x4xf32>, vector<432x4xf32>, vector<432x4xf32>, vector<432x4xf32>, vector<432x4xf32>, vector<432x4xf32>, vector<432x4xf32>, vector<432x4xf32>, vector<432x4xf32> -> vector<432x36xf32>
    %c0_34 = arith.constant 0 : index
    %c0_35 = arith.constant 0 : index
    %24 = vector.load %arg2[%c0_34, %c0_35] : memref<36x16xf32, #tpu.memory_space<vmem>>, vector<36x16xf32>
    %cst_36 = arith.constant dense<0.000000e+00> : vector<432x16xf32>
    %25 = tpu.matmul %23, %24, %cst_36 {dimension_numbers = #tpu.dot_dimension_numbers<[1], [0], [0], [1], [0, 0, 1, 1], [], []>} : vector<432x36xf32>, vector<36x16xf32>, vector<432x16xf32> -> vector<432x16xf32>
    %c0_37 = arith.constant 0 : index
    %c0_38 = arith.constant 0 : index
    %26 = vector.load %arg3[%c0_37, %c0_38] : memref<1x16xf32, #tpu.memory_space<vmem>>, vector<1x16xf32>
    %27 = vector.broadcast %26 : vector<1x16xf32> to vector<432x16xf32>
    %28 = arith.addf %25, %27 : vector<432x16xf32>
    %29 = vector.shape_cast %28 : vector<432x16xf32> to vector<27x16x16xf32>
    %c0_39 = arith.constant 0 : index
    %c0_40 = arith.constant 0 : index
    %c0_41 = arith.constant 0 : index
    %c0_42 = arith.constant 0 : index
    %30 = vector.load %arg4[%c0_39, %c0_40, %c0_41, %c0_42] : memref<1x27x16x16xf32, #tpu.memory_space<vmem>>, vector<1x27x16x16xf32>
    %31 = vector.shape_cast %30 : vector<1x27x16x16xf32> to vector<27x16x16xf32>
    %32 = vector.shape_cast %29 : vector<27x16x16xf32> to vector<1x27x16x16xf32>
    tpu.vector_store %arg4[%c0_39, %c0_40, %c0_41, %c0_42], %32 {strides = array<i32>} : memref<1x27x16x16xf32, #tpu.memory_space<vmem>>, vector<1x27x16x16xf32>,
    %cst_43 = arith.constant dense<0.000000e+00> : vector<16xf32>
    %33 = vector.multi_reduction <add>, %28, %cst_43 [0] : vector<432x16xf32> to vector<16xf32>
    %34 = vector.shape_cast %33 : vector<16xf32> to vector<1x16xf32>
    %35 = arith.mulf %28, %28 : vector<432x16xf32>
    %cst_44 = arith.constant dense<0.000000e+00> : vector<16xf32>
    %36 = vector.multi_reduction <add>, %35, %cst_44 [0] : vector<432x16xf32> to vector<16xf32>
    %37 = vector.shape_cast %36 : vector<16xf32> to vector<1x16xf32>
    %38 = tpu.concatenate %34, %37 in 0 : vector<1x16xf32>, vector<1x16xf32> -> vector<2x16xf32>
    %c0_45 = arith.constant 0 : index
    %c0_46 = arith.constant 0 : index
    %c0_47 = arith.constant 0 : index
    %39 = vector.load %arg5[%c0_45, %c0_46, %c0_47] : memref<1x2x16xf32, #tpu.memory_space<vmem>>, vector<1x2x16xf32>
    %40 = vector.shape_cast %39 : vector<1x2x16xf32> to vector<2x16xf32>
    %41 = vector.shape_cast %38 : vector<2x16xf32> to vector<1x2x16xf32>
    tpu.vector_store %arg5[%c0_45, %c0_46, %c0_47], %41 {strides = array<i32>} : memref<1x2x16xf32, #tpu.memory_space<vmem>>, vector<1x2x16xf32>,
    return
  }
  func.func @transform_0(%arg0: i32) -> (i32, i32, i32, i32) {
    %c0_i32 = arith.constant 0 : i32
    %c0_i32_0 = arith.constant 0 : i32
    %c0_i32_1 = arith.constant 0 : i32
    %c0_i32_2 = arith.constant 0 : i32
    return %arg0, %c0_i32, %c0_i32_0, %c0_i32_1 : i32, i32, i32, i32
  }
  func.func @transform_1(%arg0: i32) -> (i32, i32) {
    %c0_i32 = arith.constant 0 : i32
    %c0_i32_0 = arith.constant 0 : i32
    %c0_i32_1 = arith.constant 0 : i32
    return %c0_i32, %c0_i32_0 : i32, i32
  }
  func.func @transform_2(%arg0: i32) -> (i32, i32) {
    %c0_i32 = arith.constant 0 : i32
    %c0_i32_0 = arith.constant 0 : i32
    %c0_i32_1 = arith.constant 0 : i32
    return %c0_i32, %c0_i32_0 : i32, i32
  }
  func.func @transform_3(%arg0: i32) -> (i32, i32, i32, i32) {
    %c0_i32 = arith.constant 0 : i32
    %c0_i32_0 = arith.constant 0 : i32
    %c0_i32_1 = arith.constant 0 : i32
    %c0_i32_2 = arith.constant 0 : i32
    return %arg0, %c0_i32, %c0_i32_0, %c0_i32_1 : i32, i32, i32, i32
  }
  func.func @transform_4(%arg0: i32) -> (i32, i32, i32) {
    %c0_i32 = arith.constant 0 : i32
    %c0_i32_0 = arith.constant 0 : i32
    %c0_i32_1 = arith.constant 0 : i32
    return %arg0, %c0_i32, %c0_i32_0 : i32, i32, i32
  }
}

</mosaic_0001>

<bundles_post_ra>
// kernel: tpu_custom_call.1
= control target key start
LH: loop header
LB: loop body
LE: loop exit
PB: predicated region body
PF: predicated region fallthrough
CT: control target
= control target key end

     0   :  { %10 = vsyncpa [#allocation4], 0  ;;  %s6945_s0 = inlined_call_operand.vmem [shape: f32[2,27,16,4], index: 0, kind: input, shape index: {}]   ;;  %s6946_s1 = inlined_call_operand.vmem [shape: f32[36,16], index: 1, kind: input, shape index: {}]   ;;  %s6947_s2 = inlined_call_operand.vmem [shape: f32[1,16], index: 2, kind: input, shape index: {}]   ;;  %s6948_s3 = inlined_call_operand.vmem [shape: f32[2,27,16,16], index: 3, kind: output, shape index: {0}]   ;;  %s6949_s4 = inlined_call_operand.hbm [shape: f32[2,2,16], index: 4, kind: output, shape index: {1}]  }
   0x1   :  { %12 = vsyncpa [#allocation4 + $0x1], 0  ;;  %s4445_s15 = smov 0   ;;  %s4447_s16 = smov 0  }
   0x2   :  { %s4449_s17 = smov 0   ;;  %s4451_s18 = smov 0  }
   0x3 LB: > { %s4466_s19 = sadd.s32 4294967295, %s4408_s18   ;;  %s4019_s20 = sadd.s32 4294967294, %s4408_s18   ;;  %s4408_s18 = sphi %s4451_s18, %s7338_s18   ;;  %s4404_s17 = sphi %s4449_s17, %s7337_s17   ;;  %s4400_s16 = sphi %s4447_s16, %s7336_s16   ;;  %s4396_s15 = sphi %s4445_s15, %s7335_s15  }
   0x4   : > { %s4470_s21 = sadd.s32 1, %s4408_s18   ;;  %s119_s22 = sadd.s32 1, %s4404_s17 }
   0x5   : > { %s116_s23 = ssub.s32 %s4408_s18, %s4470_s21  ;;  %p129_p0 = scmp.ne.s32.totalorder %s4404_s17, %s4400_s16 }
   0x6   : > { %p117_p1 = scmp.eq.s32.totalorder %s116_s23, 0  ;;  %p130_p2 = scmp.eq.s32.totalorder %s4466_s19, 1 }
   0x7   : > { %p135_p3 = scmp.ne.s32.totalorder %s4400_s16, %s4396_s15  ;;  %p136_p4 = scmp.eq.s32.totalorder %s4019_s20, 1 }
   0x8   : > { %s4481_s24 = scalar_select %p117_p1, %s4404_s17, %s119_s22  }
   0x9   : > { %p4483_p5 = por %p130_p2, %p129_p0  ;;  %p4487_p6 = por %p136_p4, %p135_p3 }
   0xa   : > { %p4022_p7 = scmp.ge.s32.totalorder %s4408_s18, 1  ;;  %p168_p8 = scmp.lt.s32.totalorder %s4408_s18, 3 }
   0xc   : > { %p169_p9 = pnand %p4022_p7, %p168_p8 }
   0xe   : > { %172 = sbr.rel (%p169_p9) target bundleno = 1278 (0x4fe), region = 32 }
  0x13   : > { %vm209_vm0 = vcmask 31744   ;;  %vm212_vm1 = vcmask 25600   ;;  %p199_p10 = scmp.lt.s32.totalorder %s4466_s19, 1  ;;  %v4410_v0 = vmov 0.0   ;;  %s4411_s6 = smov 4   ;;  %vm3236_vm2 = vcmask 1043456  }
  0x14   : > { %210 = vst.msk [vmem:[#allocation2] sm:$0xff] %vm209_vm0, %v4410_v0  ;;  %211 = vst.msk [vmem:[#allocation2 + $0x8] sm:$0xff] %vm209_vm0, %v4410_v0  ;;  %s4412_s7 = smov 8   ;;  %s4413_s8 = smov 12   ;;  %vm2676_vm3 = vcmask 64512   ;;  %vm2731_vm4 = vcmask 97280  }
  0x15   : > { %214 = vst.msk [vmem:[#allocation2 + $0x18] sm:$0xff] %vm209_vm0, %v4410_v0  ;;  %215 = vst.msk [vmem:[#allocation2 + $0x20] sm:$0xff] %vm209_vm0, %v4410_v0  ;;  %s4671_s27 = scalar_select %p199_p10, %s4466_s19, 1  ;;  %vm2786_vm5 = vcmask 130048   ;;  %vm2841_vm6 = vcmask 162816   ;;  %vm2896_vm7 = vcmask 195584  }
  0x16   : > { %217 = vst.msk [vmem:[#allocation2 + $0x30] sm:$0xff] %vm209_vm0, %v4410_v0  ;;  %218 = vst.msk [vmem:[#allocation2 + $0x38] sm:$0xff] %vm209_vm0, %v4410_v0  ;;  %s4414_s9 = smov 16   ;;  %s4415_s10 = smov 20   ;;  %vm2951_vm8 = vcmask 228352   ;;  %vm3006_vm9 = vcmask 261120  }
  0x17   : > { %220 = vst.msk [vmem:[#allocation2 + $0x48] sm:$0xff] %vm209_vm0, %v4410_v0  ;;  %221 = vst.msk [vmem:[#allocation2 + $0x50] sm:$0xff] %vm209_vm0, %v4410_v0  ;;  %s4246_s28 = smul.u32 432, %s4671_s27  ;;  %s4416_s30 = smov 24   ;;  %vm3073_vm10 = vcmask 293888   ;;  %vm3909_vm11 = vcmask 1040384  }
  0x18   : > { %223 = vst.msk [vmem:[#allocation2 + $0x60] sm:$0xff] %vm209_vm0, %v4410_v0  ;;  %224 = vst.msk [vmem:[#allocation2 + $0x68] sm:$0xff] %vm209_vm0, %v4410_v0  ;;  %s4083_s22 = sshll.u32 %s4466_s19, 5  ;;  %vm3911_vm12 = vcmask 123904   ;;  %s4419_s19 = smov [#allocation3]  }
  0x19   : > { %226 = vst.msk [vmem:[#allocation2 + $0x78] sm:$0xff] %vm209_vm0, %v4410_v0  ;;  %227 = vst.msk [vmem:[#allocation2 + $0x80] sm:$0xff] %vm209_vm0, %v4410_v0  ;;  %s4679_s5 = scalar_lea.vmem %s6945_s0, %s4246_s28  ;;  %s6309_s14 = scalar_lea.vmem %s6948_s3, %s4246_s28 }
  0x1a   : > { %229 = vst.msk [vmem:[#allocation2 + $0x90] sm:$0xff] %vm209_vm0, %v4410_v0  ;;  %230 = vst.msk [vmem:[#allocation2 + $0x98] sm:$0xff] %vm209_vm0, %v4410_v0  ;;  %v298_v1 = vld [vmem:[%s4679_s5] sm:$0xff]  ;;  %v300_v2 = vld [vmem:[%s4679_s5 + $0x10] sm:$0xff] }
  0x1b   : > { %232 = vst.msk [vmem:[#allocation2 + $0xa8] sm:$0xff] %vm209_vm0, %v4410_v0  ;;  %233 = vst.msk [vmem:[#allocation2 + $0xb0] sm:$0xff] %vm209_vm0, %v4410_v0  ;;  %v299_v3 = vld [vmem:[%s4679_s5 + $0x8] sm:$0xff]  ;;  %v302_v6 = vld [vmem:[%s4679_s5 + $0x20] sm:$0xff] }
  0x1c   : > { %235 = vst.msk [vmem:[#allocation2 + $0xc0] sm:$0xff] %vm209_vm0, %v4410_v0  ;;  %236 = vst.msk [vmem:[#allocation2 + $0xc8] sm:$0xff] %vm209_vm0, %v4410_v0  ;;  %v461_v4 = vld [vmem:[#allocation2 + $0x1] sm:$0xff]  ;;  %v301_v7 = vld [vmem:[%s4679_s5 + $0x18] sm:$0xff] }
  0x1d   : > { %238 = vst.msk [vmem:[#allocation2 + $0xd8] sm:$0xff] %vm209_vm0, %v4410_v0  ;;  %239 = vst.msk [vmem:[#allocation2 + $0xe0] sm:$0xff] %vm209_vm0, %v4410_v0  ;;  %948 = vrot.lane.b32.xlu0 %v461_v4, %s4411_s6  ;;  %v304_v8 = vld [vmem:[%s4679_s5 + $0x30] sm:$0xff]  ;;  %v303_v9 = vld [vmem:[%s4679_s5 + $0x28] sm:$0xff] }
  0x1e   : > { %241 = vst.msk [vmem:[#allocation2 + $0xf0] sm:$0xff] %vm209_vm0, %v4410_v0  ;;  %242 = vst.msk [vmem:[#allocation2 + $0xf8] sm:$0xff] %vm209_vm0, %v4410_v0  ;;  %v306_v10 = vld [vmem:[%s4679_s5 + $0x40] sm:$0xff]  ;;  %v305_v11 = vld [vmem:[%s4679_s5 + $0x38] sm:$0xff] }
  0x1f   : > { %244 = vst.msk [vmem:[#allocation2 + $0x108] sm:$0xff] %vm209_vm0, %v4410_v0  ;;  %245 = vst.msk [vmem:[#allocation2 + $0x110] sm:$0xff] %vm209_vm0, %v4410_v0  ;;  %v308_v12 = vld [vmem:[%s4679_s5 + $0x50] sm:$0xff]  ;;  %v307_v13 = vld [vmem:[%s4679_s5 + $0x48] sm:$0xff] }
  0x20   : > { %247 = vst.msk [vmem:[#allocation2 + $0x120] sm:$0xff] %vm209_vm0, %v4410_v0  ;;  %248 = vst.msk [vmem:[#allocation2 + $0x128] sm:$0xff] %vm209_vm0, %v4410_v0  ;;  %v310_v14 = vld [vmem:[%s4679_s5 + $0x60] sm:$0xff]  ;;  %v309_v15 = vld [vmem:[%s4679_s5 + $0x58] sm:$0xff] }
  0x21   : > { %250 = vst.msk [vmem:[#allocation2 + $0x138] sm:$0xff] %vm209_vm0, %v4410_v0  ;;  %251 = vst.msk [vmem:[#allocation2 + $0x140] sm:$0xff] %vm209_vm0, %v4410_v0  ;;  %v312_v16 = vld [vmem:[%s4679_s5 + $0x70] sm:$0xff]  ;;  %v311_v17 = vld [vmem:[%s4679_s5 + $0x68] sm:$0xff] }
  0x22   : > { %253 = vst.msk [vmem:[#allocation2 + $0x150] sm:$0xff] %vm209_vm0, %v4410_v0  ;;  %254 = vst.msk [vmem:[#allocation2 + $0x158] sm:$0xff] %vm209_vm0, %v4410_v0  ;;  %v314_v18 = vld [vmem:[%s4679_s5 + $0x80] sm:$0xff]  ;;  %v313_v19 = vld [vmem:[%s4679_s5 + $0x78] sm:$0xff] }
  0x23   : > { %256 = vst.msk [vmem:[#allocation2 + $0x168] sm:$0xff] %vm209_vm0, %v4410_v0  ;;  %257 = vst.msk [vmem:[#allocation2 + $0x170] sm:$0xff] %vm209_vm0, %v4410_v0  ;;  %v316_v20 = vld [vmem:[%s4679_s5 + $0x90] sm:$0xff]  ;;  %v315_v21 = vld [vmem:[%s4679_s5 + $0x88] sm:$0xff] }
  0x24   : > { %259 = vst.msk [vmem:[#allocation2 + $0x180] sm:$0xff] %vm209_vm0, %v4410_v0  ;;  %260 = vst.msk [vmem:[#allocation2 + $0x188] sm:$0xff] %vm209_vm0, %v4410_v0  ;;  %v318_v22 = vld [vmem:[%s4679_s5 + $0xa0] sm:$0xff]  ;;  %v317_v23 = vld [vmem:[%s4679_s5 + $0x98] sm:$0xff] }
  0x25   : > { %262 = vst.msk [vmem:[#allocation2 + $0x198] sm:$0xff] %vm209_vm0, %v4410_v0  ;;  %263 = vst.msk [vmem:[#allocation2 + $0x1a0] sm:$0xff] %vm209_vm0, %v4410_v0  ;;  %v320_v24 = vld [vmem:[%s4679_s5 + $0xb0] sm:$0xff]  ;;  %v319_v27 = vld [vmem:[%s4679_s5 + $0xa8] sm:$0xff] }
  0x26   : > { %265 = vst.msk [vmem:[#allocation2 + $0x1b0] sm:$0xff] %vm209_vm0, %v4410_v0  ;;  %266 = vst.msk [vmem:[#allocation2 + $0x1b8] sm:$0xff] %vm209_vm0, %v4410_v0  ;;  %v322_v28 = vld [vmem:[%s4679_s5 + $0xc0] sm:$0xff]  ;;  %v321_v33 = vld [vmem:[%s4679_s5 + $0xb8] sm:$0xff] }
  0x27   : > { %268 = vst.msk [vmem:[#allocation2 + $0x1c8] sm:$0xff] %vm209_vm0, %v4410_v0  ;;  %269 = vst.msk [vmem:[#allocation2 + $0x1d0] sm:$0xff] %vm209_vm0, %v4410_v0  ;;  %v324_v34 = vld [vmem:[%s4679_s5 + $0xd0] sm:$0xff]  ;;  %v323_v35 = vld [vmem:[%s4679_s5 + $0xc8] sm:$0xff] }
  0x28   : > { %271 = vst.msk [vmem:[#allocation2 + $0x1e0] sm:$0xff] %vm209_vm0, %v4410_v0  ;;  %272 = vst.msk [vmem:[#allocation2 + $0x1e8] sm:$0xff] %vm209_vm0, %v4410_v0  ;;  %v326_v38 = vld [vmem:[%s4679_s5 + $0xe0] sm:$0xff]  ;;  %v325_v39 = vld [vmem:[%s4679_s5 + $0xd8] sm:$0xff] }
  0x29   : > { %274 = vst.msk [vmem:[#allocation2 + $0x1f8] sm:$0xff] %vm209_vm0, %v4410_v0  ;;  %275 = vst.msk [vmem:[#allocation2 + $0x200] sm:$0xff] %vm209_vm0, %v4410_v0  ;;  %v328_v40 = vld [vmem:[%s4679_s5 + $0xf0] sm:$0xff]  ;;  %v327_v41 = vld [vmem:[%s4679_s5 + $0xe8] sm:$0xff] }
  0x2a   : > { %277 = vst.msk [vmem:[#allocation2 + $0x210] sm:$0xff] %vm209_vm0, %v4410_v0  ;;  %278 = vst.msk [vmem:[#allocation2 + $0x218] sm:$0xff] %vm209_vm0, %v4410_v0  ;;  %v330_v42 = vld [vmem:[%s4679_s5 + $0x100] sm:$0xff]  ;;  %v329_v43 = vld [vmem:[%s4679_s5 + $0xf8] sm:$0xff] }
  0x2b   : > { %280 = vst.msk [vmem:[#allocation2 + $0x228] sm:$0xff] %vm209_vm0, %v4410_v0  ;;  %281 = vst.msk [vmem:[#allocation2 + $0x230] sm:$0xff] %vm209_vm0, %v4410_v0  ;;  %v332_v44 = vld [vmem:[%s4679_s5 + $0x110] sm:$0xff]  ;;  %v331_v46 = vld [vmem:[%s4679_s5 + $0x108] sm:$0xff] }
  0x2c   : > { %283 = vst.msk [vmem:[#allocation2 + $0x240] sm:$0xff] %vm209_vm0, %v4410_v0  ;;  %284 = vst.msk [vmem:[#allocation2 + $0x248] sm:$0xff] %vm209_vm0, %v4410_v0  ;;  %v334_v47 = vld [vmem:[%s4679_s5 + $0x120] sm:$0xff]  ;;  %v333_v48 = vld [vmem:[%s4679_s5 + $0x118] sm:$0xff] }
  0x2d   : > { %286 = vst.msk [vmem:[#allocation2 + $0x258] sm:$0xff] %vm209_vm0, %v4410_v0  ;;  %287 = vst.msk [vmem:[#allocation2 + $0x260] sm:$0xff] %vm209_vm0, %v4410_v0  ;;  %v336_v50 = vld [vmem:[%s4679_s5 + $0x130] sm:$0xff]  ;;  %v335_v51 = vld [vmem:[%s4679_s5 + $0x128] sm:$0xff] }
  0x2e   : > { %289 = vst.msk [vmem:[#allocation2 + $0x270] sm:$0xff] %vm209_vm0, %v4410_v0  ;;  %290 = vst.msk [vmem:[#allocation2 + $0x278] sm:$0xff] %vm209_vm0, %v4410_v0  ;;  %v338_v52 = vld [vmem:[%s4679_s5 + $0x140] sm:$0xff]  ;;  %v337_v53 = vld [vmem:[%s4679_s5 + $0x138] sm:$0xff] }
  0x2f   : > { %292 = vst.msk [vmem:[#allocation2 + $0x288] sm:$0xff] %vm209_vm0, %v4410_v0  ;;  %293 = vst.msk [vmem:[#allocation2 + $0x290] sm:$0xff] %vm209_vm0, %v4410_v0  ;;  %v340_v54 = vld [vmem:[%s4679_s5 + $0x150] sm:$0xff]  ;;  %v339_v55 = vld [vmem:[%s4679_s5 + $0x148] sm:$0xff] }
  0x30   : > { %295 = vst.msk [vmem:[#allocation2 + $0x2a0] sm:$0xff] %vm209_vm0, %v4410_v0  ;;  %296 = vst.msk [vmem:[#allocation2 + $0x2a8] sm:$0xff] %vm209_vm0, %v4410_v0  ;;  %v342_v56 = vld [vmem:[%s4679_s5 + $0x160] sm:$0xff]  ;;  %v341_v57 = vld [vmem:[%s4679_s5 + $0x158] sm:$0xff] }
  0x31   : > { %213 = vst.msk [vmem:[#allocation2 + $0x10] sm:$0x3] %vm212_vm1, %v4410_v0  ;;  %216 = vst.msk [vmem:[#allocation2 + $0x28] sm:$0x3] %vm212_vm1, %v4410_v0  ;;  %v344_v58 = vld [vmem:[%s4679_s5 + $0x170] sm:$0xff]  ;;  %v343_v59 = vld [vmem:[%s4679_s5 + $0x168] sm:$0xff] }
  0x32   : > { %219 = vst.msk [vmem:[#allocation2 + $0x40] sm:$0x3] %vm212_vm1, %v4410_v0  ;;  %222 = vst.msk [vmem:[#allocation2 + $0x58] sm:$0x3] %vm212_vm1, %v4410_v0  ;;  %v346_v60 = vld [vmem:[%s4679_s5 + $0x180] sm:$0xff] }
  0x33   : > { %225 = vst.msk [vmem:[#allocation2 + $0x70] sm:$0x3] %vm212_vm1, %v4410_v0  ;;  %228 = vst.msk [vmem:[#allocation2 + $0x88] sm:$0x3] %vm212_vm1, %v4410_v0 }
  0x34   : > { %231 = vst.msk [vmem:[#allocation2 + $0xa0] sm:$0x3] %vm212_vm1, %v4410_v0  ;;  %234 = vst.msk [vmem:[#allocation2 + $0xb8] sm:$0x3] %vm212_vm1, %v4410_v0 }
  0x35   : > { %237 = vst.msk [vmem:[#allocation2 + $0xd0] sm:$0x3] %vm212_vm1, %v4410_v0  ;;  %240 = vst.msk [vmem:[#allocation2 + $0xe8] sm:$0x3] %vm212_vm1, %v4410_v0 }
  0x36   : > { %243 = vst.msk [vmem:[#allocation2 + $0x100] sm:$0x3] %vm212_vm1, %v4410_v0  ;;  %246 = vst.msk [vmem:[#allocation2 + $0x118] sm:$0x3] %vm212_vm1, %v4410_v0 }
  0x37   : > { %249 = vst.msk [vmem:[#allocation2 + $0x130] sm:$0x3] %vm212_vm1, %v4410_v0  ;;  %252 = vst.msk [vmem:[#allocation2 + $0x148] sm:$0x3] %vm212_vm1, %v4410_v0 }
  0x38   : > { %255 = vst.msk [vmem:[#allocation2 + $0x160] sm:$0x3] %vm212_vm1, %v4410_v0  ;;  %258 = vst.msk [vmem:[#allocation2 + $0x178] sm:$0x3] %vm212_vm1, %v4410_v0  ;;  %v462_v5 = vld [vmem:[#allocation2 + $0x9] sm:$0xff] }
  0x39   : > { %261 = vst.msk [vmem:[#allocation2 + $0x190] sm:$0x3] %vm212_vm1, %v4410_v0  ;;  %264 = vst.msk [vmem:[#allocation2 + $0x1a8] sm:$0x3] %vm212_vm1, %v4410_v0  ;;  %950 = vrot.lane.b32.xlu0 %v462_v5, %s4411_s6  ;;  %v349_v5 = vld [vmem:[%s4679_s5 + $0x198] sm:$0xff] }
  0x3a   : > { %267 = vst.msk [vmem:[#allocation2 + $0x1c0] sm:$0x3] %vm212_vm1, %v4410_v0  ;;  %270 = vst.msk [vmem:[#allocation2 + $0x1d8] sm:$0x3] %vm212_vm1, %v4410_v0 }
  0x3b   : > { %273 = vst.msk [vmem:[#allocation2 + $0x1f0] sm:$0x3] %vm212_vm1, %v4410_v0  ;;  %276 = vst.msk [vmem:[#allocation2 + $0x208] sm:$0x3] %vm212_vm1, %v4410_v0 }
  0x3c   : > { %279 = vst.msk [vmem:[#allocation2 + $0x220] sm:$0x3] %vm212_vm1, %v4410_v0  ;;  %282 = vst.msk [vmem:[#allocation2 + $0x238] sm:$0x3] %vm212_vm1, %v4410_v0 }
  0x3d   : > { %285 = vst.msk [vmem:[#allocation2 + $0x250] sm:$0x3] %vm212_vm1, %v4410_v0  ;;  %288 = vst.msk [vmem:[#allocation2 + $0x268] sm:$0x3] %vm212_vm1, %v4410_v0 }
  0x3e   : > { %291 = vst.msk [vmem:[#allocation2 + $0x280] sm:$0x3] %vm212_vm1, %v4410_v0  ;;  %294 = vst.msk [vmem:[#allocation2 + $0x298] sm:$0x3] %vm212_vm1, %v4410_v0 }
  0x3f   : > { %297 = vst.msk [vmem:[#allocation2 + $0x2b0] sm:$0x3] %vm212_vm1, %v4410_v0 }
  0x40   : > { %353 = vst.msk [vmem:[#allocation2 + $0x19] sm:$0xff] %vm209_vm0, %v298_v1  ;;  %355 = vst.msk [vmem:[#allocation2 + $0x31] sm:$0xff] %vm209_vm0, %v300_v2  ;;  %v345_v1 = vld [vmem:[%s4679_s5 + $0x178] sm:$0xff]  ;;  %v348_v2 = vld [vmem:[%s4679_s5 + $0x190] sm:$0xff] }
  0x41   : > { %354 = vst.msk [vmem:[#allocation2 + $0x21] sm:$0xff] %vm209_vm0, %v299_v3  ;;  %357 = vst.msk [vmem:[#allocation2 + $0x49] sm:$0xff] %vm209_vm0, %v302_v6  ;;  %v347_v3 = vld [vmem:[%s4679_s5 + $0x188] sm:$0xff] }
  0x42   : > { %356 = vst.msk [vmem:[#allocation2 + $0x39] sm:$0xff] %vm209_vm0, %v301_v7  ;;  %359 = vst.msk [vmem:[#allocation2 + $0x61] sm:$0xff] %vm209_vm0, %v304_v8 }
  0x43   : > { %358 = vst.msk [vmem:[#allocation2 + $0x51] sm:$0xff] %vm209_vm0, %v303_v9  ;;  %361 = vst.msk [vmem:[#allocation2 + $0x79] sm:$0xff] %vm209_vm0, %v306_v10 }
  0x44   : > { %360 = vst.msk [vmem:[#allocation2 + $0x69] sm:$0xff] %vm209_vm0, %v305_v11  ;;  %363 = vst.msk [vmem:[#allocation2 + $0x91] sm:$0xff] %vm209_vm0, %v308_v12 }
  0x45   : > { %362 = vst.msk [vmem:[#allocation2 + $0x81] sm:$0xff] %vm209_vm0, %v307_v13  ;;  %365 = vst.msk [vmem:[#allocation2 + $0xa9] sm:$0xff] %vm209_vm0, %v310_v14 }
  0x46   : > { %364 = vst.msk [vmem:[#allocation2 + $0x99] sm:$0xff] %vm209_vm0, %v309_v15  ;;  %367 = vst.msk [vmem:[#allocation2 + $0xc1] sm:$0xff] %vm209_vm0, %v312_v16 }
  0x47   : > { %366 = vst.msk [vmem:[#allocation2 + $0xb1] sm:$0xff] %vm209_vm0, %v311_v17  ;;  %369 = vst.msk [vmem:[#allocation2 + $0xd9] sm:$0xff] %vm209_vm0, %v314_v18  ;;  %v463_v25 = vld [vmem:[#allocation2 + $0x19] sm:$0xff]  ;;  %v465_v26 = vld [vmem:[#allocation2 + $0x31] sm:$0xff] }
  0x48   : > { %368 = vst.msk [vmem:[#allocation2 + $0xc9] sm:$0xff] %vm209_vm0, %v313_v19  ;;  %371 = vst.msk [vmem:[#allocation2 + $0xf1] sm:$0xff] %vm209_vm0, %v316_v20  ;;  %952 = vrot.lane.b32.xlu1 %v463_v25, %s4411_s6  ;;  %956 = vrot.lane.b32.xlu0 %v465_v26, %s4411_s6  ;;  %v464_v29 = vld [vmem:[#allocation2 + $0x21] sm:$0xff]  ;;  %v467_v30 = vld [vmem:[#allocation2 + $0x49] sm:$0xff] }
  0x49   : > { %370 = vst.msk [vmem:[#allocation2 + $0xe1] sm:$0xff] %vm209_vm0, %v315_v21  ;;  %373 = vst.msk [vmem:[#allocation2 + $0x109] sm:$0xff] %vm209_vm0, %v318_v22  ;;  %v466_v31 = vld [vmem:[#allocation2 + $0x39] sm:$0xff]  ;;  %v469_v32 = vld [vmem:[#allocation2 + $0x61] sm:$0xff] }
  0x4a   : > { %372 = vst.msk [vmem:[#allocation2 + $0xf9] sm:$0xff] %vm209_vm0, %v317_v23  ;;  %375 = vst.msk [vmem:[#allocation2 + $0x121] sm:$0xff] %vm209_vm0, %v320_v24  ;;  %v468_v36 = vld [vmem:[#allocation2 + $0x51] sm:$0xff]  ;;  %v471_v37 = vld [vmem:[#allocation2 + $0x79] sm:$0xff] }
  0x4b   : > { %374 = vst.msk [vmem:[#allocation2 + $0x111] sm:$0xff] %vm209_vm0, %v319_v27  ;;  %377 = vst.msk [vmem:[#allocation2 + $0x139] sm:$0xff] %vm209_vm0, %v322_v28  ;;  %v470_v45 = vld [vmem:[#allocation2 + $0x69] sm:$0xff]  ;;  %v473_v49 = vld [vmem:[#allocation2 + $0x91] sm:$0xff] }
  0x4c   : > { %954 = vrot.lane.b32.xlu1 %v464_v29, %s4411_s6  ;;  %960 = vrot.lane.b32.xlu0 %v467_v30, %s4411_s6  ;;  %376 = vst.msk [vmem:[#allocation2 + $0x129] sm:$0xff] %vm209_vm0, %v321_v33  ;;  %379 = vst.msk [vmem:[#allocation2 + $0x151] sm:$0xff] %vm209_vm0, %v324_v34  ;;  %v472_v61 = vld [vmem:[#allocation2 + $0x81] sm:$0xff]  ;;  %v475_v62 = vld [vmem:[#allocation2 + $0xa9] sm:$0xff] }
  0x4d   : > { %378 = vst.msk [vmem:[#allocation2 + $0x141] sm:$0xff] %vm209_vm0, %v323_v35  ;;  %381 = vst.msk [vmem:[#allocation2 + $0x169] sm:$0xff] %vm209_vm0, %v326_v38  ;;  %v474_v63 = vld [vmem:[#allocation2 + $0x99] sm:$0xff]  ;;  %v477_v0 = vld [vmem:[#allocation2 + $0xc1] sm:$0xff] }
  0x4e   : > { %380 = vst.msk [vmem:[#allocation2 + $0x159] sm:$0xff] %vm209_vm0, %v325_v39  ;;  %383 = vst.msk [vmem:[#allocation2 + $0x181] sm:$0xff] %vm209_vm0, %v328_v40  ;;  %v476_v4 = vld [vmem:[#allocation2 + $0xb1] sm:$0xff]  ;;  %v479_v6 = vld [vmem:[#allocation2 + $0xd9] sm:$0xff] }
  0x4f   : > { %382 = vst.msk [vmem:[#allocation2 + $0x171] sm:$0xff] %vm209_vm0, %v327_v41  ;;  %385 = vst.msk [vmem:[#allocation2 + $0x199] sm:$0xff] %vm209_vm0, %v330_v42  ;;  %v478_v7 = vld [vmem:[#allocation2 + $0xc9] sm:$0xff]  ;;  %v481_v8 = vld [vmem:[#allocation2 + $0xf1] sm:$0xff] }
  0x50   : > { %958 = vrot.lane.b32.xlu1 %v466_v31, %s4411_s6  ;;  %964 = vrot.lane.b32.xlu0 %v469_v32, %s4411_s6  ;;  %384 = vst.msk [vmem:[#allocation2 + $0x189] sm:$0xff] %vm209_vm0, %v329_v43  ;;  %387 = vst.msk [vmem:[#allocation2 + $0x1b1] sm:$0xff] %vm209_vm0, %v332_v44  ;;  %v480_v9 = vld [vmem:[#allocation2 + $0xe1] sm:$0xff]  ;;  %v483_v10 = vld [vmem:[#allocation2 + $0x109] sm:$0xff] }
  0x51   : > { %386 = vst.msk [vmem:[#allocation2 + $0x1a1] sm:$0xff] %vm209_vm0, %v331_v46  ;;  %389 = vst.msk [vmem:[#allocation2 + $0x1c9] sm:$0xff] %vm209_vm0, %v334_v47  ;;  %v482_v11 = vld [vmem:[#allocation2 + $0xf9] sm:$0xff]  ;;  %v485_v12 = vld [vmem:[#allocation2 + $0x121] sm:$0xff] }
  0x52   : > { %388 = vst.msk [vmem:[#allocation2 + $0x1b9] sm:$0xff] %vm209_vm0, %v333_v48  ;;  %391 = vst.msk [vmem:[#allocation2 + $0x1e1] sm:$0xff] %vm209_vm0, %v336_v50  ;;  %v484_v13 = vld [vmem:[#allocation2 + $0x111] sm:$0xff]  ;;  %v487_v14 = vld [vmem:[#allocation2 + $0x139] sm:$0xff] }
  0x53   : > { %390 = vst.msk [vmem:[#allocation2 + $0x1d1] sm:$0xff] %vm209_vm0, %v335_v51  ;;  %393 = vst.msk [vmem:[#allocation2 + $0x1f9] sm:$0xff] %vm209_vm0, %v338_v52  ;;  %v486_v15 = vld [vmem:[#allocation2 + $0x129] sm:$0xff]  ;;  %v489_v16 = vld [vmem:[#allocation2 + $0x151] sm:$0xff] }
  0x54   : > { %962 = vrot.lane.b32.xlu1 %v468_v36, %s4411_s6  ;;  %968 = vrot.lane.b32.xlu0 %v471_v37, %s4411_s6  ;;  %392 = vst.msk [vmem:[#allocation2 + $0x1e9] sm:$0xff] %vm209_vm0, %v337_v53  ;;  %395 = vst.msk [vmem:[#allocation2 + $0x211] sm:$0xff] %vm209_vm0, %v340_v54  ;;  %v488_v17 = vld [vmem:[#allocation2 + $0x141] sm:$0xff]  ;;  %v491_v18 = vld [vmem:[#allocation2 + $0x169] sm:$0xff] }
  0x55   : > { %394 = vst.msk [vmem:[#allocation2 + $0x201] sm:$0xff] %vm209_vm0, %v339_v55  ;;  %397 = vst.msk [vmem:[#allocation2 + $0x229] sm:$0xff] %vm209_vm0, %v342_v56  ;;  %v490_v19 = vld [vmem:[#allocation2 + $0x159] sm:$0xff]  ;;  %v493_v20 = vld [vmem:[#allocation2 + $0x181] sm:$0xff] }
  0x56   : > { %396 = vst.msk [vmem:[#allocation2 + $0x219] sm:$0xff] %vm209_vm0, %v341_v57  ;;  %399 = vst.msk [vmem:[#allocation2 + $0x241] sm:$0xff] %vm209_vm0, %v344_v58  ;;  %v492_v21 = vld [vmem:[#allocation2 + $0x171] sm:$0xff]  ;;  %v495_v22 = vld [vmem:[#allocation2 + $0x199] sm:$0xff] }
  0x57   : > { %398 = vst.msk [vmem:[#allocation2 + $0x231] sm:$0xff] %vm209_vm0, %v343_v59  ;;  %401 = vst.msk [vmem:[#allocation2 + $0x259] sm:$0xff] %vm209_vm0, %v346_v60  ;;  %v494_v23 = vld [vmem:[#allocation2 + $0x189] sm:$0xff]  ;;  %v497_v24 = vld [vmem:[#allocation2 + $0x1b1] sm:$0xff] }
  0x58   : > { %966 = vrot.lane.b32.xlu1 %v470_v45, %s4411_s6  ;;  %972 = vrot.lane.b32.xlu0 %v473_v49, %s4411_s6  ;;  %400 = vst.msk [vmem:[#allocation2 + $0x249] sm:$0xff] %vm209_vm0, %v345_v1  ;;  %403 = vst.msk [vmem:[#allocation2 + $0x271] sm:$0xff] %vm209_vm0, %v348_v2  ;;  %v496_v25 = vld [vmem:[#allocation2 + $0x1a1] sm:$0xff]  ;;  %v499_v26 = vld [vmem:[#allocation2 + $0x1c9] sm:$0xff] }
  0x59   : > { %402 = vst.msk [vmem:[#allocation2 + $0x261] sm:$0xff] %vm209_vm0, %v347_v3  ;;  %404 = vst.msk [vmem:[#allocation2 + $0x279] sm:$0xff] %vm209_vm0, %v349_v5  ;;  %v498_v27 = vld [vmem:[#allocation2 + $0x1b9] sm:$0xff]  ;;  %v501_v28 = vld [vmem:[#allocation2 + $0x1e1] sm:$0xff] }
  0x5a   : > { %v500_v29 = vld [vmem:[#allocation2 + $0x1d1] sm:$0xff]  ;;  %v503_v30 = vld [vmem:[#allocation2 + $0x1f9] sm:$0xff]  ;;  %v515_v42 = vld [vmem:[#allocation2 + $0x2] sm:$0xff] }
  0x5b   : > { %v502_v31 = vld [vmem:[#allocation2 + $0x1e9] sm:$0xff]  ;;  %v505_v32 = vld [vmem:[#allocation2 + $0x211] sm:$0xff]  ;;  %v517_v44 = vld [vmem:[#allocation2 + $0x1a] sm:$0xff] }
  0x5c   : > { %970 = vrot.lane.b32.xlu1 %v472_v61, %s4411_s6  ;;  %976 = vrot.lane.b32.xlu0 %v475_v62, %s4411_s6  ;;  %v504_v33 = vld [vmem:[#allocation2 + $0x201] sm:$0xff]  ;;  %v507_v34 = vld [vmem:[#allocation2 + $0x229] sm:$0xff]  ;;  %v519_v46 = vld [vmem:[#allocation2 + $0x32] sm:$0xff] }
  0x5d   : > { %v506_v35 = vld [vmem:[#allocation2 + $0x219] sm:$0xff]  ;;  %v509_v36 = vld [vmem:[#allocation2 + $0x241] sm:$0xff]  ;;  %v516_v45 = vld [vmem:[#allocation2 + $0xa] sm:$0xff] }
  0x5e   : > { %v508_v37 = vld [vmem:[#allocation2 + $0x231] sm:$0xff]  ;;  %v511_v38 = vld [vmem:[#allocation2 + $0x259] sm:$0xff]  ;;  %v518_v48 = vld [vmem:[#allocation2 + $0x22] sm:$0xff] }
  0x5f   : > { %v510_v39 = vld [vmem:[#allocation2 + $0x249] sm:$0xff]  ;;  %v513_v40 = vld [vmem:[#allocation2 + $0x271] sm:$0xff]  ;;  %v520_v51 = vld [vmem:[#allocation2 + $0x3a] sm:$0xff] }
  0x60   : > { %974 = vrot.lane.b32.xlu1 %v474_v63, %s4411_s6  ;;  %980 = vrot.lane.b32.xlu0 %v477_v0, %s4411_s6  ;;  %v512_v41 = vld [vmem:[#allocation2 + $0x261] sm:$0xff]  ;;  %v514_v43 = vld [vmem:[#allocation2 + $0x279] sm:$0xff]  ;;  %v521_v49 = vld [vmem:[#allocation2 + $0x4a] sm:$0xff] }
  0x61   : > { %v523_v53 = vld [vmem:[#allocation2 + $0x62] sm:$0xff]  ;;  %v522_v55 = vld [vmem:[#allocation2 + $0x52] sm:$0xff]  ;;  %v525_v57 = vld [vmem:[#allocation2 + $0x7a] sm:$0xff] }
  0x62   : > { %v524_v59 = vld [vmem:[#allocation2 + $0x6a] sm:$0xff]  ;;  %v527_v61 = vld [vmem:[#allocation2 + $0x92] sm:$0xff]  ;;  %v526_v63 = vld [vmem:[#allocation2 + $0x82] sm:$0xff] }
  0x63   : > { %v529_v1 = vld [vmem:[#allocation2 + $0xaa] sm:$0xff]  ;;  %v528_v3 = vld [vmem:[#allocation2 + $0x9a] sm:$0xff]  ;;  %v531_v5 = vld [vmem:[#allocation2 + $0xc2] sm:$0xff] }
  0x64   : > { %978 = vrot.lane.b32.xlu1 %v476_v4, %s4411_s6  ;;  %984 = vrot.lane.b32.xlu0 %v479_v6, %s4411_s6 }
  0x68   : > { %982 = vrot.lane.b32.xlu1 %v478_v7, %s4411_s6  ;;  %988 = vrot.lane.b32.xlu0 %v481_v8, %s4411_s6  ;;  %v530_v7 = vld [vmem:[#allocation2 + $0xb2] sm:$0xff] }
  0x6c   : > { %986 = vrot.lane.b32.xlu1 %v480_v9, %s4411_s6  ;;  %992 = vrot.lane.b32.xlu0 %v483_v10, %s4411_s6  ;;  %v533_v9 = vld [vmem:[#allocation2 + $0xda] sm:$0xff] }
  0x70   : > { %990 = vrot.lane.b32.xlu1 %v482_v11, %s4411_s6  ;;  %996 = vrot.lane.b32.xlu0 %v485_v12, %s4411_s6  ;;  %v532_v11 = vld [vmem:[#allocation2 + $0xca] sm:$0xff] }
  0x74   : > { %994 = vrot.lane.b32.xlu1 %v484_v13, %s4411_s6  ;;  %1000 = vrot.lane.b32.xlu0 %v487_v14, %s4411_s6  ;;  %v535_v13 = vld [vmem:[#allocation2 + $0xf2] sm:$0xff] }
  0x78   : > { %998 = vrot.lane.b32.xlu1 %v486_v15, %s4411_s6  ;;  %1004 = vrot.lane.b32.xlu0 %v489_v16, %s4411_s6  ;;  %v534_v15 = vld [vmem:[#allocation2 + $0xe2] sm:$0xff] }
  0x7c   : > { %1002 = vrot.lane.b32.xlu1 %v488_v17, %s4411_s6  ;;  %1008 = vrot.lane.b32.xlu0 %v491_v18, %s4411_s6  ;;  %v537_v17 = vld [vmem:[#allocation2 + $0x10a] sm:$0xff] }
  0x80   : > { %1006 = vrot.lane.b32.xlu1 %v490_v19, %s4411_s6  ;;  %1012 = vrot.lane.b32.xlu0 %v493_v20, %s4411_s6  ;;  %v536_v19 = vld [vmem:[#allocation2 + $0xfa] sm:$0xff] }
  0x84   : > { %1010 = vrot.lane.b32.xlu1 %v492_v21, %s4411_s6  ;;  %1016 = vrot.lane.b32.xlu0 %v495_v22, %s4411_s6  ;;  %v539_v21 = vld [vmem:[#allocation2 + $0x122] sm:$0xff] }
  0x88   : > { %1014 = vrot.lane.b32.xlu1 %v494_v23, %s4411_s6  ;;  %1020 = vrot.lane.b32.xlu0 %v497_v24, %s4411_s6  ;;  %v538_v23 = vld [vmem:[#allocation2 + $0x112] sm:$0xff] }
  0x8c   : > { %1018 = vrot.lane.b32.xlu1 %v496_v25, %s4411_s6  ;;  %1024 = vrot.lane.b32.xlu0 %v499_v26, %s4411_s6  ;;  %v541_v25 = vld [vmem:[#allocation2 + $0x13a] sm:$0xff] }
  0x8f   : > { %v4841_v47 = vpop.permute.xlu0 %948 }
  0x90   : > { %1022 = vrot.lane.b32.xlu1 %v498_v27, %s4411_s6  ;;  %1028 = vrot.lane.b32.xlu0 %v501_v28, %s4411_s6  ;;  %v540_v27 = vld [vmem:[#allocation2 + $0x12a] sm:$0xff] }
  0x94   : > { %1026 = vrot.lane.b32.xlu1 %v500_v29, %s4411_s6  ;;  %1032 = vrot.lane.b32.xlu0 %v503_v30, %s4411_s6  ;;  %v543_v29 = vld [vmem:[#allocation2 + $0x152] sm:$0xff] }
  0x98   : > { %1030 = vrot.lane.b32.xlu1 %v502_v31, %s4411_s6  ;;  %1036 = vrot.lane.b32.xlu0 %v505_v32, %s4411_s6  ;;  %v542_v31 = vld [vmem:[#allocation2 + $0x142] sm:$0xff] }
  0x9c   : > { %1034 = vrot.lane.b32.xlu1 %v504_v33, %s4411_s6  ;;  %1040 = vrot.lane.b32.xlu0 %v507_v34, %s4411_s6  ;;  %v545_v33 = vld [vmem:[#allocation2 + $0x16a] sm:$0xff] }
  0xa0   : > { %1038 = vrot.lane.b32.xlu1 %v506_v35, %s4411_s6  ;;  %1044 = vrot.lane.b32.xlu0 %v509_v36, %s4411_s6  ;;  %v544_v35 = vld [vmem:[#allocation2 + $0x15a] sm:$0xff] }
  0xa4   : > { %1042 = vrot.lane.b32.xlu1 %v508_v37, %s4411_s6  ;;  %1048 = vrot.lane.b32.xlu0 %v511_v38, %s4411_s6  ;;  %v547_v37 = vld [vmem:[#allocation2 + $0x182] sm:$0xff] }
  0xa8   : > { %1046 = vrot.lane.b32.xlu1 %v510_v39, %s4411_s6  ;;  %1052 = vrot.lane.b32.xlu0 %v513_v40, %s4411_s6  ;;  %v546_v39 = vld [vmem:[#allocation2 + $0x172] sm:$0xff] }
  0xab   : > { %v4845_v50 = vpop.permute.xlu0 %950 }
  0xac   : > { %1050 = vrot.lane.b32.xlu1 %v512_v41, %s4411_s6  ;;  %1164 = vrot.lane.b32.xlu0 %v515_v42, %s4412_s7  ;;  %v549_v41 = vld [vmem:[#allocation2 + $0x19a] sm:$0xff] }
  0xb0   : > { %1054 = vrot.lane.b32.xlu1 %v514_v43, %s4411_s6  ;;  %1168 = vrot.lane.b32.xlu0 %v517_v44, %s4412_s7  ;;  %v548_v43 = vld [vmem:[#allocation2 + $0x18a] sm:$0xff]  ;;  %s6910_s6 = scalar_lea.hbm %s6949_s4, %s4083_s22 }
  0xb4   : > { %1166 = vrot.lane.b32.xlu1 %v516_v45, %s4412_s7  ;;  %1172 = vrot.lane.b32.xlu0 %v519_v46, %s4412_s7  ;;  %v551_v45 = vld [vmem:[#allocation2 + $0x1b2] sm:$0xff] }
  0xb8   : > { %1170 = vrot.lane.b32.xlu1 %v518_v48, %s4412_s7  ;;  %1176 = vrot.lane.b32.xlu0 %v521_v49, %s4412_s7  ;;  %v550_v48 = vld [vmem:[#allocation2 + $0x1a2] sm:$0xff] }
  0xba   : > { %v4849_v52 = vpop.permute.xlu1 %952  ;;  %v4851_v54 = vpop.permute.xlu0 %956 }
  0xbb   : > { %6953 = vst [vmem:[#allocation6_spill] sm:$0xff] %v4851_v54  ;;  %v732_v54 = vld [vmem:[#allocation2 + $0x30] sm:$0xff] }
  0xbc   : > { %1174 = vrot.lane.b32.xlu1 %v520_v51, %s4412_s7  ;;  %1180 = vrot.lane.b32.xlu0 %v523_v53, %s4412_s7  ;;  %v553_v51 = vld [vmem:[#allocation2 + $0x1ca] sm:$0xff] }
  0xbe   : > { %v4855_v56 = vpop.permute.xlu1 %954  ;;  %v4857_v58 = vpop.permute.xlu0 %960 }
  0xbf   : > { %6954 = vst [vmem:[#allocation7_spill] sm:$0xff] %v4857_v58 }
  0xc0   : > { %1178 = vrot.lane.b32.xlu1 %v522_v55, %s4412_s7  ;;  %1184 = vrot.lane.b32.xlu0 %v525_v57, %s4412_s7  ;;  %v350_v55 = vld [vmem:[%s4679_s5 + $0x1a0] sm:$0xff] }
  0xc1   : > { %v552_v57 = vld [vmem:[#allocation2 + $0x1ba] sm:$0xff]  ;;  %405 = vst.msk [vmem:[#allocation2 + $0x289] sm:$0xff] %vm209_vm0, %v350_v55  ;;  %v566_v55 = vld [vmem:[#allocation2 + $0x262] sm:$0xff] }
  0xc2   : > { %v4861_v60 = vpop.permute.xlu1 %958  ;;  %v4863_v62 = vpop.permute.xlu0 %964 }
  0xc3   : > { %6955 = vst [vmem:[#allocation8_spill] sm:$0xff] %v4861_v60  ;;  %6956 = vst [vmem:[#allocation9_spill] sm:$0xff] %v4863_v62 }
  0xc4   : > { %1182 = vrot.lane.b32.xlu1 %v524_v59, %s4412_s7  ;;  %1188 = vrot.lane.b32.xlu0 %v527_v61, %s4412_s7  ;;  %v555_v61 = vld [vmem:[#allocation2 + $0x1e2] sm:$0xff] }
  0xc6   : > { %v4867_v0 = vpop.permute.xlu1 %962  ;;  %v4869_v2 = vpop.permute.xlu0 %968 }
  0xc7   : > { %6957 = vst [vmem:[#allocation10_spill] sm:$0xff] %v4867_v0  ;;  %6958 = vst [vmem:[#allocation11_spill] sm:$0xff] %v4869_v2  ;;  %v5457_v0 = vld [vmem:[#allocation2 + $0xc2] sm:$0xff] }
  0xc8   : > { %1186 = vrot.lane.b32.xlu1 %v526_v63, %s4412_s7  ;;  %1192 = vrot.lane.b32.xlu0 %v529_v1, %s4412_s7  ;;  %v554_v1 = vld [vmem:[#allocation2 + $0x1d2] sm:$0xff] }
  0xca   : > { %v4873_v4 = vpop.permute.xlu1 %966  ;;  %v4875_v6 = vpop.permute.xlu0 %972 }
  0xcb   : > { %6959 = vst [vmem:[#allocation12_spill] sm:$0xff] %v4873_v4  ;;  %6960 = vst [vmem:[#allocation13_spill] sm:$0xff] %v4875_v6  ;;  %v5441_v4 = vld [vmem:[#allocation2 + $0x82] sm:$0xff] }
  0xcc   : > { %1190 = vrot.lane.b32.xlu1 %v528_v3, %s4412_s7  ;;  %1196 = vrot.lane.b32.xlu0 %v531_v5, %s4412_s7  ;;  %v557_v5 = vld [vmem:[#allocation2 + $0x1fa] sm:$0xff] }
  0xce   : > { %v4879_v8 = vpop.permute.xlu1 %970  ;;  %v4881_v10 = vpop.permute.xlu0 %976 }
  0xcf   : > { %6961 = vst [vmem:[#allocation14_spill] sm:$0xff] %v4879_v8  ;;  %6962 = vst [vmem:[#allocation15_spill] sm:$0xff] %v4881_v10  ;;  %v5277_v10 = vld [vmem:[#allocation2 + $0x121] sm:$0xff] }
  0xd0   : > { %1194 = vrot.lane.b32.xlu1 %v530_v7, %s4412_s7  ;;  %1200 = vrot.lane.b32.xlu0 %v533_v9, %s4412_s7  ;;  %v351_v9 = vld [vmem:[%s4679_s5 + $0x1a8] sm:$0xff] }
  0xd1   : > { %406 = vst.msk [vmem:[#allocation2 + $0x291] sm:$0xff] %vm209_vm0, %v351_v9  ;;  %v653_v8 = vld [vmem:[#allocation2 + $0x181] sm:$0xff] }
  0xd2   : > { %v4885_v12 = vpop.permute.xlu1 %974  ;;  %v4887_v14 = vpop.permute.xlu0 %980 }
  0xd3   : > { %6963 = vst [vmem:[#allocation16_spill] sm:$0xff] %v4885_v12  ;;  %6964 = vst [vmem:[#allocation17_spill] sm:$0xff] %v4887_v14  ;;  %v647_v12 = vld [vmem:[#allocation2 + $0x139] sm:$0xff] }
  0xd4   : > { %1198 = vrot.lane.b32.xlu1 %v532_v11, %s4412_s7  ;;  %1204 = vrot.lane.b32.xlu0 %v535_v13, %s4412_s7  ;;  %v556_v11 = vld [vmem:[#allocation2 + $0x1ea] sm:$0xff] }
  0xd6   : > { %v4891_v16 = vpop.permute.xlu1 %978  ;;  %v4893_v18 = vpop.permute.xlu0 %984 }
  0xd7   : > { %6965 = vst [vmem:[#allocation18_spill] sm:$0xff] %v4891_v16  ;;  %6966 = vst [vmem:[#allocation19_spill] sm:$0xff] %v4893_v18 }
  0xd8   : > { %1202 = vrot.lane.b32.xlu1 %v534_v15, %s4412_s7  ;;  %1208 = vrot.lane.b32.xlu0 %v537_v17, %s4412_s7  ;;  %v559_v15 = vld [vmem:[#allocation2 + $0x212] sm:$0xff] }
  0xda   : > { %v4897_v20 = vpop.permute.xlu1 %982  ;;  %v4899_v22 = vpop.permute.xlu0 %988 }
  0xdb   : > { %6967 = vst [vmem:[#allocation20_spill] sm:$0xff] %v4897_v20  ;;  %6968 = vst [vmem:[#allocation21_spill] sm:$0xff] %v4899_v22 }
  0xdc   : > { %1206 = vrot.lane.b32.xlu1 %v536_v19, %s4412_s7  ;;  %1212 = vrot.lane.b32.xlu0 %v539_v21, %s4412_s7  ;;  %v558_v19 = vld [vmem:[#allocation2 + $0x202] sm:$0xff] }
  0xde   : > { %v4903_v24 = vpop.permute.xlu1 %986  ;;  %v4905_v26 = vpop.permute.xlu0 %992 }
  0xdf   : > { %6969 = vst [vmem:[#allocation22_spill] sm:$0xff] %v4903_v24  ;;  %6970 = vst [vmem:[#allocation23_spill] sm:$0xff] %v4905_v26 }
  0xe0   : > { %1210 = vrot.lane.b32.xlu1 %v538_v23, %s4412_s7  ;;  %1216 = vrot.lane.b32.xlu0 %v541_v25, %s4412_s7  ;;  %v561_v23 = vld [vmem:[#allocation2 + $0x22a] sm:$0xff] }
  0xe2   : > { %v4909_v28 = vpop.permute.xlu1 %990  ;;  %v4911_v30 = vpop.permute.xlu0 %996 }
  0xe3   : > { %6971 = vst [vmem:[#allocation24_spill] sm:$0xff] %v4909_v28  ;;  %6972 = vst [vmem:[#allocation25_spill] sm:$0xff] %v4911_v30 }
  0xe4   : > { %1214 = vrot.lane.b32.xlu1 %v540_v27, %s4412_s7  ;;  %1220 = vrot.lane.b32.xlu0 %v543_v29, %s4412_s7  ;;  %v560_v27 = vld [vmem:[#allocation2 + $0x21a] sm:$0xff] }
  0xe6   : > { %v4915_v32 = vpop.permute.xlu1 %994  ;;  %v4917_v34 = vpop.permute.xlu0 %1000 }
  0xe7   : > { %6973 = vst [vmem:[#allocation26_spill] sm:$0xff] %v4915_v32  ;;  %6974 = vst [vmem:[#allocation27_spill] sm:$0xff] %v4917_v34 }
  0xe8   : > { %1218 = vrot.lane.b32.xlu1 %v542_v31, %s4412_s7  ;;  %1224 = vrot.lane.b32.xlu0 %v545_v33, %s4412_s7  ;;  %v563_v31 = vld [vmem:[#allocation2 + $0x242] sm:$0xff] }
  0xea   : > { %v4921_v36 = vpop.permute.xlu1 %998  ;;  %v4923_v38 = vpop.permute.xlu0 %1004 }
  0xeb   : > { %6975 = vst [vmem:[#allocation28_spill] sm:$0xff] %v4921_v36  ;;  %6976 = vst [vmem:[#allocation29_spill] sm:$0xff] %v4923_v38  ;;  %v443_v38 = vld [vmem:[#allocation2 + $0x1b0] sm:$0xff] }
  0xec   : > { %1222 = vrot.lane.b32.xlu1 %v544_v35, %s4412_s7  ;;  %1228 = vrot.lane.b32.xlu0 %v547_v37, %s4412_s7  ;;  %v562_v35 = vld [vmem:[#allocation2 + $0x232] sm:$0xff] }
  0xee   : > { %v4927_v40 = vpop.permute.xlu1 %1002  ;;  %v4929_v42 = vpop.permute.xlu0 %1008 }
  0xef   : > { %6977 = vst [vmem:[#allocation30_spill] sm:$0xff] %v4927_v40  ;;  %6978 = vst [vmem:[#allocation31_spill] sm:$0xff] %v4929_v42  ;;  %v441_v42 = vld [vmem:[#allocation2 + $0x198] sm:$0xff] }
  0xf0   : > { %1226 = vrot.lane.b32.xlu1 %v546_v39, %s4412_s7  ;;  %1232 = vrot.lane.b32.xlu0 %v549_v41, %s4412_s7  ;;  %v565_v39 = vld [vmem:[#allocation2 + $0x25a] sm:$0xff] }
  0xf2   : > { %v4933_v44 = vpop.permute.xlu1 %1006  ;;  %v4935_v46 = vpop.permute.xlu0 %1012 }
  0xf3   : > { %6979 = vst [vmem:[#allocation32_spill] sm:$0xff] %v4933_v44  ;;  %6980 = vst [vmem:[#allocation33_spill] sm:$0xff] %v4935_v46  ;;  %v439_v46 = vld [vmem:[#allocation2 + $0x180] sm:$0xff] }
  0xf4   : > { %1230 = vrot.lane.b32.xlu1 %v548_v43, %s4412_s7  ;;  %1236 = vrot.lane.b32.xlu0 %v551_v45, %s4412_s7  ;;  %v564_v43 = vld [vmem:[#allocation2 + $0x24a] sm:$0xff] }
  0xf6   : > { %v4939_v49 = vpop.permute.xlu1 %1010  ;;  %v4941_v53 = vpop.permute.xlu0 %1016 }
  0xf7   : > { %6981 = vst [vmem:[#allocation34_spill] sm:$0xff] %v4939_v49  ;;  %6982 = vst [vmem:[#allocation35_spill] sm:$0xff] %v4941_v53  ;;  %v437_v53 = vld [vmem:[#allocation2 + $0x168] sm:$0xff] }
  0xf8   : > { %1234 = vrot.lane.b32.xlu1 %v550_v48, %s4412_s7  ;;  %1240 = vrot.lane.b32.xlu0 %v553_v51, %s4412_s7  ;;  %v567_v48 = vld [vmem:[#allocation2 + $0x272] sm:$0xff] }
  0xfa   : > { %v4947_v59 = vpop.permute.xlu1 %1014  ;;  %v4949_v63 = vpop.permute.xlu0 %1020 }
  0xfb   : > { %6983 = vst [vmem:[#allocation36_spill] sm:$0xff] %v4947_v59  ;;  %6984 = vst [vmem:[#allocation37_spill] sm:$0xff] %v4949_v63  ;;  %v435_v63 = vld [vmem:[#allocation2 + $0x150] sm:$0xff] }
  0xfc   : > { %1238 = vrot.lane.b32.xlu1 %v552_v57, %s4412_s7  ;;  %1244 = vrot.lane.b32.xlu0 %v555_v61, %s4412_s7 }
  0xfe   : > { %v4953_v3 = vpop.permute.xlu1 %1018  ;;  %v4955_v7 = vpop.permute.xlu0 %1024 }
  0xff   : > { %6985 = vst [vmem:[#allocation38_spill] sm:$0xff] %v4953_v3  ;;  %6986 = vst [vmem:[#allocation39_spill] sm:$0xff] %v4955_v7  ;;  %v433_v7 = vld [vmem:[#allocation2 + $0x138] sm:$0xff] }
 0x100   : > { %1242 = vrot.lane.b32.xlu1 %v554_v1, %s4412_s7  ;;  %1248 = vrot.lane.b32.xlu0 %v557_v5, %s4412_s7  ;;  %v409_v1 = vld [vmem:[#allocation2 + $0x18] sm:$0xff] }
 0x101   : > { %v568_v5 = vld [vmem:[#allocation2 + $0x27a] sm:$0xff] }
 0x102   : > { %v4961_v13 = vpop.permute.xlu1 %1022  ;;  %v4963_v17 = vpop.permute.xlu0 %1028 }
 0x103   : > { %6987 = vst [vmem:[#allocation40_spill] sm:$0xff] %v4961_v13  ;;  %6988 = vst [vmem:[#allocation41_spill] sm:$0xff] %v4963_v17  ;;  %v431_v17 = vld [vmem:[#allocation2 + $0x120] sm:$0xff] }
 0x104   : > { %1246 = vrot.lane.b32.xlu1 %v556_v11, %s4412_s7  ;;  %1252 = vrot.lane.b32.xlu0 %v559_v15, %s4412_s7  ;;  %v411_v15 = vld [vmem:[#allocation2 + $0x30] sm:$0xff] }
 0x106   : > { %v4967_v21 = vpop.permute.xlu1 %1026  ;;  %v4969_v25 = vpop.permute.xlu0 %1032 }
 0x107   : > { %6989 = vst [vmem:[#allocation42_spill] sm:$0xff] %v4967_v21  ;;  %6990 = vst [vmem:[#allocation43_spill] sm:$0xff] %v4969_v25  ;;  %v429_v25 = vld [vmem:[#allocation2 + $0x108] sm:$0xff] }
 0x108   : > { %1250 = vrot.lane.b32.xlu1 %v558_v19, %s4412_s7  ;;  %1256 = vrot.lane.b32.xlu0 %v561_v23, %s4412_s7  ;;  %v410_v23 = vld [vmem:[#allocation2 + $0x20] sm:$0xff] }
 0x10a   : > { %v4973_v29 = vpop.permute.xlu1 %1030  ;;  %v4975_v33 = vpop.permute.xlu0 %1036 }
 0x10b   : > { %6991 = vst [vmem:[#allocation44_spill] sm:$0xff] %v4973_v29  ;;  %6992 = vst [vmem:[#allocation45_spill] sm:$0xff] %v4975_v33  ;;  %v427_v33 = vld [vmem:[#allocation2 + $0xf0] sm:$0xff] }
 0x10c   : > { %1254 = vrot.lane.b32.xlu1 %v560_v27, %s4412_s7  ;;  %1260 = vrot.lane.b32.xlu0 %v563_v31, %s4412_s7  ;;  %v413_v31 = vld [vmem:[#allocation2 + $0x48] sm:$0xff] }
 0x10e   : > { %v4979_v37 = vpop.permute.xlu1 %1034  ;;  %v4981_v41 = vpop.permute.xlu0 %1040 }
 0x10f   : > { %6993 = vst [vmem:[#allocation46_spill] sm:$0xff] %v4979_v37  ;;  %6994 = vst [vmem:[#allocation47_spill] sm:$0xff] %v4981_v41  ;;  %v425_v41 = vld [vmem:[#allocation2 + $0xd8] sm:$0xff] }
 0x110   : > { %1258 = vrot.lane.b32.xlu1 %v562_v35, %s4412_s7  ;;  %1264 = vrot.lane.b32.xlu0 %v565_v39, %s4412_s7  ;;  %v412_v39 = vld [vmem:[#allocation2 + $0x38] sm:$0xff] }
 0x112   : > { %v4985_v45 = vpop.permute.xlu1 %1038  ;;  %v4987_v51 = vpop.permute.xlu0 %1044 }
 0x113   : > { %6995 = vst [vmem:[#allocation48_spill] sm:$0xff] %v4985_v45  ;;  %6996 = vst [vmem:[#allocation49_spill] sm:$0xff] %v4987_v51  ;;  %v423_v51 = vld [vmem:[#allocation2 + $0xc0] sm:$0xff] }
 0x114   : > { %1262 = vrot.lane.b32.xlu1 %v564_v43, %s4412_s7  ;;  %1268 = vrot.lane.b32.xlu0 %v567_v48, %s4412_s7  ;;  %v415_v48 = vld [vmem:[#allocation2 + $0x60] sm:$0xff] }
 0x116   : > { %v4991_v57 = vpop.permute.xlu1 %1042  ;;  %v4993_v61 = vpop.permute.xlu0 %1048 }
 0x117   : > { %6997 = vst [vmem:[#allocation50_spill] sm:$0xff] %v4991_v57  ;;  %6998 = vst [vmem:[#allocation51_spill] sm:$0xff] %v4993_v61  ;;  %v421_v61 = vld [vmem:[#allocation2 + $0xa8] sm:$0xff] }
 0x118   : > { %1266 = vrot.lane.b32.xlu1 %v566_v55, %s4412_s7  ;;  %1380 = vrot.lane.b32.xlu0 %v409_v1, %s4413_s8  ;;  %v414_v1 = vld [vmem:[#allocation2 + $0x50] sm:$0xff] }
 0x11a   : > { %v4997_v9 = vpop.permute.xlu1 %1046  ;;  %v4999_v11 = vpop.permute.xlu0 %1052 }
 0x11b   : > { %6999 = vst [vmem:[#allocation52_spill] sm:$0xff] %v4997_v9  ;;  %7000 = vst [vmem:[#allocation53_spill] sm:$0xff] %v4999_v11  ;;  %v419_v11 = vld [vmem:[#allocation2 + $0x90] sm:$0xff] }
 0x11c   : > { %1270 = vrot.lane.b32.xlu1 %v568_v5, %s4412_s7  ;;  %1384 = vrot.lane.b32.xlu0 %v411_v15, %s4413_s8  ;;  %v417_v15 = vld [vmem:[#allocation2 + $0x78] sm:$0xff]  ;;  %s4417_s7 = smov 28  }
 0x11e   : > { %v5003_v19 = vpop.permute.xlu1 %1050  ;;  %v5005_v27 = vpop.permute.xlu0 %1164 }
 0x11f   : > { %7001 = vst [vmem:[#allocation54_spill] sm:$0xff] %v5003_v19 }
 0x120   : > { %1382 = vrot.lane.b32.xlu1 %v410_v23, %s4413_s8  ;;  %1388 = vrot.lane.b32.xlu0 %v413_v31, %s4413_s8  ;;  %v416_v31 = vld [vmem:[#allocation2 + $0x68] sm:$0xff] }
 0x122   : > { %v5009_v35 = vpop.permute.xlu1 %1054  ;;  %v5011_v43 = vpop.permute.xlu0 %1168 }
 0x123   : > { %7002 = vst [vmem:[#allocation55_spill] sm:$0xff] %v5009_v35 }
 0x124   : > { %1386 = vrot.lane.b32.xlu1 %v412_v39, %s4413_s8  ;;  %1392 = vrot.lane.b32.xlu0 %v415_v48, %s4413_s8  ;;  %v418_v48 = vld [vmem:[#allocation2 + $0x80] sm:$0xff] }
 0x126   : > { %v5015_v55 = vpop.permute.xlu1 %1166  ;;  %v5017_v5 = vpop.permute.xlu0 %1172 }
 0x127   : > { %7003 = vst [vmem:[#allocation56_spill] sm:$0xff] %v5017_v5 }
 0x128   : > { %1390 = vrot.lane.b32.xlu1 %v414_v1, %s4413_s8  ;;  %1396 = vrot.lane.b32.xlu0 %v417_v15, %s4413_s8  ;;  %v420_v15 = vld [vmem:[#allocation2 + $0x98] sm:$0xff] }
 0x12a   : > { %v5021_v23 = vpop.permute.xlu1 %1170  ;;  %v5023_v35 = vpop.permute.xlu0 %1176 }
 0x12b   : > { %7004 = vst [vmem:[#allocation57_spill] sm:$0xff] %v5021_v23  ;;  %7005 = vst [vmem:[#allocation58_spill] sm:$0xff] %v5023_v35  ;;  %v5469_v35 = vld [vmem:[#allocation2 + $0xda] sm:$0xff] }
 0x12c   : > { %1394 = vrot.lane.b32.xlu1 %v416_v31, %s4413_s8  ;;  %1400 = vrot.lane.b32.xlu0 %v419_v11, %s4413_s8  ;;  %v422_v31 = vld [vmem:[#allocation2 + $0xb0] sm:$0xff] }
 0x12e   : > { %v5027_v39 = vpop.permute.xlu1 %1174  ;;  %v5029_v19 = vpop.permute.xlu0 %1180 }
 0x12f   : > { %7006 = vst [vmem:[#allocation59_spill] sm:$0xff] %v5027_v39  ;;  %7007 = vst [vmem:[#allocation60_spill] sm:$0xff] %v5029_v19  ;;  %v5445_v19 = vld [vmem:[#allocation2 + $0xaa] sm:$0xff] }
 0x130   : > { %1398 = vrot.lane.b32.xlu1 %v418_v48, %s4413_s8  ;;  %1404 = vrot.lane.b32.xlu0 %v421_v61, %s4413_s8  ;;  %v424_v48 = vld [vmem:[#allocation2 + $0xc8] sm:$0xff] }
 0x131   : > { %v5493_v39 = vld [vmem:[#allocation2 + $0x10a] sm:$0xff] }
 0x132   : > { %v5033_v1 = vpop.permute.xlu1 %1178  ;;  %v5035_v9 = vpop.permute.xlu0 %1184 }
 0x133   : > { %7008 = vst [vmem:[#allocation61_spill] sm:$0xff] %v5033_v1  ;;  %7009 = vst [vmem:[#allocation62_spill] sm:$0xff] %v5035_v9 }
 0x134   : > { %1402 = vrot.lane.b32.xlu1 %v420_v15, %s4413_s8  ;;  %1408 = vrot.lane.b32.xlu0 %v423_v51, %s4413_s8  ;;  %v426_v15 = vld [vmem:[#allocation2 + $0xe0] sm:$0xff] }
 0x136   : > { %v5039_v11 = vpop.permute.xlu1 %1182  ;;  %v5041_v57 = vpop.permute.xlu0 %1188 }
 0x137   : > { %7010 = vst [vmem:[#allocation63_spill] sm:$0xff] %v5039_v11  ;;  %7011 = vst [vmem:[#allocation64_spill] sm:$0xff] %v5041_v57  ;;  %v649_v57 = vld [vmem:[#allocation2 + $0x151] sm:$0xff] }
 0x138   : > { %1406 = vrot.lane.b32.xlu1 %v422_v31, %s4413_s8  ;;  %1412 = vrot.lane.b32.xlu0 %v425_v41, %s4413_s8  ;;  %v428_v31 = vld [vmem:[#allocation2 + $0xf8] sm:$0xff] }
 0x13a   : > { %v5045_v61 = vpop.permute.xlu1 %1186  ;;  %v5047_v45 = vpop.permute.xlu0 %1192 }
 0x13b   : > { %7012 = vst [vmem:[#allocation65_spill] sm:$0xff] %v5045_v61  ;;  %7013 = vst [vmem:[#allocation66_spill] sm:$0xff] %v5047_v45 }
 0x13c   : > { %1410 = vrot.lane.b32.xlu1 %v424_v48, %s4413_s8  ;;  %1416 = vrot.lane.b32.xlu0 %v427_v33, %s4413_s8  ;;  %v430_v48 = vld [vmem:[#allocation2 + $0x110] sm:$0xff] }
 0x13e   : > { %v5051_v51 = vpop.permute.xlu1 %1190  ;;  %v5053_v37 = vpop.permute.xlu0 %1196 }
 0x13f   : > { %7014 = vst [vmem:[#allocation67_spill] sm:$0xff] %v5051_v51  ;;  %7015 = vst [vmem:[#allocation68_spill] sm:$0xff] %v5053_v37  ;;  %v5261_v37 = vld [vmem:[#allocation2 + $0xe1] sm:$0xff] }
 0x140   : > { %1414 = vrot.lane.b32.xlu1 %v426_v15, %s4413_s8  ;;  %1420 = vrot.lane.b32.xlu0 %v429_v25, %s4413_s8  ;;  %v432_v15 = vld [vmem:[#allocation2 + $0x128] sm:$0xff] }
 0x142   : > { %v5057_v41 = vpop.permute.xlu1 %1194  ;;  %v5059_v29 = vpop.permute.xlu0 %1200 }
 0x143   : > { %7016 = vst [vmem:[#allocation69_spill] sm:$0xff] %v5057_v41  ;;  %7017 = vst [vmem:[#allocation70_spill] sm:$0xff] %v5059_v29  ;;  %v5249_v29 = vld [vmem:[#allocation2 + $0xc9] sm:$0xff] }
 0x144   : > { %1418 = vrot.lane.b32.xlu1 %v428_v31, %s4413_s8  ;;  %1424 = vrot.lane.b32.xlu0 %v431_v17, %s4413_s8  ;;  %v434_v31 = vld [vmem:[#allocation2 + $0x140] sm:$0xff]  ;;  %v5265_v41 = vld [vmem:[#allocation2 + $0x109] sm:$0xff] }
 0x146   : > { %v5063_v33 = vpop.permute.xlu1 %1198  ;;  %v5065_v21 = vpop.permute.xlu0 %1204 }
 0x147   : > { %7018 = vst [vmem:[#allocation71_spill] sm:$0xff] %v5063_v33  ;;  %7019 = vst [vmem:[#allocation72_spill] sm:$0xff] %v5065_v21  ;;  %v5237_v21 = vld [vmem:[#allocation2 + $0xb1] sm:$0xff] }
 0x148   : > { %1422 = vrot.lane.b32.xlu1 %v430_v48, %s4413_s8  ;;  %1428 = vrot.lane.b32.xlu0 %v433_v7, %s4413_s8  ;;  %v436_v48 = vld [vmem:[#allocation2 + $0x158] sm:$0xff] }
 0x149   : > { %v5253_v33 = vld [vmem:[#allocation2 + $0xf1] sm:$0xff] }
 0x14a   : > { %v5069_v25 = vpop.permute.xlu1 %1202  ;;  %v5071_v13 = vpop.permute.xlu0 %1208 }
 0x14b   : > { %7020 = vst [vmem:[#allocation73_spill] sm:$0xff] %v5069_v25  ;;  %7021 = vst [vmem:[#allocation74_spill] sm:$0xff] %v5071_v13  ;;  %v5225_v13 = vld [vmem:[#allocation2 + $0x99] sm:$0xff] }
 0x14c   : > { %1426 = vrot.lane.b32.xlu1 %v432_v15, %s4413_s8  ;;  %1432 = vrot.lane.b32.xlu0 %v435_v63, %s4413_s8  ;;  %v438_v15 = vld [vmem:[#allocation2 + $0x170] sm:$0xff]  ;;  %v5241_v25 = vld [vmem:[#allocation2 + $0xd9] sm:$0xff] }
 0x14e   : > { %v5075_v17 = vpop.permute.xlu1 %1206  ;;  %v5077_v3 = vpop.permute.xlu0 %1212 }
 0x14f   : > { %7022 = vst [vmem:[#allocation75_spill] sm:$0xff] %v5075_v17  ;;  %7023 = vst [vmem:[#allocation76_spill] sm:$0xff] %v5077_v3  ;;  %v5213_v3 = vld [vmem:[#allocation2 + $0x81] sm:$0xff] }
 0x150   : > { %1430 = vrot.lane.b32.xlu1 %v434_v31, %s4413_s8  ;;  %1436 = vrot.lane.b32.xlu0 %v437_v53, %s4413_s8  ;;  %v440_v31 = vld [vmem:[#allocation2 + $0x188] sm:$0xff] }
 0x151   : > { %v5229_v17 = vld [vmem:[#allocation2 + $0xc1] sm:$0xff] }
 0x152   : > { %v5081_v7 = vpop.permute.xlu1 %1210  ;;  %v5083_v59 = vpop.permute.xlu0 %1216 }
 0x153   : > { %7024 = vst [vmem:[#allocation77_spill] sm:$0xff] %v5081_v7  ;;  %7025 = vst [vmem:[#allocation78_spill] sm:$0xff] %v5083_v59  ;;  %v5217_v7 = vld [vmem:[#allocation2 + $0xa9] sm:$0xff] }
 0x154   : > { %1434 = vrot.lane.b32.xlu1 %v436_v48, %s4413_s8  ;;  %1440 = vrot.lane.b32.xlu0 %v439_v46, %s4413_s8  ;;  %v442_v48 = vld [vmem:[#allocation2 + $0x1a0] sm:$0xff] }
 0x156   : > { %v5087_v63 = vpop.permute.xlu1 %1214  ;;  %v5089_v49 = vpop.permute.xlu0 %1220 }
 0x157   : > { %7026 = vst [vmem:[#allocation79_spill] sm:$0xff] %v5087_v63  ;;  %7027 = vst [vmem:[#allocation80_spill] sm:$0xff] %v5089_v49  ;;  %v445_v49 = vld [vmem:[#allocation2 + $0x1c8] sm:$0xff]  ;;  %v5205_v63 = vld [vmem:[#allocation2 + $0x91] sm:$0xff] }
 0x158   : > { %1438 = vrot.lane.b32.xlu1 %v438_v15, %s4413_s8  ;;  %1444 = vrot.lane.b32.xlu0 %v441_v42, %s4413_s8  ;;  %v444_v15 = vld [vmem:[#allocation2 + $0x1b8] sm:$0xff] }
 0x15a   : > { %v5093_v53 = vpop.permute.xlu1 %1218  ;;  %v5095_v44 = vpop.permute.xlu0 %1224 }
 0x15b   : > { %7028 = vst [vmem:[#allocation81_spill] sm:$0xff] %v5093_v53  ;;  %7029 = vst [vmem:[#allocation82_spill] sm:$0xff] %v5095_v44  ;;  %v447_v44 = vld [vmem:[#allocation2 + $0x1e0] sm:$0xff] }
 0x15c   : > { %1442 = vrot.lane.b32.xlu1 %v440_v31, %s4413_s8  ;;  %1448 = vrot.lane.b32.xlu0 %v443_v38, %s4413_s8  ;;  %v446_v31 = vld [vmem:[#allocation2 + $0x1d0] sm:$0xff] }
 0x15e   : > { %v5099_v46 = vpop.permute.xlu1 %1222  ;;  %v5101_v40 = vpop.permute.xlu0 %1228 }
 0x15f   : > { %7030 = vst [vmem:[#allocation83_spill] sm:$0xff] %v5099_v46  ;;  %7031 = vst [vmem:[#allocation84_spill] sm:$0xff] %v5101_v40  ;;  %v449_v40 = vld [vmem:[#allocation2 + $0x1f8] sm:$0xff] }
 0x160   : > { %1446 = vrot.lane.b32.xlu1 %v442_v48, %s4413_s8  ;;  %1452 = vrot.lane.b32.xlu0 %v445_v49, %s4413_s8  ;;  %v448_v48 = vld [vmem:[#allocation2 + $0x1e8] sm:$0xff] }
 0x162   : > { %v5105_v42 = vpop.permute.xlu1 %1226  ;;  %v5107_v53 = vpop.permute.xlu0 %1232 }
 0x163   : > { %7032 = vst [vmem:[#allocation85_spill] sm:$0xff] %v5105_v42  ;;  %7033 = vst [vmem:[#allocation86_spill] sm:$0xff] %v5107_v53  ;;  %v451_v53 = vld [vmem:[#allocation2 + $0x210] sm:$0xff] }
 0x164   : > { %1450 = vrot.lane.b32.xlu1 %v444_v15, %s4413_s8  ;;  %1456 = vrot.lane.b32.xlu0 %v447_v44, %s4413_s8  ;;  %v450_v15 = vld [vmem:[#allocation2 + $0x200] sm:$0xff] }
 0x166   : > { %v5111_v38 = vpop.permute.xlu1 %1230  ;;  %v5113_v46 = vpop.permute.xlu0 %1236 }
 0x167   : > { %7034 = vst [vmem:[#allocation87_spill] sm:$0xff] %v5111_v38  ;;  %7035 = vst [vmem:[#allocation88_spill] sm:$0xff] %v5113_v46  ;;  %v453_v46 = vld [vmem:[#allocation2 + $0x228] sm:$0xff] }
 0x168   : > { %1454 = vrot.lane.b32.xlu1 %v446_v31, %s4413_s8  ;;  %1460 = vrot.lane.b32.xlu0 %v449_v40, %s4413_s8  ;;  %v452_v31 = vld [vmem:[#allocation2 + $0x218] sm:$0xff] }
 0x16a   : > { %v5117_v49 = vpop.permute.xlu1 %1234  ;;  %v5119_v42 = vpop.permute.xlu0 %1240 }
 0x16b   : > { %7036 = vst [vmem:[#allocation89_spill] sm:$0xff] %v5117_v49  ;;  %7037 = vst [vmem:[#allocation90_spill] sm:$0xff] %v5119_v42  ;;  %v455_v42 = vld [vmem:[#allocation2 + $0x240] sm:$0xff] }
 0x16c   : > { %1458 = vrot.lane.b32.xlu1 %v448_v48, %s4413_s8  ;;  %1464 = vrot.lane.b32.xlu0 %v451_v53, %s4413_s8  ;;  %v454_v48 = vld [vmem:[#allocation2 + $0x230] sm:$0xff] }
 0x16e   : > { %v5123_v44 = vpop.permute.xlu1 %1238  ;;  %v5125_v38 = vpop.permute.xlu0 %1244 }
 0x16f   : > { %7038 = vst [vmem:[#allocation91_spill] sm:$0xff] %v5123_v44  ;;  %7039 = vst [vmem:[#allocation92_spill] sm:$0xff] %v5125_v38  ;;  %v457_v38 = vld [vmem:[#allocation2 + $0x258] sm:$0xff] }
 0x170   : > { %1462 = vrot.lane.b32.xlu1 %v450_v15, %s4413_s8  ;;  %1468 = vrot.lane.b32.xlu0 %v453_v46, %s4413_s8  ;;  %v456_v15 = vld [vmem:[#allocation2 + $0x248] sm:$0xff] }
 0x172   : > { %v5129_v40 = vpop.permute.xlu1 %1242  ;;  %v5131_v49 = vpop.permute.xlu0 %1248 }
 0x173   : > { %7040 = vst [vmem:[#allocation93_spill] sm:$0xff] %v5129_v40  ;;  %7041 = vst [vmem:[#allocation94_spill] sm:$0xff] %v5131_v49  ;;  %v459_v49 = vld [vmem:[#allocation2 + $0x270] sm:$0xff] }
 0x174   : > { %1466 = vrot.lane.b32.xlu1 %v452_v31, %s4413_s8  ;;  %1472 = vrot.lane.b32.xlu0 %v455_v42, %s4413_s8  ;;  %v621_v31 = vld [vmem:[#allocation2 + $0x288] sm:$0xff] }
 0x176   : > { %v5135_v53 = vpop.permute.xlu1 %1246  ;;  %v5137_v44 = vpop.permute.xlu0 %1252 }
 0x177   : > { %7042 = vst [vmem:[#allocation95_spill] sm:$0xff] %v5135_v53  ;;  %7043 = vst [vmem:[#allocation96_spill] sm:$0xff] %v5137_v44  ;;  %v458_v53 = vld [vmem:[#allocation2 + $0x260] sm:$0xff] }
 0x178   : > { %1470 = vrot.lane.b32.xlu1 %v454_v48, %s4413_s8  ;;  %1476 = vrot.lane.b32.xlu0 %v457_v38, %s4413_s8  ;;  %v623_v48 = vld [vmem:[#allocation2 + $0x19] sm:$0xff] }
 0x17a   : > { %v5141_v46 = vpop.permute.xlu1 %1250  ;;  %v5143_v40 = vpop.permute.xlu0 %1256 }
 0x17b   : > { %7044 = vst [vmem:[#allocation97_spill] sm:$0xff] %v5141_v46  ;;  %7045 = vst [vmem:[#allocation98_spill] sm:$0xff] %v5143_v40  ;;  %v460_v46 = vld [vmem:[#allocation2 + $0x278] sm:$0xff] }
 0x17c   : > { %1474 = vrot.lane.b32.xlu1 %v456_v15, %s4413_s8  ;;  %1480 = vrot.lane.b32.xlu0 %v459_v49, %s4413_s8  ;;  %v622_v49 = vld [vmem:[#allocation2 + $0x290] sm:$0xff] }
 0x17e   : > { %v5147_v42 = vpop.permute.xlu1 %1254  ;;  %v5149_v44 = vpop.permute.xlu0 %1260 }
 0x17f   : > { %7046 = vst [vmem:[#allocation99_spill] sm:$0xff] %v5147_v42  ;;  %7047 = vst [vmem:[#allocation100_spill] sm:$0xff] %v5149_v44  ;;  %v5161_v42 = vld [vmem:[#allocation2 + $0x31] sm:$0xff] }
 0x180   : > { %1478 = vrot.lane.b32.xlu1 %v458_v53, %s4413_s8  ;;  %1484 = vrot.lane.b32.xlu0 %v621_v31, %s4413_s8  ;;  %v624_v53 = vld [vmem:[#allocation2 + $0x21] sm:$0xff] }
 0x182   : > { %v5153_v38 = vpop.permute.xlu1 %1258  ;;  %v5155_v40 = vpop.permute.xlu0 %1264 }
 0x183   : > { %7048 = vst [vmem:[#allocation101_spill] sm:$0xff] %v5153_v38  ;;  %7049 = vst [vmem:[#allocation102_spill] sm:$0xff] %v5155_v40  ;;  %v5170_v40 = vld [vmem:[#allocation2 + $0x49] sm:$0xff]  ;;  %v5193_v38 = vld [vmem:[#allocation2 + $0x79] sm:$0xff] }
 0x184   : > { %1482 = vrot.lane.b32.xlu1 %v460_v46, %s4413_s8  ;;  %1596 = vrot.lane.b32.xlu0 %v623_v48, %s4414_s9  ;;  %v5177_v48 = vld [vmem:[#allocation2 + $0x39] sm:$0xff] }
 0x186   : > { %v5159_v15 = vpop.permute.xlu1 %1262  ;;  %v5163_v44 = vpop.permute.xlu0 %1268 }
 0x187   : > { %7050 = vst [vmem:[#allocation103_spill] sm:$0xff] %v5159_v15  ;;  %7051 = vst [vmem:[#allocation104_spill] sm:$0xff] %v5163_v44 }
 0x188   : > { %1486 = vrot.lane.b32.xlu1 %v622_v49, %s4413_s8  ;;  %1600 = vrot.lane.b32.xlu0 %v5161_v42, %s4414_s9  ;;  %v5181_v49 = vld [vmem:[#allocation2 + $0x61] sm:$0xff]  ;;  %s4418_s8 = smov 32  }
 0x18a   : > { %v5168_v31 = vpop.permute.xlu1 %1266  ;;  %v5172_v46 = vpop.permute.xlu0 %1380 }
 0x18b   : > { %7052 = vst [vmem:[#allocation105_spill] sm:$0xff] %v5168_v31  ;;  %v5189_v31 = vld [vmem:[#allocation2 + $0x51] sm:$0xff] }
 0x18c   : > { %1598 = vrot.lane.b32.xlu1 %v624_v53, %s4414_s9  ;;  %1604 = vrot.lane.b32.xlu0 %v5170_v40, %s4414_s9 }
 0x18e   : > { %v5179_v44 = vpop.permute.xlu1 %1270  ;;  %v5183_v15 = vpop.permute.xlu0 %1384 }
 0x18f   : > { %7053 = vst [vmem:[#allocation106_spill] sm:$0xff] %v5179_v44  ;;  %v5201_v44 = vld [vmem:[#allocation2 + $0x69] sm:$0xff] }
 0x190   : > { %1602 = vrot.lane.b32.xlu1 %v5177_v48, %s4414_s9  ;;  %1608 = vrot.lane.b32.xlu0 %v5181_v49, %s4414_s9 }
 0x192   : > { %v5191_v53 = vpop.permute.xlu1 %1382  ;;  %v5195_v59 = vpop.permute.xlu0 %1388 }
 0x193   : > { %7054 = vst [vmem:[#allocation107_spill] sm:$0xff] %v5195_v59  ;;  %v3064_v59 = vld [vmem:[%s6946_s1 + $0x18] sm:$0xff] }
 0x194   : > { %1606 = vrot.lane.b32.xlu1 %v5189_v31, %s4414_s9  ;;  %1612 = vrot.lane.b32.xlu0 %v5193_v38, %s4414_s9 }
 0x196   : > { %v5203_v34 = vpop.permute.xlu1 %1386  ;;  %v5207_v36 = vpop.permute.xlu0 %1392 }
 0x197   : > { %7055 = vst [vmem:[#allocation108_spill] sm:$0xff] %v5203_v34  ;;  %7056 = vst [vmem:[#allocation109_spill] sm:$0xff] %v5207_v36  ;;  %v5534_v34 = vld [vmem:[#allocation2 + $0x12a] sm:$0xff] }
 0x198   : > { %1610 = vrot.lane.b32.xlu1 %v5201_v44, %s4414_s9  ;;  %1616 = vrot.lane.b32.xlu0 %v5205_v63, %s4414_s9  ;;  %7122 = vst [vmem:[#allocation175_spill] sm:$0xff] %v5534_v34 }
 0x19a   : > { %v5215_v30 = vpop.permute.xlu1 %1390  ;;  %v5219_v32 = vpop.permute.xlu0 %1396 }
 0x19b   : > { %7057 = vst [vmem:[#allocation110_spill] sm:$0xff] %v5215_v30  ;;  %7058 = vst [vmem:[#allocation111_spill] sm:$0xff] %v5219_v32 }
 0x19c   : > { %1614 = vrot.lane.b32.xlu1 %v5213_v3, %s4414_s9  ;;  %1620 = vrot.lane.b32.xlu0 %v5217_v7, %s4414_s9 }
 0x19e   : > { %v5227_v26 = vpop.permute.xlu1 %1394  ;;  %v5231_v28 = vpop.permute.xlu0 %1400 }
 0x19f   : > { %7059 = vst [vmem:[#allocation112_spill] sm:$0xff] %v5227_v26  ;;  %7060 = vst [vmem:[#allocation113_spill] sm:$0xff] %v5231_v28  ;;  %v5453_v26 = vld [vmem:[#allocation2 + $0x9a] sm:$0xff] }
 0x1a0   : > { %1618 = vrot.lane.b32.xlu1 %v5225_v13, %s4414_s9  ;;  %1624 = vrot.lane.b32.xlu0 %v5229_v17, %s4414_s9 }
 0x1a2   : > { %v5239_v22 = vpop.permute.xlu1 %1398  ;;  %v5243_v24 = vpop.permute.xlu0 %1404 }
 0x1a3   : > { %7061 = vst [vmem:[#allocation114_spill] sm:$0xff] %v5239_v22  ;;  %7062 = vst [vmem:[#allocation115_spill] sm:$0xff] %v5243_v24  ;;  %v5433_v22 = vld [vmem:[#allocation2 + $0x92] sm:$0xff] }
 0x1a4   : > { %1622 = vrot.lane.b32.xlu1 %v5237_v21, %s4414_s9  ;;  %1628 = vrot.lane.b32.xlu0 %v5241_v25, %s4414_s9 }
 0x1a6   : > { %v5251_v18 = vpop.permute.xlu1 %1402  ;;  %v5255_v20 = vpop.permute.xlu0 %1408 }
 0x1a7   : > { %7063 = vst [vmem:[#allocation116_spill] sm:$0xff] %v5251_v18  ;;  %7064 = vst [vmem:[#allocation117_spill] sm:$0xff] %v5255_v20  ;;  %v5273_v20 = vld [vmem:[#allocation2 + $0xf9] sm:$0xff] }
 0x1a8   : > { %1626 = vrot.lane.b32.xlu1 %v5249_v29, %s4414_s9  ;;  %1632 = vrot.lane.b32.xlu0 %v5253_v33, %s4414_s9 }
 0x1aa   : > { %v5263_v14 = vpop.permute.xlu1 %1406  ;;  %v5267_v16 = vpop.permute.xlu0 %1412 }
 0x1ab   : > { %7065 = vst [vmem:[#allocation118_spill] sm:$0xff] %v5263_v14  ;;  %7066 = vst [vmem:[#allocation119_spill] sm:$0xff] %v5267_v16  ;;  %v5285_v16 = vld [vmem:[#allocation2 + $0x111] sm:$0xff] }
 0x1ac   : > { %1630 = vrot.lane.b32.xlu1 %v5261_v37, %s4414_s9  ;;  %1636 = vrot.lane.b32.xlu0 %v5265_v41, %s4414_s9 }
 0x1ae   : > { %v5275_v45 = vpop.permute.xlu1 %1410  ;;  %v5279_v51 = vpop.permute.xlu0 %1416 }
 0x1af   : > { %7067 = vst [vmem:[#allocation120_spill] sm:$0xff] %v5275_v45  ;;  %7068 = vst [vmem:[#allocation121_spill] sm:$0xff] %v5279_v51  ;;  %v5294_v45 = vld [vmem:[#allocation2 + $0x129] sm:$0xff] }
 0x1b0   : > { %1634 = vrot.lane.b32.xlu1 %v5273_v20, %s4414_s9  ;;  %1640 = vrot.lane.b32.xlu0 %v5277_v10, %s4414_s9 }
 0x1b2   : > { %v5287_v14 = vpop.permute.xlu1 %1414  ;;  %v5289_v24 = vpop.permute.xlu0 %1420 }
 0x1b3   : > { %7069 = vst [vmem:[#allocation122_spill] sm:$0xff] %v5287_v14  ;;  %7070 = vst [vmem:[#allocation123_spill] sm:$0xff] %v5289_v24  ;;  %v648_v14 = vld [vmem:[#allocation2 + $0x141] sm:$0xff]  ;;  %v651_v24 = vld [vmem:[#allocation2 + $0x169] sm:$0xff] }
 0x1b4   : > { %1638 = vrot.lane.b32.xlu1 %v5285_v16, %s4414_s9  ;;  %1644 = vrot.lane.b32.xlu0 %v647_v12, %s4414_s9  ;;  %v650_v12 = vld [vmem:[#allocation2 + $0x159] sm:$0xff] }
 0x1b6   : > { %v5296_v51 = vpop.permute.xlu1 %1418  ;;  %v5298_v6 = vpop.permute.xlu0 %1424 }
 0x1b7   : > { %7071 = vst [vmem:[#allocation124_spill] sm:$0xff] %v5296_v51  ;;  %7072 = vst [vmem:[#allocation125_spill] sm:$0xff] %v5298_v6 }
 0x1b8   : > { %1642 = vrot.lane.b32.xlu1 %v5294_v45, %s4414_s9  ;;  %1648 = vrot.lane.b32.xlu0 %v649_v57, %s4414_s9  ;;  %v652_v57 = vld [vmem:[#allocation2 + $0x171] sm:$0xff] }
 0x1ba   : > { %v5303_v18 = vpop.permute.xlu1 %1422  ;;  %v5305_v61 = vpop.permute.xlu0 %1428 }
 0x1bb   : > { %7073 = vst [vmem:[#allocation126_spill] sm:$0xff] %v5303_v18  ;;  %7074 = vst [vmem:[#allocation127_spill] sm:$0xff] %v5305_v61  ;;  %v655_v18 = vld [vmem:[#allocation2 + $0x199] sm:$0xff]  ;;  %v657_v61 = vld [vmem:[#allocation2 + $0x1b1] sm:$0xff] }
 0x1bc   : > { %1646 = vrot.lane.b32.xlu1 %v648_v14, %s4414_s9  ;;  %1652 = vrot.lane.b32.xlu0 %v651_v24, %s4414_s9  ;;  %v654_v14 = vld [vmem:[#allocation2 + $0x189] sm:$0xff] }
 0x1be   : > { %v5309_v51 = vpop.permute.xlu1 %1426  ;;  %v5311_v6 = vpop.permute.xlu0 %1432 }
 0x1bf   : > { %7075 = vst [vmem:[#allocation128_spill] sm:$0xff] %v5309_v51  ;;  %7076 = vst [vmem:[#allocation129_spill] sm:$0xff] %v5311_v6  ;;  %v659_v6 = vld [vmem:[#allocation2 + $0x1c9] sm:$0xff] }
 0x1c0   : > { %1650 = vrot.lane.b32.xlu1 %v650_v12, %s4414_s9  ;;  %1656 = vrot.lane.b32.xlu0 %v653_v8, %s4414_s9  ;;  %v656_v8 = vld [vmem:[#allocation2 + $0x1a1] sm:$0xff] }
 0x1c2   : > { %v5315_v28 = vpop.permute.xlu1 %1430  ;;  %v5317_v9 = vpop.permute.xlu0 %1436 }
 0x1c3   : > { %7077 = vst [vmem:[#allocation130_spill] sm:$0xff] %v5315_v28  ;;  %7078 = vst [vmem:[#allocation131_spill] sm:$0xff] %v5317_v9  ;;  %v661_v9 = vld [vmem:[#allocation2 + $0x1e1] sm:$0xff] }
 0x1c4   : > { %1654 = vrot.lane.b32.xlu1 %v652_v57, %s4414_s9  ;;  %1660 = vrot.lane.b32.xlu0 %v655_v18, %s4414_s9  ;;  %v658_v18 = vld [vmem:[#allocation2 + $0x1b9] sm:$0xff] }
 0x1c6   : > { %v5321_v24 = vpop.permute.xlu1 %1434  ;;  %v5323_v51 = vpop.permute.xlu0 %1440 }
 0x1c7   : > { %7079 = vst [vmem:[#allocation132_spill] sm:$0xff] %v5321_v24  ;;  %7080 = vst [vmem:[#allocation133_spill] sm:$0xff] %v5323_v51  ;;  %v663_v51 = vld [vmem:[#allocation2 + $0x1f9] sm:$0xff] }
 0x1c8   : > { %1658 = vrot.lane.b32.xlu1 %v654_v14, %s4414_s9  ;;  %1664 = vrot.lane.b32.xlu0 %v657_v61, %s4414_s9  ;;  %v660_v61 = vld [vmem:[#allocation2 + $0x1d1] sm:$0xff] }
 0x1ca   : > { %v5327_v12 = vpop.permute.xlu1 %1438  ;;  %v5329_v28 = vpop.permute.xlu0 %1444 }
 0x1cb   : > { %7081 = vst [vmem:[#allocation134_spill] sm:$0xff] %v5327_v12  ;;  %7082 = vst [vmem:[#allocation135_spill] sm:$0xff] %v5329_v28  ;;  %v665_v28 = vld [vmem:[#allocation2 + $0x211] sm:$0xff] }
 0x1cc   : > { %1662 = vrot.lane.b32.xlu1 %v656_v8, %s4414_s9  ;;  %1668 = vrot.lane.b32.xlu0 %v659_v6, %s4414_s9  ;;  %v662_v6 = vld [vmem:[#allocation2 + $0x1e9] sm:$0xff] }
 0x1ce   : > { %v5333_v57 = vpop.permute.xlu1 %1442  ;;  %v5335_v24 = vpop.permute.xlu0 %1448 }
 0x1cf   : > { %7083 = vst [vmem:[#allocation136_spill] sm:$0xff] %v5333_v57  ;;  %7084 = vst [vmem:[#allocation137_spill] sm:$0xff] %v5335_v24  ;;  %v667_v24 = vld [vmem:[#allocation2 + $0x229] sm:$0xff] }
 0x1d0   : > { %1666 = vrot.lane.b32.xlu1 %v658_v18, %s4414_s9  ;;  %1672 = vrot.lane.b32.xlu0 %v661_v9, %s4414_s9  ;;  %v664_v9 = vld [vmem:[#allocation2 + $0x201] sm:$0xff] }
 0x1d2   : > { %v5339_v14 = vpop.permute.xlu1 %1446  ;;  %v5341_v12 = vpop.permute.xlu0 %1452 }
 0x1d3   : > { %7085 = vst [vmem:[#allocation138_spill] sm:$0xff] %v5339_v14  ;;  %7086 = vst [vmem:[#allocation139_spill] sm:$0xff] %v5341_v12  ;;  %v669_v12 = vld [vmem:[#allocation2 + $0x241] sm:$0xff] }
 0x1d4   : > { %1670 = vrot.lane.b32.xlu1 %v660_v61, %s4414_s9  ;;  %1676 = vrot.lane.b32.xlu0 %v663_v51, %s4414_s9  ;;  %v666_v51 = vld [vmem:[#allocation2 + $0x219] sm:$0xff] }
 0x1d6   : > { %v5345_v8 = vpop.permute.xlu1 %1450  ;;  %v5347_v57 = vpop.permute.xlu0 %1456 }
 0x1d7   : > { %7087 = vst [vmem:[#allocation140_spill] sm:$0xff] %v5345_v8  ;;  %7088 = vst [vmem:[#allocation141_spill] sm:$0xff] %v5347_v57  ;;  %v671_v57 = vld [vmem:[#allocation2 + $0x259] sm:$0xff] }
 0x1d8   : > { %1674 = vrot.lane.b32.xlu1 %v662_v6, %s4414_s9  ;;  %1680 = vrot.lane.b32.xlu0 %v665_v28, %s4414_s9  ;;  %v668_v28 = vld [vmem:[#allocation2 + $0x231] sm:$0xff] }
 0x1da   : > { %v5351_v18 = vpop.permute.xlu1 %1454  ;;  %v5353_v14 = vpop.permute.xlu0 %1460 }
 0x1db   : > { %7089 = vst [vmem:[#allocation142_spill] sm:$0xff] %v5351_v18  ;;  %7090 = vst [vmem:[#allocation143_spill] sm:$0xff] %v5353_v14  ;;  %v673_v14 = vld [vmem:[#allocation2 + $0x271] sm:$0xff] }
 0x1dc   : > { %1678 = vrot.lane.b32.xlu1 %v664_v9, %s4414_s9  ;;  %1684 = vrot.lane.b32.xlu0 %v667_v24, %s4414_s9  ;;  %v670_v24 = vld [vmem:[#allocation2 + $0x249] sm:$0xff] }
 0x1de   : > { %v5357_v61 = vpop.permute.xlu1 %1458  ;;  %v5359_v8 = vpop.permute.xlu0 %1464 }
 0x1df   : > { %7091 = vst [vmem:[#allocation144_spill] sm:$0xff] %v5357_v61  ;;  %7092 = vst [vmem:[#allocation145_spill] sm:$0xff] %v5359_v8  ;;  %v675_v8 = vld [vmem:[#allocation2 + $0x289] sm:$0xff] }
 0x1e0   : > { %1682 = vrot.lane.b32.xlu1 %v666_v51, %s4414_s9  ;;  %1688 = vrot.lane.b32.xlu0 %v669_v12, %s4414_s9  ;;  %v672_v12 = vld [vmem:[#allocation2 + $0x261] sm:$0xff] }
 0x1e2   : > { %v5363_v6 = vpop.permute.xlu1 %1462  ;;  %v5365_v18 = vpop.permute.xlu0 %1468 }
 0x1e3   : > { %7093 = vst [vmem:[#allocation146_spill] sm:$0xff] %v5363_v6  ;;  %7094 = vst [vmem:[#allocation147_spill] sm:$0xff] %v5365_v18  ;;  %v677_v18 = vld [vmem:[#allocation2 + $0x1a] sm:$0xff] }
 0x1e4   : > { %1686 = vrot.lane.b32.xlu1 %v668_v28, %s4414_s9  ;;  %1692 = vrot.lane.b32.xlu0 %v671_v57, %s4414_s9  ;;  %v674_v57 = vld [vmem:[#allocation2 + $0x279] sm:$0xff] }
 0x1e6   : > { %v5369_v9 = vpop.permute.xlu1 %1466  ;;  %v5371_v61 = vpop.permute.xlu0 %1472 }
 0x1e7   : > { %7095 = vst [vmem:[#allocation148_spill] sm:$0xff] %v5369_v9  ;;  %7096 = vst [vmem:[#allocation149_spill] sm:$0xff] %v5371_v61  ;;  %v5389_v61 = vld [vmem:[#allocation2 + $0x32] sm:$0xff] }
 0x1e8   : > { %1690 = vrot.lane.b32.xlu1 %v670_v24, %s4414_s9  ;;  %1696 = vrot.lane.b32.xlu0 %v673_v14, %s4414_s9  ;;  %v676_v14 = vld [vmem:[#allocation2 + $0x291] sm:$0xff] }
 0x1ea   : > { %v5375_v51 = vpop.permute.xlu1 %1470  ;;  %v5377_v6 = vpop.permute.xlu0 %1476 }
 0x1eb   : > { %7097 = vst [vmem:[#allocation150_spill] sm:$0xff] %v5375_v51  ;;  %7098 = vst [vmem:[#allocation151_spill] sm:$0xff] %v5377_v6 }
 0x1ec   : > { %1694 = vrot.lane.b32.xlu1 %v672_v12, %s4414_s9  ;;  %1700 = vrot.lane.b32.xlu0 %v675_v8, %s4414_s9  ;;  %v678_v8 = vld [vmem:[#allocation2 + $0x22] sm:$0xff] }
 0x1ee   : > { %v5381_v28 = vpop.permute.xlu1 %1474  ;;  %v5383_v9 = vpop.permute.xlu0 %1480 }
 0x1ef   : > { %7099 = vst [vmem:[#allocation152_spill] sm:$0xff] %v5381_v28  ;;  %7100 = vst [vmem:[#allocation153_spill] sm:$0xff] %v5383_v9  ;;  %v5398_v9 = vld [vmem:[#allocation2 + $0x4a] sm:$0xff]  ;;  %v5421_v28 = vld [vmem:[#allocation2 + $0x7a] sm:$0xff] }
 0x1f0   : > { %1698 = vrot.lane.b32.xlu1 %v674_v57, %s4414_s9  ;;  %1812 = vrot.lane.b32.xlu0 %v677_v18, %s4415_s10  ;;  %v5405_v18 = vld [vmem:[#allocation2 + $0x3a] sm:$0xff] }
 0x1f2   : > { %v5387_v24 = vpop.permute.xlu1 %1478  ;;  %v5391_v6 = vpop.permute.xlu0 %1484 }
 0x1f3   : > { %7101 = vst [vmem:[#allocation154_spill] sm:$0xff] %v5387_v24  ;;  %7102 = vst [vmem:[#allocation155_spill] sm:$0xff] %v5391_v6 }
 0x1f4   : > { %1702 = vrot.lane.b32.xlu1 %v676_v14, %s4414_s9  ;;  %1816 = vrot.lane.b32.xlu0 %v5389_v61, %s4415_s10  ;;  %v5409_v14 = vld [vmem:[#allocation2 + $0x62] sm:$0xff]  ;;  %s4352_s9 = sshll.u32 %s4419_s19, 4  ;;  %s4353_s9 = int_to_ptr.vmem [resolvable:$false] %s4352_s9 }
 0x1f5   : > { %s4354_s11 = scalar_lea.vmem %s4353_s9, 64 }
 0x1f6   : > { %v5396_v12 = vpop.permute.xlu1 %1482  ;;  %v5400_v57 = vpop.permute.xlu0 %1596 }
 0x1f7   : > { %7103 = vst [vmem:[#allocation156_spill] sm:$0xff] %v5396_v12  ;;  %v5417_v12 = vld [vmem:[#allocation2 + $0x52] sm:$0xff] }
 0x1f8   : > { %1814 = vrot.lane.b32.xlu1 %v678_v8, %s4415_s10  ;;  %1820 = vrot.lane.b32.xlu0 %v5398_v9, %s4415_s10 }
 0x1fa   : > { %v5407_v6 = vpop.permute.xlu1 %1486  ;;  %v5411_v24 = vpop.permute.xlu0 %1600 }
 0x1fb   : > { %7104 = vst [vmem:[#allocation157_spill] sm:$0xff] %v5407_v6  ;;  %v5429_v6 = vld [vmem:[#allocation2 + $0x6a] sm:$0xff] }
 0x1fc   : > { %1818 = vrot.lane.b32.xlu1 %v5405_v18, %s4415_s10  ;;  %1824 = vrot.lane.b32.xlu0 %v5409_v14, %s4415_s10 }
 0x1fe   : > { %v5419_v8 = vpop.permute.xlu1 %1598  ;;  %v5423_v51 = vpop.permute.xlu0 %1604 }
 0x1ff   : > { %7105 = vst [vmem:[#allocation158_spill] sm:$0xff] %v5423_v51 }
 0x200   : > { %1822 = vrot.lane.b32.xlu1 %v5417_v12, %s4415_s10  ;;  %1828 = vrot.lane.b32.xlu0 %v5421_v28, %s4415_s10 }
 0x202   : > { %v5431_v2 = vpop.permute.xlu1 %1602  ;;  %v5435_v11 = vpop.permute.xlu0 %1608 }
 0x203   : > { %7106 = vst [vmem:[#allocation159_spill] sm:$0xff] %v5431_v2  ;;  %7107 = vst [vmem:[#allocation160_spill] sm:$0xff] %v5435_v11  ;;  %v3062_v2 = vld [vmem:[%s6946_s1 + $0x8] sm:$0xff] }
 0x204   : > { %1826 = vrot.lane.b32.xlu1 %v5429_v6, %s4415_s10  ;;  %1832 = vrot.lane.b32.xlu0 %v5433_v22, %s4415_s10 }
 0x206   : > { %v5443_v32 = vpop.permute.xlu1 %1606  ;;  %v5447_v62 = vpop.permute.xlu0 %1612 }
 0x207   : > { %7108 = vst [vmem:[#allocation161_spill] sm:$0xff] %v5443_v32  ;;  %7109 = vst [vmem:[#allocation162_spill] sm:$0xff] %v5447_v62  ;;  %v5465_v62 = vld [vmem:[#allocation2 + $0xb2] sm:$0xff] }
 0x208   : > { %1830 = vrot.lane.b32.xlu1 %v5441_v4, %s4415_s10  ;;  %1836 = vrot.lane.b32.xlu0 %v5445_v19, %s4415_s10  ;;  %v5481_v32 = vld [vmem:[#allocation2 + $0xf2] sm:$0xff] }
 0x20a   : > { %v5455_v1 = vpop.permute.xlu1 %1610  ;;  %v5459_v11 = vpop.permute.xlu0 %1616 }
 0x20b   : > { %7110 = vst [vmem:[#allocation163_spill] sm:$0xff] %v5455_v1  ;;  %7111 = vst [vmem:[#allocation164_spill] sm:$0xff] %v5459_v11  ;;  %v5477_v11 = vld [vmem:[#allocation2 + $0xca] sm:$0xff] }
 0x20c   : > { %1834 = vrot.lane.b32.xlu1 %v5453_v26, %s4415_s10  ;;  %1840 = vrot.lane.b32.xlu0 %v5457_v0, %s4415_s10 }
 0x20e   : > { %v5467_v36 = vpop.permute.xlu1 %1614  ;;  %v5471_v58 = vpop.permute.xlu0 %1620 }
 0x20f   : > { %7112 = vst [vmem:[#allocation165_spill] sm:$0xff] %v5467_v36  ;;  %7113 = vst [vmem:[#allocation166_spill] sm:$0xff] %v5471_v58  ;;  %v5489_v58 = vld [vmem:[#allocation2 + $0xe2] sm:$0xff] }
 0x210   : > { %1838 = vrot.lane.b32.xlu1 %v5465_v62, %s4415_s10  ;;  %1844 = vrot.lane.b32.xlu0 %v5469_v35, %s4415_s10 }
 0x212   : > { %v5479_v1 = vpop.permute.xlu1 %1618  ;;  %v5483_v30 = vpop.permute.xlu0 %1624 }
 0x213   : > { %7114 = vst [vmem:[#allocation167_spill] sm:$0xff] %v5479_v1  ;;  %7115 = vst [vmem:[#allocation168_spill] sm:$0xff] %v5483_v30  ;;  %v5501_v30 = vld [vmem:[#allocation2 + $0xfa] sm:$0xff] }
 0x214   : > { %1842 = vrot.lane.b32.xlu1 %v5477_v11, %s4415_s10  ;;  %1848 = vrot.lane.b32.xlu0 %v5481_v32, %s4415_s10  ;;  %v3065_v1 = vld [vmem:[%s6946_s1 + $0x20] sm:$0xf] }
 0x215   : > { %4145 = vmatprep.subr.msk.mxu0 %vm3236_vm2, %v3065_v1  ;;  %4236 = vmatprep.subr.msk.mxu1 %vm3236_vm2, %v3065_v1 }
 0x216   : > { %v5491_v36 = vpop.permute.xlu1 %1622  ;;  %v5495_v60 = vpop.permute.xlu0 %1628  ;;  %4146 = vmatpush3.msk.msra.mxu0 %vm3236_vm2, %v3065_v1  ;;  %4241 = vmatpush3.msk.msra.mxu1 %vm3236_vm2, %v3065_v1 }
 0x217   : > { %7116 = vst [vmem:[#allocation169_spill] sm:$0xff] %v5491_v36  ;;  %7117 = vst [vmem:[#allocation170_spill] sm:$0xff] %v5495_v60  ;;  %v5508_v36 = vld [vmem:[#allocation2 + $0x122] sm:$0xff]  ;;  %4147 = vmatprep.subr.mxu0 %v3064_v59  ;;  %4237 = vmatprep.subr.mxu1 %v3064_v59 }
 0x218   : > { %1846 = vrot.lane.b32.xlu1 %v5489_v58, %s4415_s10  ;;  %1852 = vrot.lane.b32.xlu0 %v5493_v39, %s4415_s10 }
 0x219   : > { %4148 = vmatpush3.msra.mxu0 %v3064_v59  ;;  %4242 = vmatpush3.msra.mxu1 %v3064_v59 }
 0x21a   : > { %v5506_v51 = vpop.permute.xlu1 %1626  ;;  %v5510_v60 = vpop.permute.xlu0 %1632 }
 0x21b   : > { %7118 = vst [vmem:[#allocation171_spill] sm:$0xff] %v5506_v51  ;;  %7119 = vst [vmem:[#allocation172_spill] sm:$0xff] %v5510_v60  ;;  %v5519_v51 = vld [vmem:[#allocation2 + $0x112] sm:$0xff] }
 0x21c   : > { %1850 = vrot.lane.b32.xlu1 %v5501_v30, %s4415_s10  ;;  %1856 = vrot.lane.b32.xlu0 %v5508_v36, %s4415_s10  ;;  %v3063_v60 = vld [vmem:[%s6946_s1 + $0x10] sm:$0xff] }
 0x21d   : > { %4149 = vmatprep.subr.mxu0 %v3063_v60  ;;  %4238 = vmatprep.subr.mxu1 %v3063_v60 }
 0x21e   : > { %v5524_v5 = vpop.permute.xlu1 %1630  ;;  %v5526_v1 = vpop.permute.xlu0 %1636  ;;  %4150 = vmatpush3.msra.mxu0 %v3063_v60  ;;  %4243 = vmatpush3.msra.mxu1 %v3063_v60 }
 0x21f   : > { %7120 = vst [vmem:[#allocation173_spill] sm:$0xff] %v5524_v5  ;;  %7121 = vst [vmem:[#allocation174_spill] sm:$0xff] %v5526_v1  ;;  %4151 = vmatprep.subr.mxu0 %v3062_v2  ;;  %v3061_v1 = vld [vmem:[%s6946_s1] sm:$0xff]  ;;  %4239 = vmatprep.subr.mxu1 %v3062_v2 }
 0x220   : > { %1854 = vrot.lane.b32.xlu1 %v5519_v51, %s4415_s10  ;;  %2028 = vrot.lane.b32.xlu0 %v732_v54, %s4416_s30  ;;  %v733_v54 = vld [vmem:[#allocation2 + $0x38] sm:$0xff] }
 0x221   : > { %4152 = vmatpush3.msra.mxu0 %v3062_v2  ;;  %4244 = vmatpush3.msra.mxu1 %v3062_v2 }
 0x222   : > { %v5539_v5 = vpop.permute.xlu1 %1634  ;;  %4153 = vmatprep.subr.mxu0 %v3061_v1  ;;  %v5541_v23 = vpop.permute.xlu0 %1640  ;;  %4240 = vmatprep.subr.mxu1 %v3061_v1 }
 0x223   : > { %7123 = vst [vmem:[#allocation176_spill] sm:$0xff] %v5539_v5  ;;  %7124 = vst [vmem:[#allocation177_spill] sm:$0xff] %v5541_v23  ;;  %4154 = vmatpush3.msra.mxu0 %v3061_v1  ;;  %4245 = vmatpush3.msra.mxu1 %v3061_v1  ;;  %v734_v23 = vld [vmem:[#allocation2 + $0x48] sm:$0xff] }
 0x224   : > { %1858 = vrot.lane.b32.xlu1 %v5534_v34, %s4415_s10  ;;  %2244 = vrot.lane.b32.xlu0 %v5161_v42, %s4417_s7 }
 0x226   : > { %v5547_v59 = vpop.permute.xlu1 %1638  ;;  %v5549_v5 = vpop.permute.xlu0 %1644 }
 0x228   : > { %2030 = vrot.lane.b32.xlu1 %v733_v54, %s4416_s30  ;;  %2460 = vrot.lane.b32.xlu0 %v5389_v61, %s4418_s8  ;;  %v735_v61 = vld [vmem:[#allocation2 + $0x50] sm:$0xff] }
 0x22a   : > { %v5554_v60 = vpop.permute.xlu1 %1642  ;;  %v5556_v34 = vpop.permute.xlu0 %1648 }
 0x22c   : > { %2246 = vrot.lane.b32.xlu1 %v5177_v48, %s4417_s7  ;;  %2032 = vrot.lane.b32.xlu0 %v734_v23, %s4416_s30  ;;  %v736_v48 = vld [vmem:[#allocation2 + $0x60] sm:$0xff] }
 0x22e   : > { %v5561_v2 = vpop.permute.xlu1 %1646  ;;  %v5563_v42 = vpop.permute.xlu0 %1652 }
 0x22f   : > { %7125 = vst [vmem:[#allocation178_spill] sm:$0xff] %v5563_v42 }
 0x230   : > { %2462 = vrot.lane.b32.xlu1 %v5405_v18, %s4418_s8  ;;  %2248 = vrot.lane.b32.xlu0 %v5170_v40, %s4417_s7 }
 0x232   : > { %v5569_v1 = vpop.permute.xlu1 %1650  ;;  %v5571_v54 = vpop.permute.xlu0 %1656 }
 0x233   : > { %7126 = vst [vmem:[#allocation179_spill] sm:$0xff] %v5571_v54 }
 0x234   : > { %2034 = vrot.lane.b32.xlu1 %v735_v61, %s4416_s30  ;;  %2464 = vrot.lane.b32.xlu0 %v5398_v9, %s4418_s8  ;;  %v737_v9 = vld [vmem:[#allocation2 + $0x68] sm:$0xff] }
 0x236   : > { %v5576_v23 = vpop.permute.xlu1 %1654  ;;  %v5578_v42 = vpop.permute.xlu0 %1660 }
 0x238   : > { %2250 = vrot.lane.b32.xlu1 %v5189_v31, %s4417_s7  ;;  %2036 = vrot.lane.b32.xlu0 %v736_v48, %s4416_s30  ;;  %v738_v48 = vld [vmem:[#allocation2 + $0x78] sm:$0xff] }
 0x23a   : > { %v5583_v40 = vpop.permute.xlu1 %1658  ;;  %v5585_v18 = vpop.permute.xlu0 %1664 }
 0x23b   : > { %7127 = vst [vmem:[#allocation180_spill] sm:$0xff] %v5585_v18 }
 0x23c   : > { %2466 = vrot.lane.b32.xlu1 %v5417_v12, %s4418_s8  ;;  %2252 = vrot.lane.b32.xlu0 %v5181_v49, %s4417_s7 }
 0x23e   : > { %v5591_v61 = vpop.permute.xlu1 %1662  ;;  %v5593_v54 = vpop.permute.xlu0 %1668 }
 0x23f   : > { %7128 = vst [vmem:[#allocation181_spill] sm:$0xff] %v5593_v54 }
 0x240   : > { %2038 = vrot.lane.b32.xlu1 %v737_v9, %s4416_s30  ;;  %2468 = vrot.lane.b32.xlu0 %v5409_v14, %s4418_s8  ;;  %v739_v14 = vld [vmem:[#allocation2 + $0x80] sm:$0xff] }
 0x242   : > { %v5598_v31 = vpop.permute.xlu1 %1666  ;;  %v5600_v18 = vpop.permute.xlu0 %1672 }
 0x244   : > { %2254 = vrot.lane.b32.xlu1 %v5201_v44, %s4417_s7  ;;  %2040 = vrot.lane.b32.xlu0 %v738_v48, %s4416_s30  ;;  %v740_v48 = vld [vmem:[#allocation2 + $0x90] sm:$0xff] }
 0x246   : > { %v5605_v49 = vpop.permute.xlu1 %1670  ;;  %v5607_v12 = vpop.permute.xlu0 %1676 }
 0x247   : > { %7129 = vst [vmem:[#allocation182_spill] sm:$0xff] %v5607_v12 }
 0x248   : > { %2470 = vrot.lane.b32.xlu1 %v5429_v6, %s4418_s8  ;;  %2256 = vrot.lane.b32.xlu0 %v5193_v38, %s4417_s7 }
 0x24a   : > { %v5613_v9 = vpop.permute.xlu1 %1674  ;;  %v5615_v54 = vpop.permute.xlu0 %1680 }
 0x24b   : > { %7130 = vst [vmem:[#allocation183_spill] sm:$0xff] %v5613_v9  ;;  %7131 = vst [vmem:[#allocation184_spill] sm:$0xff] %v5615_v54 }
 0x24c   : > { %2042 = vrot.lane.b32.xlu1 %v739_v14, %s4416_s30  ;;  %2472 = vrot.lane.b32.xlu0 %v5421_v28, %s4418_s8  ;;  %v741_v28 = vld [vmem:[#allocation2 + $0x98] sm:$0xff] }
 0x24e   : > { %v5620_v44 = vpop.permute.xlu1 %1678  ;;  %v5622_v12 = vpop.permute.xlu0 %1684 }
 0x24f   : > { %7132 = vst [vmem:[#allocation185_spill] sm:$0xff] %v5620_v44  ;;  %7133 = vst [vmem:[#allocation186_spill] sm:$0xff] %v5622_v12 }
 0x250   : > { %2258 = vrot.lane.b32.xlu1 %v5213_v3, %s4417_s7  ;;  %2044 = vrot.lane.b32.xlu0 %v740_v48, %s4416_s30  ;;  %v742_v48 = vld [vmem:[#allocation2 + $0xa8] sm:$0xff] }
 0x252   : > { %v5627_v38 = vpop.permute.xlu1 %1682  ;;  %v5629_v6 = vpop.permute.xlu0 %1688 }
 0x253   : > { %7134 = vst [vmem:[#allocation187_spill] sm:$0xff] %v5627_v38  ;;  %7135 = vst [vmem:[#allocation188_spill] sm:$0xff] %v5629_v6 }
 0x254   : > { %2474 = vrot.lane.b32.xlu1 %v5441_v4, %s4418_s8  ;;  %2260 = vrot.lane.b32.xlu0 %v5205_v63, %s4417_s7 }
 0x256   : > { %v5635_v14 = vpop.permute.xlu1 %1686  ;;  %v5637_v54 = vpop.permute.xlu0 %1692 }
 0x257   : > { %7136 = vst [vmem:[#allocation189_spill] sm:$0xff] %v5635_v14  ;;  %7137 = vst [vmem:[#allocation190_spill] sm:$0xff] %v5637_v54 }
 0x258   : > { %2046 = vrot.lane.b32.xlu1 %v741_v28, %s4416_s30  ;;  %2476 = vrot.lane.b32.xlu0 %v5433_v22, %s4418_s8  ;;  %v743_v22 = vld [vmem:[#allocation2 + $0xb0] sm:$0xff] }
 0x25a   : > { %v5642_v3 = vpop.permute.xlu1 %1690  ;;  %v5644_v6 = vpop.permute.xlu0 %1696 }
 0x25b   : > { %7138 = vst [vmem:[#allocation191_spill] sm:$0xff] %v5642_v3  ;;  %7139 = vst [vmem:[#allocation192_spill] sm:$0xff] %v5644_v6 }
 0x25c   : > { %2262 = vrot.lane.b32.xlu1 %v5225_v13, %s4417_s7  ;;  %2048 = vrot.lane.b32.xlu0 %v742_v48, %s4416_s30  ;;  %v744_v48 = vld [vmem:[#allocation2 + $0xc0] sm:$0xff] }
 0x25e   : > { %v5649_v4 = vpop.permute.xlu1 %1694  ;;  %v5651_v63 = vpop.permute.xlu0 %1700 }
 0x25f   : > { %7140 = vst [vmem:[#allocation193_spill] sm:$0xff] %v5649_v4  ;;  %7141 = vst [vmem:[#allocation194_spill] sm:$0xff] %v5651_v63 }
 0x260   : > { %2478 = vrot.lane.b32.xlu1 %v5453_v26, %s4418_s8  ;;  %2264 = vrot.lane.b32.xlu0 %v5217_v7, %s4417_s7 }
 0x262   : > { %v5657_v28 = vpop.permute.xlu1 %1698  ;;  %v5659_v54 = vpop.permute.xlu0 %1812 }
 0x263   : > { %7142 = vst [vmem:[#allocation195_spill] sm:$0xff] %v5657_v28 }
 0x264   : > { %2050 = vrot.lane.b32.xlu1 %v743_v22, %s4416_s30  ;;  %2480 = vrot.lane.b32.xlu0 %v5445_v19, %s4418_s8  ;;  %v745_v19 = vld [vmem:[#allocation2 + $0xc8] sm:$0xff] }
 0x266   : > { %v5664_v13 = vpop.permute.xlu1 %1702  ;;  %v5666_v63 = vpop.permute.xlu0 %1816 }
 0x267   : > { %7143 = vst [vmem:[#allocation196_spill] sm:$0xff] %v5664_v13 }
 0x268   : > { %2266 = vrot.lane.b32.xlu1 %v5237_v21, %s4417_s7  ;;  %2052 = vrot.lane.b32.xlu0 %v744_v48, %s4416_s30  ;;  %v746_v48 = vld [vmem:[#allocation2 + $0xd8] sm:$0xff] }
 0x26a   : > { %v5671_v26 = vpop.permute.xlu1 %1814  ;;  %v5673_v7 = vpop.permute.xlu0 %1820 }
 0x26c   : > { %2482 = vrot.lane.b32.xlu1 %v5465_v62, %s4418_s8  ;;  %2268 = vrot.lane.b32.xlu0 %v5229_v17, %s4417_s7 }
 0x26e   : > { %v5679_v22 = vpop.permute.xlu1 %1818  ;;  %v5681_v13 = vpop.permute.xlu0 %1824 }
 0x270   : > { %2054 = vrot.lane.b32.xlu1 %v745_v19, %s4416_s30  ;;  %2484 = vrot.lane.b32.xlu0 %v5457_v0, %s4418_s8  ;;  %v747_v0 = vld [vmem:[#allocation2 + $0xe0] sm:$0xff] }
 0x272   : > { %v5686_v21 = vpop.permute.xlu1 %1822  ;;  %v5688_v28 = vpop.permute.xlu0 %1828 }
 0x274   : > { %2270 = vrot.lane.b32.xlu1 %v5249_v29, %s4417_s7  ;;  %2056 = vrot.lane.b32.xlu0 %v746_v48, %s4416_s30  ;;  %v748_v48 = vld [vmem:[#allocation2 + $0xf0] sm:$0xff] }
 0x276   : > { %v5693_v62 = vpop.permute.xlu1 %1826  ;;  %v5695_v17 = vpop.permute.xlu0 %1832 }
 0x278   : > { %2486 = vrot.lane.b32.xlu1 %v5477_v11, %s4418_s8  ;;  %2272 = vrot.lane.b32.xlu0 %v5241_v25, %s4417_s7 }
 0x27a   : > { %v5701_v19 = vpop.permute.xlu1 %1830  ;;  %v5703_v6 = vpop.permute.xlu0 %1836 }
 0x27c   : > { %2058 = vrot.lane.b32.xlu1 %v747_v0, %s4416_s30  ;;  %2488 = vrot.lane.b32.xlu0 %v5469_v35, %s4418_s8  ;;  %v749_v35 = vld [vmem:[#allocation2 + $0xf8] sm:$0xff] }
 0x27e   : > { %v5708_v29 = vpop.permute.xlu1 %1834  ;;  %v5710_v4 = vpop.permute.xlu0 %1840 }
 0x280   : > { %2274 = vrot.lane.b32.xlu1 %v5261_v37, %s4417_s7  ;;  %2060 = vrot.lane.b32.xlu0 %v748_v48, %s4416_s30  ;;  %v750_v48 = vld [vmem:[#allocation2 + $0x108] sm:$0xff] }
 0x282   : > { %v5715_v11 = vpop.permute.xlu1 %1838  ;;  %v5717_v25 = vpop.permute.xlu0 %1844 }
 0x284   : > { %2490 = vrot.lane.b32.xlu1 %v5489_v58, %s4418_s8  ;;  %2276 = vrot.lane.b32.xlu0 %v5253_v33, %s4417_s7 }
 0x286   : > { %v5723_v0 = vpop.permute.xlu1 %1842  ;;  %v5725_v3 = vpop.permute.xlu0 %1848 }
 0x288   : > { %2062 = vrot.lane.b32.xlu1 %v749_v35, %s4416_s30  ;;  %2492 = vrot.lane.b32.xlu0 %v5481_v32, %s4418_s8  ;;  %v751_v32 = vld [vmem:[#allocation2 + $0x110] sm:$0xff]  ;;  %v407_v35 = vld [vmem:[#allocation2] sm:$0xff] }
 0x28a   : > { %v5730_v37 = vpop.permute.xlu1 %1846  ;;  %v5732_v14 = vpop.permute.xlu0 %1852 }
 0x28c   : > { %2278 = vrot.lane.b32.xlu1 %v5273_v20, %s4417_s7  ;;  %2064 = vrot.lane.b32.xlu0 %v750_v48, %s4416_s30  ;;  %v2622_v20 = vsel %vm209_vm0, %v407_v35, %v4841_v47  ;;  %v752_v48 = vld [vmem:[#allocation2 + $0x120] sm:$0xff]  ;;  %v408_v47 = vld [vmem:[#allocation2 + $0x8] sm:$0xff] }
 0x28e   : > { %v5737_v58 = vpop.permute.xlu1 %1850  ;;  %v5739_v33 = vpop.permute.xlu0 %1856 }
 0x290   : > { %2494 = vrot.lane.b32.xlu1 %v5501_v30, %s4418_s8  ;;  %2280 = vrot.lane.b32.xlu0 %v5265_v41, %s4417_s7  ;;  %v2677_v30 = vsel %vm2676_vm3, %v2622_v20, %v5005_v27 }
 0x291   : > { %v2732_v44 = vsel %vm2731_vm4, %v2677_v30, %v5172_v46 }
 0x292   : > { %v5745_v12 = vpop.permute.xlu1 %1854  ;;  %v2029_v38 = vpop.permute.xlu0 %2028 }
 0x294   : > { %2066 = vrot.lane.b32.xlu1 %v751_v32, %s4416_s30  ;;  %2496 = vrot.lane.b32.xlu0 %v5493_v39, %s4418_s8  ;;  %v2787_v32 = vsel %vm2786_vm5, %v2732_v44, %v5400_v57  ;;  %v2623_v57 = vsel %vm209_vm0, %v408_v47, %v4845_v50  ;;  %v753_v44 = vld [vmem:[#allocation2 + $0x128] sm:$0xff]  ;;  %v754_v47 = vld [vmem:[#allocation2 + $0x138] sm:$0xff] }
 0x295   : > { %v2842_v27 = vsel %vm2841_vm6, %v2787_v32, %v5659_v54  ;;  %v2678_v54 = vsel %vm2676_vm3, %v2623_v57, %v5015_v55  ;;  %v4295_v55 = vld [vmem:[#allocation2 + $0x18] sm:$0xff]  ;;  %v4296_v57 = vld [vmem:[#allocation2 + $0x20] sm:$0xff] }
 0x296   : > { %v5754_v41 = vpop.permute.xlu1 %1858  ;;  %v2245_v9 = vpop.permute.xlu0 %2244  ;;  %v2897_v39 = vsel %vm2896_vm7, %v2842_v27, %v2029_v38 }
 0x297   : > { %v2952_v46 = vsel %vm2951_vm8, %v2897_v39, %v2245_v9  ;;  %v2733_v9 = vsel %vm2731_vm4, %v2678_v54, %v5191_v53  ;;  %v7145_v54 = vld [vmem:[#allocation57_spill] sm:$0xff] }
 0x298   : > { %2282 = vrot.lane.b32.xlu1 %v5285_v16, %s4417_s7  ;;  %2068 = vrot.lane.b32.xlu0 %v752_v48, %s4416_s30  ;;  %v2788_v50 = vsel %vm2786_vm5, %v2733_v9, %v5419_v8  ;;  %v7146_v9 = vld [vmem:[#allocation108_spill] sm:$0xff] }
 0x29a   : > { %v2031_v35 = vpop.permute.xlu1 %2030  ;;  %v2461_v20 = vpop.permute.xlu0 %2460 }
 0x29b   : > { %v3007_v16 = vsel %vm3006_vm9, %v2952_v46, %v2461_v20 }
 0x29c   : > { %2498 = vrot.lane.b32.xlu1 %v5519_v51, %s4418_s8  ;;  %2284 = vrot.lane.b32.xlu0 %v5277_v10, %s4417_s7  ;;  %v2843_v51 = vsel %vm2841_vm6, %v2788_v50, %v5671_v26  ;;  %v2624_v10 = vsel %vm209_vm0, %v4295_v55, %v4849_v52 }
 0x29d   : > { %4155 = vmatprep.mubr.msk.f32.mxu0 %vm3073_vm10, %v3007_v16  ;;  %v2898_v48 = vsel %vm2896_vm7, %v2843_v51, %v2031_v35  ;;  %v2679_v53 = vsel %vm2676_vm3, %v2624_v10, %v5011_v43  ;;  %v7144_v16 = vld [vmem:[#allocation175_spill] sm:$0xff] }
 0x29e   : > { %v2247_v38 = vpop.permute.xlu1 %2246  ;;  %v2033_v30 = vpop.permute.xlu0 %2032  ;;  %v2734_v26 = vsel %vm2731_vm4, %v2679_v53, %v5183_v15  ;;  %v808_v15 = vld [vmem:[#allocation2 + $0x139] sm:$0xff]  ;;  %v7147_v51 = vld [vmem:[#allocation159_spill] sm:$0xff] }
 0x29f   : > { %v2953_v8 = vsel %vm2951_vm8, %v2898_v48, %v2247_v38  ;;  %v2789_v52 = vsel %vm2786_vm5, %v2734_v26, %v5411_v24  ;;  %v2625_v24 = vsel %vm209_vm0, %v4296_v57, %v4855_v56  ;;  %v4297_v48 = vld [vmem:[#allocation2 + $0x30] sm:$0xff]  ;;  %v7148_v53 = vld [vmem:[#allocation6_spill] sm:$0xff] }
 0x2a0   : > { %2070 = vrot.lane.b32.xlu1 %v753_v44, %s4416_s30  ;;  %2500 = vrot.lane.b32.xlu0 %v5508_v36, %s4418_s8  ;;  %v2844_v36 = vsel %vm2841_vm6, %v2789_v52, %v5666_v63  ;;  %v2680_v63 = vsel %vm2676_vm3, %v2625_v24, %v7145_v54  ;;  %v755_v44 = vld [vmem:[#allocation2 + $0x140] sm:$0xff]  ;;  %v7149_v26 = vld [vmem:[#allocation56_spill] sm:$0xff] }
 0x2a1   : > { %v2899_v43 = vsel %vm2896_vm7, %v2844_v36, %v2033_v30  ;;  %v2735_v38 = vsel %vm2731_vm4, %v2680_v63, %v7146_v9  ;;  %v862_v30 = vld [vmem:[#allocation2 + $0x13a] sm:$0xff]  ;;  %v863_v36 = vld [vmem:[#allocation2 + $0x142] sm:$0xff]  ;;  %v7152_v9 = vld [vmem:[#allocation8_spill] sm:$0xff] }
 0x2a2   : > { %v2463_v32 = vpop.permute.xlu1 %2462  ;;  %v2249_v39 = vpop.permute.xlu0 %2248  ;;  %v2790_v56 = vsel %vm2786_vm5, %v2735_v38, %v7147_v51  ;;  %v7153_v51 = vld [vmem:[#allocation59_spill] sm:$0xff] }
 0x2a3   : > { %v3008_v27 = vsel %vm3006_vm9, %v2953_v8, %v2463_v32  ;;  %v2954_v46 = vsel %vm2951_vm8, %v2899_v43, %v2249_v39  ;;  %v2845_v10 = vsel %vm2841_vm6, %v2790_v56, %v5679_v22  ;;  %v2626_v8 = vsel %vm209_vm0, %v4297_v48, %v7148_v53  ;;  %v7150_v43 = vld [vmem:[#allocation107_spill] sm:$0xff]  ;;  %v7154_v56 = vld [vmem:[#allocation110_spill] sm:$0xff]  ;;  %v810_v48 = vld [vmem:[#allocation2 + $0x151] sm:$0xff] }
 0x2a4   : > { %2286 = vrot.lane.b32.xlu1 %v5294_v45, %s4417_s7  ;;  %4156 = vmatmul.mubr.msk.f32.vlgmr.msra.gmra.mxu0 %vm3073_vm10, %v3008_v27  ;;  %v2681_v27 = vsel %vm2676_vm3, %v2626_v8, %v7149_v26  ;;  %v7155_v53 = vld [vmem:[#allocation161_spill] sm:$0xff]  ;;  %v7156_v26 = vld [vmem:[#allocation7_spill] sm:$0xff] }
 0x2a5   : > { %2072 = vrot.lane.b32.xlu0 %v754_v47, %s4416_s30  ;;  %v809_v47 = vld [vmem:[#allocation2 + $0x141] sm:$0xff]  ;;  %v2736_v22 = vsel %vm2731_vm4, %v2681_v27, %v7150_v43 }
 0x2a6   : > { %v2035_v35 = vpop.permute.xlu1 %2034  ;;  %v2465_v20 = vpop.permute.xlu0 %2464  ;;  %v7157_v43 = vld [vmem:[#allocation58_spill] sm:$0xff] }
 0x2a7   : > { %v3009_v45 = vsel %vm3006_vm9, %v2954_v46, %v2465_v20  ;;  %v2900_v32 = vsel %vm2896_vm7, %v2845_v10, %v2035_v35  ;;  %v7151_v20 = vld [vmem:[#allocation158_spill] sm:$0xff] }
 0x2a8   : > { %2502 = vrot.lane.b32.xlu1 %v7144_v16, %s4418_s8  ;;  %4158 = vmatprep.mubr.msk.f32.mxu0 %vm3073_vm10, %v3009_v45  ;;  %v2791_v57 = vsel %vm2786_vm5, %v2736_v22, %v7151_v20  ;;  %v756_v16 = vld [vmem:[#allocation2 + $0x150] sm:$0xff] }
 0x2a9   : > { %2288 = vrot.lane.b32.xlu0 %v808_v15, %s4417_s7  ;;  %v2846_v35 = vsel %vm2841_vm6, %v2791_v57, %v5673_v7  ;;  %v864_v20 = vld [vmem:[#allocation2 + $0x152] sm:$0xff] }
 0x2aa   : > { %v2251_v50 = vpop.permute.xlu1 %2250  ;;  %v2037_v55 = vpop.permute.xlu0 %2036  ;;  %v7158_v57 = vld [vmem:[#allocation109_spill] sm:$0xff] }
 0x2ab   : > { %v2955_v39 = vsel %vm2951_vm8, %v2900_v32, %v2251_v50  ;;  %v2901_v24 = vsel %vm2896_vm7, %v2846_v35, %v2037_v55 }
 0x2ac   : > { %2074 = vrot.lane.b32.xlu1 %v755_v44, %s4416_s30  ;;  %v4298_v44 = vld [vmem:[#allocation2 + $0x38] sm:$0xff] }
 0x2ad   : > { %2504 = vrot.lane.b32.xlu0 %v862_v30, %s4418_s8  ;;  %v2627_v38 = vsel %vm209_vm0, %v4298_v44, %v7152_v9  ;;  %v865_v9 = vld [vmem:[#allocation2 + $0x15a] sm:$0xff] }
 0x2ae   : > { %v2467_v52 = vpop.permute.xlu1 %2466  ;;  %v2253_v46 = vpop.permute.xlu0 %2252  ;;  %v2682_v7 = vsel %vm2676_vm3, %v2627_v38, %v7153_v51  ;;  %v4300_v51 = vld [vmem:[#allocation2 + $0x50] sm:$0xff] }
 0x2af   : > { %v3010_v15 = vsel %vm3006_vm9, %v2955_v39, %v2467_v52  ;;  %v2956_v54 = vsel %vm2951_vm8, %v2901_v24, %v2253_v46  ;;  %v2737_v55 = vsel %vm2731_vm4, %v2682_v7, %v7154_v56  ;;  %v757_v52 = vld [vmem:[#allocation2 + $0x158] sm:$0xff]  ;;  %v7159_v24 = vld [vmem:[#allocation160_spill] sm:$0xff] }
 0x2b0   : > { %2290 = vrot.lane.b32.xlu1 %v809_v47, %s4417_s7  ;;  %4159 = vmatmul.mubr.msk.f32.gmra.mxu0 %vm3073_vm10, %v3010_v15  ;;  %v2792_v8 = vsel %vm2786_vm5, %v2737_v55, %v7155_v53  ;;  %v7160_v7 = vld [vmem:[#allocation10_spill] sm:$0xff] }
 0x2b1   : > { %2506 = vrot.lane.b32.xlu0 %v863_v36, %s4418_s8  ;;  %v2847_v47 = vsel %vm2841_vm6, %v2792_v8, %v5686_v21  ;;  %v2629_v56 = vsel %vm209_vm0, %v4300_v51, %v7160_v7 }
 0x2b2   : > { %v2039_v45 = vpop.permute.xlu1 %2038  ;;  %v2469_v63 = vpop.permute.xlu0 %2468 }
 0x2b3   : > { %v3011_v50 = vsel %vm3006_vm9, %v2956_v54, %v2469_v63  ;;  %v2902_v39 = vsel %vm2896_vm7, %v2847_v47, %v2039_v45  ;;  %v811_v54 = vld [vmem:[#allocation2 + $0x159] sm:$0xff]  ;;  %v7163_v47 = vld [vmem:[#allocation163_spill] sm:$0xff] }
 0x2b4   : > { %1860 = vrot.lane.b32.xlu1 %v862_v30, %s4415_s10  ;;  %4161 = vmatprep.mubr.msk.f32.mxu0 %vm3073_vm10, %v3011_v50  ;;  %v4299_v30 = vld [vmem:[#allocation2 + $0x48] sm:$0xff] }
 0x2b5   : > { %2076 = vrot.lane.b32.xlu0 %v756_v16, %s4416_s30  ;;  %v2628_v27 = vsel %vm209_vm0, %v4299_v30, %v7156_v26 }
 0x2b6   : > { %v2255_v10 = vpop.permute.xlu1 %2254  ;;  %v2041_v32 = vpop.permute.xlu0 %2040  ;;  %v2683_v22 = vsel %vm2676_vm3, %v2628_v27, %v7157_v43 }
 0x2b7   : > { %v2957_v15 = vsel %vm2951_vm8, %v2902_v39, %v2255_v10  ;;  %v2738_v21 = vsel %vm2731_vm4, %v2683_v22, %v7158_v57  ;;  %v7161_v10 = vld [vmem:[#allocation61_spill] sm:$0xff]  ;;  %v4301_v39 = vld [vmem:[#allocation2 + $0x60] sm:$0xff] }
 0x2b8   : > { %1862 = vrot.lane.b32.xlu1 %v863_v36, %s4415_s10  ;;  %v2793_v16 = vsel %vm2786_vm5, %v2738_v21, %v7159_v24 }
 0x2b9   : > { %2292 = vrot.lane.b32.xlu0 %v810_v48, %s4417_s7  ;;  %v2848_v45 = vsel %vm2841_vm6, %v2793_v16, %v5681_v13  ;;  %v2684_v13 = vsel %vm2676_vm3, %v2629_v56, %v7161_v10  ;;  %v7162_v48 = vld [vmem:[#allocation112_spill] sm:$0xff]  ;;  %v7167_v16 = vld [vmem:[#allocation162_spill] sm:$0xff] }
 0x2ba   : > { %v2471_v46 = vpop.permute.xlu1 %2470  ;;  %v2257_v35 = vpop.permute.xlu0 %2256  ;;  %v2903_v63 = vsel %vm2896_vm7, %v2848_v45, %v2041_v32  ;;  %v2739_v53 = vsel %vm2731_vm4, %v2684_v13, %v7162_v48  ;;  %v758_v32 = vld [vmem:[#allocation2 + $0x168] sm:$0xff]  ;;  %v813_v48 = vld [vmem:[#allocation2 + $0x171] sm:$0xff] }
 0x2bb   : > { %v3012_v36 = vsel %vm3006_vm9, %v2957_v15, %v2471_v46  ;;  %v2958_v38 = vsel %vm2951_vm8, %v2903_v63, %v2257_v35  ;;  %v2794_v30 = vsel %vm2786_vm5, %v2739_v53, %v7163_v47  ;;  %v7165_v15 = vld [vmem:[#allocation60_spill] sm:$0xff]  ;;  %v7166_v35 = vld [vmem:[#allocation111_spill] sm:$0xff]  ;;  %v7170_v53 = vld [vmem:[#allocation114_spill] sm:$0xff] }
 0x2bc   : > { %2078 = vrot.lane.b32.xlu1 %v757_v52, %s4416_s30  ;;  %4162 = vmatmul.mubr.msk.f32.gmra.mxu0 %vm3073_vm10, %v3012_v36  ;;  %v2849_v27 = vsel %vm2841_vm6, %v2794_v30, %v5693_v62  ;;  %v7164_v52 = vld [vmem:[#allocation9_spill] sm:$0xff]  ;;  %v812_v36 = vld [vmem:[#allocation2 + $0x169] sm:$0xff] }
 0x2bd   : > { %2508 = vrot.lane.b32.xlu0 %v864_v20, %s4418_s8  ;;  %v2630_v43 = vsel %vm209_vm0, %v4301_v39, %v7164_v52  ;;  %v759_v63 = vld [vmem:[#allocation2 + $0x170] sm:$0xff]  ;;  %v4302_v56 = vld [vmem:[#allocation2 + $0x68] sm:$0xff]  ;;  %v4303_v52 = vld [vmem:[#allocation2 + $0x78] sm:$0xff] }
 0x2be   : > { %v2043_v44 = vpop.permute.xlu1 %2042  ;;  %v2473_v50 = vpop.permute.xlu0 %2472  ;;  %v2685_v46 = vsel %vm2676_vm3, %v2630_v43, %v7165_v15  ;;  %v7169_v13 = vld [vmem:[#allocation63_spill] sm:$0xff]  ;;  %v867_v47 = vld [vmem:[#allocation2 + $0x172] sm:$0xff] }
 0x2bf   : > { %v3013_v55 = vsel %vm3006_vm9, %v2958_v38, %v2473_v50  ;;  %v2904_v22 = vsel %vm2896_vm7, %v2849_v27, %v2043_v44  ;;  %v2740_v62 = vsel %vm2731_vm4, %v2685_v46, %v7166_v35  ;;  %v866_v50 = vld [vmem:[#allocation2 + $0x16a] sm:$0xff]  ;;  %v7171_v30 = vld [vmem:[#allocation165_spill] sm:$0xff]  ;;  %v7173_v46 = vld [vmem:[#allocation62_spill] sm:$0xff] }
 0x2c0   : > { %2294 = vrot.lane.b32.xlu1 %v811_v54, %s4417_s7  ;;  %4164 = vmatprep.mubr.msk.f32.mxu0 %vm3073_vm10, %v3013_v55  ;;  %v2795_v45 = vsel %vm2786_vm5, %v2740_v62, %v7167_v16  ;;  %v7168_v55 = vld [vmem:[#allocation12_spill] sm:$0xff]  ;;  %v7172_v43 = vld [vmem:[#allocation11_spill] sm:$0xff]  ;;  %v7174_v62 = vld [vmem:[#allocation113_spill] sm:$0xff] }
 0x2c1   : > { %2510 = vrot.lane.b32.xlu0 %v865_v9, %s4418_s8  ;;  %v2850_v54 = vsel %vm2841_vm6, %v2795_v45, %v5688_v28  ;;  %v2631_v10 = vsel %vm209_vm0, %v4302_v56, %v7168_v55  ;;  %v760_v35 = vld [vmem:[#allocation2 + $0x180] sm:$0xff]  ;;  %v7175_v16 = vld [vmem:[#allocation164_spill] sm:$0xff] }
 0x2c2   : > { %v2259_v8 = vpop.permute.xlu1 %2258  ;;  %v2045_v26 = vpop.permute.xlu0 %2044  ;;  %v2686_v28 = vsel %vm2676_vm3, %v2631_v10, %v7169_v13  ;;  %v4304_v56 = vld [vmem:[#allocation2 + $0x80] sm:$0xff]  ;;  %v761_v13 = vld [vmem:[#allocation2 + $0x188] sm:$0xff] }
 0x2c3   : > { %v2959_v57 = vsel %vm2951_vm8, %v2904_v22, %v2259_v8  ;;  %v2905_v44 = vsel %vm2896_vm7, %v2850_v54, %v2045_v26  ;;  %v2741_v8 = vsel %vm2731_vm4, %v2686_v28, %v7170_v53  ;;  %v2632_v22 = vsel %vm209_vm0, %v4303_v52, %v7172_v43  ;;  %v7176_v55 = vld [vmem:[#allocation14_spill] sm:$0xff]  ;;  %v7178_v28 = vld [vmem:[#allocation116_spill] sm:$0xff] }
 0x2c4   : > { %1864 = vrot.lane.b32.xlu1 %v864_v20, %s4415_s10  ;;  %v2796_v26 = vsel %vm2786_vm5, %v2741_v8, %v7171_v30  ;;  %v2633_v10 = vsel %vm209_vm0, %v4304_v56, %v7176_v55  ;;  %v868_v8 = vld [vmem:[#allocation2 + $0x182] sm:$0xff] }
 0x2c5   : > { %2080 = vrot.lane.b32.xlu0 %v758_v32, %s4416_s30  ;;  %v2851_v39 = vsel %vm2841_vm6, %v2796_v26, %v5701_v19 }
 0x2c6   : > { %v2475_v21 = vpop.permute.xlu1 %2474  ;;  %v2261_v24 = vpop.permute.xlu0 %2260 }
 0x2c7   : > { %v3014_v20 = vsel %vm3006_vm9, %v2959_v57, %v2475_v21  ;;  %v2960_v51 = vsel %vm2951_vm8, %v2905_v44, %v2261_v24  ;;  %v2687_v57 = vsel %vm2676_vm3, %v2632_v22, %v7173_v46  ;;  %v815_v22 = vld [vmem:[#allocation2 + $0x189] sm:$0xff] }
 0x2c8   : > { %1866 = vrot.lane.b32.xlu1 %v865_v9, %s4415_s10  ;;  %4165 = vmatmul.mubr.msk.f32.gmra.mxu0 %vm3073_vm10, %v3014_v20  ;;  %v2742_v19 = vsel %vm2731_vm4, %v2687_v57, %v7174_v62 }
 0x2c9   : > { %2296 = vrot.lane.b32.xlu0 %v812_v36, %s4417_s7  ;;  %v2797_v45 = vsel %vm2786_vm5, %v2742_v19, %v7175_v16 }
 0x2ca   : > { %v2047_v38 = vpop.permute.xlu1 %2046  ;;  %v2477_v7 = vpop.permute.xlu0 %2476  ;;  %v2852_v54 = vsel %vm2841_vm6, %v2797_v45, %v5695_v17 }
 0x2cb   : > { %v3015_v9 = vsel %vm3006_vm9, %v2960_v51, %v2477_v7  ;;  %v2906_v15 = vsel %vm2896_vm7, %v2851_v39, %v2047_v38  ;;  %v814_v38 = vld [vmem:[#allocation2 + $0x181] sm:$0xff]  ;;  %v7180_v39 = vld [vmem:[#allocation13_spill] sm:$0xff] }
 0x2cc   : > { %2082 = vrot.lane.b32.xlu1 %v759_v63, %s4416_s30  ;;  %4167 = vmatprep.mubr.msk.f32.mxu0 %vm3073_vm10, %v3015_v9  ;;  %v7177_v9 = vld [vmem:[#allocation65_spill] sm:$0xff] }
 0x2cd   : > { %2512 = vrot.lane.b32.xlu0 %v866_v50, %s4418_s8  ;;  %v2688_v17 = vsel %vm2676_vm3, %v2633_v10, %v7177_v9  ;;  %v7185_v10 = vld [vmem:[#allocation67_spill] sm:$0xff] }
 0x2ce   : > { %v2263_v32 = vpop.permute.xlu1 %2262  ;;  %v2049_v27 = vpop.permute.xlu0 %2048 }
 0x2cf   : > { %v2961_v21 = vsel %vm2951_vm8, %v2906_v15, %v2263_v32  ;;  %v2907_v63 = vsel %vm2896_vm7, %v2852_v54, %v2049_v27  ;;  %v7179_v32 = vld [vmem:[#allocation167_spill] sm:$0xff]  ;;  %v4305_v27 = vld [vmem:[#allocation2 + $0x90] sm:$0xff] }
 0x2d0   : > { %2298 = vrot.lane.b32.xlu1 %v813_v48, %s4417_s7  ;;  %v2743_v48 = vsel %vm2731_vm4, %v2688_v17, %v7178_v28  ;;  %v2634_v52 = vsel %vm209_vm0, %v4305_v27, %v7180_v39  ;;  %v7181_v15 = vld [vmem:[#allocation64_spill] sm:$0xff]  ;;  %v7187_v28 = vld [vmem:[#allocation169_spill] sm:$0xff]  ;;  %v763_v27 = vld [vmem:[#allocation2 + $0x1a0] sm:$0xff] }
 0x2d1   : > { %2514 = vrot.lane.b32.xlu0 %v867_v47, %s4418_s8  ;;  %v2798_v30 = vsel %vm2786_vm5, %v2743_v48, %v7179_v32  ;;  %v2689_v46 = vsel %vm2676_vm3, %v2634_v52, %v7181_v15  ;;  %v7189_v39 = vld [vmem:[#allocation66_spill] sm:$0xff] }
 0x2d2   : > { %v2479_v36 = vpop.permute.xlu1 %2478  ;;  %v2265_v24 = vpop.permute.xlu0 %2264  ;;  %v870_v15 = vld [vmem:[#allocation2 + $0x19a] sm:$0xff] }
 0x2d3   : > { %v3016_v20 = vsel %vm3006_vm9, %v2961_v21, %v2479_v36  ;;  %v2962_v51 = vsel %vm2951_vm8, %v2907_v63, %v2265_v24  ;;  %v869_v36 = vld [vmem:[#allocation2 + $0x18a] sm:$0xff]  ;;  %v762_v63 = vld [vmem:[#allocation2 + $0x198] sm:$0xff] }
 0x2d4   : > { %1868 = vrot.lane.b32.xlu1 %v866_v50, %s4415_s10  ;;  %4168 = vmatmul.mubr.msk.f32.gmra.mxu0 %vm3073_vm10, %v3016_v20  ;;  %v7183_v20 = vld [vmem:[#allocation166_spill] sm:$0xff] }
 0x2d5   : > { %2084 = vrot.lane.b32.xlu0 %v760_v35, %s4416_s30  ;;  %v7182_v35 = vld [vmem:[#allocation115_spill] sm:$0xff] }
 0x2d6   : > { %v2051_v44 = vpop.permute.xlu1 %2050  ;;  %v2481_v7 = vpop.permute.xlu0 %2480 }
 0x2d7   : > { %v3017_v50 = vsel %vm3006_vm9, %v2962_v51, %v2481_v7  ;;  %v4306_v51 = vld [vmem:[#allocation2 + $0x98] sm:$0xff]  ;;  %v7184_v7 = vld [vmem:[#allocation16_spill] sm:$0xff] }
 0x2d8   : > { %1870 = vrot.lane.b32.xlu1 %v867_v47, %s4415_s10  ;;  %4170 = vmatprep.mubr.msk.f32.mxu0 %vm3073_vm10, %v3017_v50  ;;  %v2853_v47 = vsel %vm2841_vm6, %v2798_v30, %v5708_v29  ;;  %v2744_v29 = vsel %vm2731_vm4, %v2689_v46, %v7182_v35  ;;  %v2635_v56 = vsel %vm209_vm0, %v4306_v51, %v7184_v7  ;;  %v7186_v50 = vld [vmem:[#allocation118_spill] sm:$0xff]  ;;  %v7188_v30 = vld [vmem:[#allocation15_spill] sm:$0xff]  ;;  %v7190_v46 = vld [vmem:[#allocation117_spill] sm:$0xff] }
 0x2d9   : > { %2300 = vrot.lane.b32.xlu0 %v814_v38, %s4417_s7  ;;  %v2908_v43 = vsel %vm2896_vm7, %v2853_v47, %v2051_v44  ;;  %v2799_v24 = vsel %vm2786_vm5, %v2744_v29, %v7183_v20  ;;  %v7193_v51 = vld [vmem:[#allocation69_spill] sm:$0xff]  ;;  %v7194_v7 = vld [vmem:[#allocation120_spill] sm:$0xff] }
 0x2da   : > { %v2267_v53 = vpop.permute.xlu1 %2266  ;;  %v2053_v26 = vpop.permute.xlu0 %2052  ;;  %v2854_v16 = vsel %vm2841_vm6, %v2799_v24, %v5703_v6  ;;  %v2690_v6 = vsel %vm2676_vm3, %v2635_v56, %v7185_v10  ;;  %v871_v24 = vld [vmem:[#allocation2 + $0x1a2] sm:$0xff]  ;;  %v764_v10 = vld [vmem:[#allocation2 + $0x1b0] sm:$0xff] }
 0x2db   : > { %v2963_v57 = vsel %vm2951_vm8, %v2908_v43, %v2267_v53  ;;  %v2909_v45 = vsel %vm2896_vm7, %v2854_v16, %v2053_v26  ;;  %v2745_v9 = vsel %vm2731_vm4, %v2690_v6, %v7186_v50  ;;  %v7195_v6 = vld [vmem:[#allocation171_spill] sm:$0xff] }
 0x2dc   : > { %2086 = vrot.lane.b32.xlu1 %v761_v13, %s4416_s30  ;;  %v816_v13 = vld [vmem:[#allocation2 + $0x199] sm:$0xff]  ;;  %v2800_v48 = vsel %vm2786_vm5, %v2745_v9, %v7187_v28 }
 0x2dd   : > { %2516 = vrot.lane.b32.xlu0 %v868_v8, %s4418_s8  ;;  %v2855_v32 = vsel %vm2841_vm6, %v2800_v48, %v5715_v11  ;;  %v7196_v28 = vld [vmem:[#allocation17_spill] sm:$0xff] }
 0x2de   : > { %v2483_v21 = vpop.permute.xlu1 %2482  ;;  %v2269_v19 = vpop.permute.xlu0 %2268 }
 0x2df   : > { %v3018_v62 = vsel %vm3006_vm9, %v2963_v57, %v2483_v21  ;;  %v2964_v44 = vsel %vm2951_vm8, %v2909_v45, %v2269_v19 }
 0x2e0   : > { %2302 = vrot.lane.b32.xlu1 %v815_v22, %s4417_s7  ;;  %4171 = vmatmul.mubr.msk.f32.gmra.mxu0 %vm3073_vm10, %v3018_v62  ;;  %v817_v62 = vld [vmem:[#allocation2 + $0x1a1] sm:$0xff] }
 0x2e1   : > { %2518 = vrot.lane.b32.xlu0 %v869_v36, %s4418_s8 }
 0x2e2   : > { %v2055_v54 = vpop.permute.xlu1 %2054  ;;  %v2485_v38 = vpop.permute.xlu0 %2484 }
 0x2e3   : > { %v3019_v55 = vsel %vm3006_vm9, %v2964_v44, %v2485_v38  ;;  %v2910_v47 = vsel %vm2896_vm7, %v2855_v32, %v2055_v54  ;;  %v4308_v54 = vld [vmem:[#allocation2 + $0xb0] sm:$0xff] }
 0x2e4   : > { %1872 = vrot.lane.b32.xlu1 %v868_v8, %s4415_s10  ;;  %4173 = vmatprep.mubr.msk.f32.mxu0 %vm3073_vm10, %v3019_v55  ;;  %v4307_v8 = vld [vmem:[#allocation2 + $0xa8] sm:$0xff] }
 0x2e5   : > { %2088 = vrot.lane.b32.xlu0 %v762_v63, %s4416_s30  ;;  %v2636_v26 = vsel %vm209_vm0, %v4307_v8, %v7188_v30  ;;  %v7192_v63 = vld [vmem:[#allocation18_spill] sm:$0xff]  ;;  %v7197_v32 = vld [vmem:[#allocation68_spill] sm:$0xff] }
 0x2e6   : > { %v2271_v17 = vpop.permute.xlu1 %2270  ;;  %v2057_v53 = vpop.permute.xlu0 %2056  ;;  %v2691_v52 = vsel %vm2676_vm3, %v2636_v26, %v7189_v39  ;;  %v2637_v44 = vsel %vm209_vm0, %v4308_v54, %v7192_v63 }
 0x2e7   : > { %v2965_v43 = vsel %vm2951_vm8, %v2910_v47, %v2271_v17  ;;  %v2746_v11 = vsel %vm2731_vm4, %v2691_v52, %v7190_v46  ;;  %v818_v47 = vld [vmem:[#allocation2 + $0x1b1] sm:$0xff] }
 0x2e8   : > { %1874 = vrot.lane.b32.xlu1 %v869_v36, %s4415_s10  ;;  %v7191_v36 = vld [vmem:[#allocation168_spill] sm:$0xff]  ;;  %v765_v46 = vld [vmem:[#allocation2 + $0x1b8] sm:$0xff] }
 0x2e9   : > { %2304 = vrot.lane.b32.xlu0 %v816_v13, %s4417_s7  ;;  %v2801_v35 = vsel %vm2786_vm5, %v2746_v11, %v7191_v36  ;;  %v4309_v13 = vld [vmem:[#allocation2 + $0xc0] sm:$0xff] }
 0x2ea   : > { %v2487_v22 = vpop.permute.xlu1 %2486  ;;  %v2273_v21 = vpop.permute.xlu0 %2272  ;;  %v2856_v29 = vsel %vm2841_vm6, %v2801_v35, %v5710_v4  ;;  %v2692_v4 = vsel %vm2676_vm3, %v2637_v44, %v7193_v51  ;;  %v2638_v48 = vsel %vm209_vm0, %v4309_v13, %v7196_v28  ;;  %v873_v44 = vld [vmem:[#allocation2 + $0x1ba] sm:$0xff]  ;;  %v766_v28 = vld [vmem:[#allocation2 + $0x1c8] sm:$0xff] }
 0x2eb   : > { %v3020_v57 = vsel %vm3006_vm9, %v2965_v43, %v2487_v22  ;;  %v2911_v19 = vsel %vm2896_vm7, %v2856_v29, %v2057_v53  ;;  %v2747_v56 = vsel %vm2731_vm4, %v2692_v4, %v7194_v7  ;;  %v2693_v8 = vsel %vm2676_vm3, %v2638_v48, %v7197_v32  ;;  %v7199_v43 = vld [vmem:[#allocation170_spill] sm:$0xff]  ;;  %v4310_v29 = vld [vmem:[#allocation2 + $0xc8] sm:$0xff]  ;;  %v7206_v48 = vld [vmem:[#allocation121_spill] sm:$0xff] }
 0x2ec   : > { %2090 = vrot.lane.b32.xlu1 %v763_v27, %s4416_s30  ;;  %4174 = vmatmul.mubr.msk.f32.gmra.mxu0 %vm3073_vm10, %v3020_v57  ;;  %v2966_v16 = vsel %vm2951_vm8, %v2911_v19, %v2273_v21  ;;  %v2802_v50 = vsel %vm2786_vm5, %v2747_v56, %v7195_v6  ;;  %v7198_v27 = vld [vmem:[#allocation119_spill] sm:$0xff]  ;;  %v872_v21 = vld [vmem:[#allocation2 + $0x1b2] sm:$0xff] }
 0x2ed   : > { %2520 = vrot.lane.b32.xlu0 %v870_v15, %s4418_s8  ;;  %v2857_v17 = vsel %vm2841_vm6, %v2802_v50, %v5723_v0  ;;  %v2748_v0 = vsel %vm2731_vm4, %v2693_v8, %v7198_v27  ;;  %v4311_v56 = vld [vmem:[#allocation2 + $0xd8] sm:$0xff]  ;;  %v7207_v8 = vld [vmem:[#allocation172_spill] sm:$0xff] }
 0x2ee   : > { %v2059_v20 = vpop.permute.xlu1 %2058  ;;  %v2489_v45 = vpop.permute.xlu0 %2488  ;;  %v2803_v22 = vsel %vm2786_vm5, %v2748_v0, %v7199_v43  ;;  %v7205_v50 = vld [vmem:[#allocation70_spill] sm:$0xff]  ;;  %v820_v0 = vld [vmem:[#allocation2 + $0x1c9] sm:$0xff] }
 0x2ef   : > { %v3021_v38 = vsel %vm3006_vm9, %v2966_v16, %v2489_v45  ;;  %v2912_v53 = vsel %vm2896_vm7, %v2857_v17, %v2059_v20  ;;  %v819_v16 = vld [vmem:[#allocation2 + $0x1b9] sm:$0xff] }
 0x2f0   : > { %2306 = vrot.lane.b32.xlu1 %v817_v62, %s4417_s7  ;;  %4176 = vmatprep.mubr.msk.f32.mxu0 %vm3073_vm10, %v3021_v38  ;;  %v7200_v62 = vld [vmem:[#allocation20_spill] sm:$0xff]  ;;  %v7202_v45 = vld [vmem:[#allocation122_spill] sm:$0xff]  ;;  %v7203_v38 = vld [vmem:[#allocation173_spill] sm:$0xff] }
 0x2f1   : > { %2522 = vrot.lane.b32.xlu0 %v871_v24, %s4418_s8  ;;  %v2639_v19 = vsel %vm209_vm0, %v4310_v29, %v7200_v62  ;;  %v4312_v43 = vld [vmem:[#allocation2 + $0xe0] sm:$0xff]  ;;  %v874_v29 = vld [vmem:[#allocation2 + $0x1ca] sm:$0xff] }
 0x2f2   : > { %v2275_v55 = vpop.permute.xlu1 %2274  ;;  %v2061_v9 = vpop.permute.xlu0 %2060  ;;  %v7211_v62 = vld [vmem:[#allocation176_spill] sm:$0xff] }
 0x2f3   : > { %v2967_v30 = vsel %vm2951_vm8, %v2912_v53, %v2275_v55  ;;  %v7204_v55 = vld [vmem:[#allocation19_spill] sm:$0xff] }
 0x2f4   : > { %1876 = vrot.lane.b32.xlu1 %v870_v15, %s4415_s10  ;;  %v2858_v15 = vsel %vm2841_vm6, %v2803_v22, %v5717_v25  ;;  %v7208_v22 = vld [vmem:[#allocation22_spill] sm:$0xff] }
 0x2f5   : > { %2092 = vrot.lane.b32.xlu0 %v764_v10, %s4416_s30  ;;  %v2913_v11 = vsel %vm2896_vm7, %v2858_v15, %v2061_v9  ;;  %v2640_v10 = vsel %vm209_vm0, %v4311_v56, %v7204_v55  ;;  %v2641_v15 = vsel %vm209_vm0, %v4312_v43, %v7208_v22  ;;  %v7214_v56 = vld [vmem:[#allocation123_spill] sm:$0xff] }
 0x2f6   : > { %v2491_v26 = vpop.permute.xlu1 %2490  ;;  %v2277_v52 = vpop.permute.xlu0 %2276  ;;  %v2695_v9 = vsel %vm2676_vm3, %v2640_v10, %v7205_v50 }
 0x2f7   : > { %v3022_v39 = vsel %vm3006_vm9, %v2967_v30, %v2491_v26  ;;  %v2968_v36 = vsel %vm2951_vm8, %v2913_v11, %v2277_v52  ;;  %v7209_v11 = vld [vmem:[#allocation73_spill] sm:$0xff] }
 0x2f8   : > { %1878 = vrot.lane.b32.xlu1 %v871_v24, %s4415_s10  ;;  %4177 = vmatmul.mubr.msk.f32.gmra.mxu0 %vm3073_vm10, %v3022_v39  ;;  %v7201_v24 = vld [vmem:[#allocation71_spill] sm:$0xff] }
 0x2f9   : > { %2308 = vrot.lane.b32.xlu0 %v818_v47, %s4417_s7  ;;  %v2694_v25 = vsel %vm2676_vm3, %v2639_v19, %v7201_v24 }
 0x2fa   : > { %v2063_v57 = vpop.permute.xlu1 %2062  ;;  %v2493_v35 = vpop.permute.xlu0 %2492  ;;  %v2749_v54 = vsel %vm2731_vm4, %v2694_v25, %v7202_v45  ;;  %v4313_v25 = vld [vmem:[#allocation2 + $0xf0] sm:$0xff] }
 0x2fb   : > { %v3023_v20 = vsel %vm3006_vm9, %v2968_v36, %v2493_v35  ;;  %v2804_v51 = vsel %vm2786_vm5, %v2749_v54, %v7203_v38 }
 0x2fc   : > { %2094 = vrot.lane.b32.xlu1 %v765_v46, %s4416_s30  ;;  %4179 = vmatprep.mubr.msk.f32.mxu0 %vm3073_vm10, %v3023_v20  ;;  %v2859_v7 = vsel %vm2841_vm6, %v2804_v51, %v5730_v37  ;;  %v2750_v37 = vsel %vm2731_vm4, %v2695_v9, %v7206_v48 }
 0x2fd   : > { %2524 = vrot.lane.b32.xlu0 %v872_v21, %s4418_s8  ;;  %v2914_v6 = vsel %vm2896_vm7, %v2859_v7, %v2063_v57  ;;  %v2805_v30 = vsel %vm2786_vm5, %v2750_v37, %v7207_v8  ;;  %v767_v57 = vld [vmem:[#allocation2 + $0x1d0] sm:$0xff] }
 0x2fe   : > { %v2279_v63 = vpop.permute.xlu1 %2278  ;;  %v2065_v4 = vpop.permute.xlu0 %2064  ;;  %v2860_v26 = vsel %vm2841_vm6, %v2805_v30, %v5725_v3  ;;  %v2696_v3 = vsel %vm2676_vm3, %v2641_v15, %v7209_v11  ;;  %v875_v7 = vld [vmem:[#allocation2 + $0x1d2] sm:$0xff]  ;;  %v4315_v15 = vld [vmem:[#allocation2 + $0x108] sm:$0xff] }
 0x2ff   : > { %v2969_v17 = vsel %vm2951_vm8, %v2914_v6, %v2279_v63  ;;  %v2915_v47 = vsel %vm2896_vm7, %v2860_v26, %v2065_v4  ;;  %v821_v63 = vld [vmem:[#allocation2 + $0x1d1] sm:$0xff]  ;;  %v7215_v6 = vld [vmem:[#allocation174_spill] sm:$0xff]  ;;  %v7217_v26 = vld [vmem:[#allocation75_spill] sm:$0xff] }
 0x300   : > { %2310 = vrot.lane.b32.xlu1 %v819_v16, %s4417_s7  ;;  %v7212_v16 = vld [vmem:[#allocation21_spill] sm:$0xff] }
 0x301   : > { %2526 = vrot.lane.b32.xlu0 %v873_v44, %s4418_s8  ;;  %v2642_v45 = vsel %vm209_vm0, %v4313_v25, %v7212_v16  ;;  %v4316_v16 = vld [vmem:[#allocation2 + $0x110] sm:$0xff] }
 0x302   : > { %v2495_v13 = vpop.permute.xlu1 %2494  ;;  %v2281_v32 = vpop.permute.xlu0 %2280 }
 0x303   : > { %v3024_v53 = vsel %vm3006_vm9, %v2969_v17, %v2495_v13  ;;  %v2970_v39 = vsel %vm2951_vm8, %v2915_v47, %v2281_v32  ;;  %v7216_v32 = vld [vmem:[#allocation24_spill] sm:$0xff]  ;;  %v7218_v47 = vld [vmem:[#allocation126_spill] sm:$0xff] }
 0x304   : > { %1880 = vrot.lane.b32.xlu1 %v872_v21, %s4415_s10  ;;  %4180 = vmatmul.mubr.msk.f32.gmra.mxu0 %vm3073_vm10, %v3024_v53  ;;  %v7210_v21 = vld [vmem:[#allocation124_spill] sm:$0xff]  ;;  %v4314_v53 = vld [vmem:[#allocation2 + $0xf8] sm:$0xff] }
 0x305   : > { %2096 = vrot.lane.b32.xlu0 %v766_v28, %s4416_s30  ;;  %v2751_v36 = vsel %vm2731_vm4, %v2696_v3, %v7210_v21  ;;  %v768_v28 = vld [vmem:[#allocation2 + $0x1e0] sm:$0xff]  ;;  %v2643_v8 = vsel %vm209_vm0, %v4314_v53, %v7216_v32 }
 0x306   : > { %v2067_v27 = vpop.permute.xlu1 %2066  ;;  %v2497_v52 = vpop.permute.xlu0 %2496  ;;  %v2806_v19 = vsel %vm2786_vm5, %v2751_v36, %v7211_v62  ;;  %v7220_v21 = vld [vmem:[#allocation74_spill] sm:$0xff]  ;;  %v7221_v62 = vld [vmem:[#allocation125_spill] sm:$0xff] }
 0x307   : > { %v3025_v46 = vsel %vm3006_vm9, %v2970_v39, %v2497_v52  ;;  %v2861_v24 = vsel %vm2841_vm6, %v2806_v19, %v5737_v58  ;;  %v822_v39 = vld [vmem:[#allocation2 + $0x1e1] sm:$0xff]  ;;  %v824_v53 = vld [vmem:[#allocation2 + $0x1f9] sm:$0xff] }
 0x308   : > { %1882 = vrot.lane.b32.xlu1 %v873_v44, %s4415_s10  ;;  %4182 = vmatprep.mubr.msk.f32.mxu0 %vm3073_vm10, %v3025_v46  ;;  %v2916_v54 = vsel %vm2896_vm7, %v2861_v24, %v2067_v27  ;;  %v7213_v44 = vld [vmem:[#allocation72_spill] sm:$0xff]  ;;  %v7219_v46 = vld [vmem:[#allocation23_spill] sm:$0xff]  ;;  %v7222_v24 = vld [vmem:[#allocation177_spill] sm:$0xff] }
 0x309   : > { %2312 = vrot.lane.b32.xlu0 %v820_v0, %s4417_s7  ;;  %v2697_v38 = vsel %vm2676_vm3, %v2642_v45, %v7213_v44  ;;  %v2644_v11 = vsel %vm209_vm0, %v4315_v15, %v7219_v46  ;;  %v7223_v45 = vld [vmem:[#allocation26_spill] sm:$0xff]  ;;  %v823_v44 = vld [vmem:[#allocation2 + $0x1e9] sm:$0xff] }
 0x30a   : > { %v2283_v35 = vpop.permute.xlu1 %2282  ;;  %v2069_v20 = vpop.permute.xlu0 %2068  ;;  %v2752_v58 = vsel %vm2731_vm4, %v2697_v38, %v7214_v56  ;;  %v2699_v36 = vsel %vm2676_vm3, %v2644_v11, %v7220_v21  ;;  %v7224_v38 = vld [vmem:[#allocation77_spill] sm:$0xff]  ;;  %v877_v56 = vld [vmem:[#allocation2 + $0x1ea] sm:$0xff]  ;;  %v4317_v32 = vld [vmem:[#allocation2 + $0x120] sm:$0xff] }
 0x30b   : > { %v2971_v51 = vsel %vm2951_vm8, %v2916_v54, %v2283_v35  ;;  %v2807_v50 = vsel %vm2786_vm5, %v2752_v58, %v7215_v6  ;;  %v2645_v54 = vsel %vm209_vm0, %v4316_v16, %v7223_v45  ;;  %v7225_v58 = vld [vmem:[#allocation128_spill] sm:$0xff]  ;;  %v825_v21 = vld [vmem:[#allocation2 + $0x201] sm:$0xff] }
 0x30c   : > { %2098 = vrot.lane.b32.xlu1 %v767_v57, %s4416_s30  ;;  %v2862_v9 = vsel %vm2841_vm6, %v2807_v50, %v5732_v14  ;;  %v2698_v14 = vsel %vm2676_vm3, %v2643_v8, %v7217_v26  ;;  %v769_v57 = vld [vmem:[#allocation2 + $0x1e8] sm:$0xff]  ;;  %v7226_v8 = vld [vmem:[#allocation25_spill] sm:$0xff] }
 0x30d   : > { %2528 = vrot.lane.b32.xlu0 %v874_v29, %s4418_s8  ;;  %v2917_v17 = vsel %vm2896_vm7, %v2862_v9, %v2069_v20  ;;  %v2753_v27 = vsel %vm2731_vm4, %v2698_v14, %v7218_v47  ;;  %v7227_v14 = vld [vmem:[#allocation76_spill] sm:$0xff] }
 0x30e   : > { %v2499_v4 = vpop.permute.xlu1 %2498  ;;  %v2285_v10 = vpop.permute.xlu0 %2284  ;;  %v2808_v52 = vsel %vm2786_vm5, %v2753_v27, %v5547_v59  ;;  %v7228_v27 = vld [vmem:[#allocation127_spill] sm:$0xff] }
 0x30f   : > { %v3026_v55 = vsel %vm3006_vm9, %v2971_v51, %v2499_v4  ;;  %v2972_v48 = vsel %vm2951_vm8, %v2917_v17, %v2285_v10  ;;  %v2863_v22 = vsel %vm2841_vm6, %v2808_v52, %v5745_v12  ;;  %v2754_v12 = vsel %vm2731_vm4, %v2699_v36, %v7221_v62  ;;  %v4318_v11 = vld [vmem:[#allocation2 + $0x128] sm:$0xff]  ;;  %v7231_v62 = vld [vmem:[#allocation130_spill] sm:$0xff] }
 0x310   : > { %2314 = vrot.lane.b32.xlu1 %v821_v63, %s4417_s7  ;;  %4183 = vmatmul.mubr.msk.f32.gmra.mxu0 %vm3073_vm10, %v3026_v55  ;;  %v2809_v25 = vsel %vm2786_vm5, %v2754_v12, %v7222_v24  ;;  %v2700_v51 = vsel %vm2676_vm3, %v2645_v54, %v7224_v38  ;;  %v7230_v36 = vld [vmem:[#allocation79_spill] sm:$0xff] }
 0x311   : > { %2530 = vrot.lane.b32.xlu0 %v875_v7, %s4418_s8  ;;  %v2864_v63 = vsel %vm2841_vm6, %v2809_v25, %v5739_v33  ;;  %v2755_v55 = vsel %vm2731_vm4, %v2700_v51, %v7225_v58 }
 0x312   : > { %v2071_v13 = vpop.permute.xlu1 %2070  ;;  %v2501_v37 = vpop.permute.xlu0 %2500  ;;  %v2810_v50 = vsel %vm2786_vm5, %v2755_v55, %v5554_v60 }
 0x313   : > { %v3027_v30 = vsel %vm3006_vm9, %v2972_v48, %v2501_v37  ;;  %v2918_v3 = vsel %vm2896_vm7, %v2863_v22, %v2071_v13  ;;  %v2865_v9 = vsel %vm2841_vm6, %v2810_v50, %v5754_v41  ;;  %v878_v22 = vld [vmem:[#allocation2 + $0x1fa] sm:$0xff] }
 0x314   : > { %1884 = vrot.lane.b32.xlu1 %v874_v29, %s4415_s10  ;;  %4185 = vmatprep.mubr.msk.f32.mxu0 %vm3073_vm10, %v3027_v30  ;;  %v876_v29 = vld [vmem:[#allocation2 + $0x1e2] sm:$0xff]  ;;  %v2646_v30 = vsel %vm209_vm0, %v4317_v32, %v7226_v8  ;;  %v7234_v50 = vld [vmem:[#allocation129_spill] sm:$0xff] }
 0x315   : > { %2100 = vrot.lane.b32.xlu0 %v768_v28, %s4416_s30  ;;  %v770_v28 = vld [vmem:[#allocation2 + $0x1f8] sm:$0xff]  ;;  %v2701_v47 = vsel %vm2676_vm3, %v2646_v30, %v7227_v14 }
 0x316   : > { %v2287_v0 = vpop.permute.xlu1 %2286  ;;  %v827_v32 = vld [vmem:[#allocation2 + $0x219] sm:$0xff] }
 0x317   : > { %v2073_v43 = vpop.permute.xlu0 %2072  ;;  %v2973_v59 = vsel %vm2951_vm8, %v2918_v3, %v2287_v0  ;;  %v2756_v0 = vsel %vm2731_vm4, %v2701_v47, %v7228_v27  ;;  %v7229_v3 = vld [vmem:[#allocation28_spill] sm:$0xff]  ;;  %v7236_v8 = vld [vmem:[#allocation81_spill] sm:$0xff] }
 0x318   : > { %1886 = vrot.lane.b32.xlu1 %v875_v7, %s4415_s10  ;;  %v2919_v4 = vsel %vm2896_vm7, %v2864_v63, %v2073_v43  ;;  %v2811_v52 = vsel %vm2786_vm5, %v2756_v0, %v5549_v5  ;;  %v772_v63 = vld [vmem:[#allocation2 + $0x210] sm:$0xff]  ;;  %v881_v14 = vld [vmem:[#allocation2 + $0x21a] sm:$0xff] }
 0x319   : > { %2316 = vrot.lane.b32.xlu0 %v822_v39, %s4417_s7  ;;  %v771_v39 = vld [vmem:[#allocation2 + $0x200] sm:$0xff]  ;;  %v7237_v47 = vld [vmem:[#allocation132_spill] sm:$0xff] }
 0x31a   : > { %v2503_v35 = vpop.permute.xlu1 %2502 }
 0x31b   : > { %v3028_v19 = vsel %vm3006_vm9, %v2973_v59, %v2503_v35  ;;  %v2289_v20 = vpop.permute.xlu0 %2288 }
 0x31c   : > { %2102 = vrot.lane.b32.xlu1 %v769_v57, %s4416_s30  ;;  %4186 = vmatmul.mubr.msk.f32.gmra.mxu0 %vm3073_vm10, %v3028_v19  ;;  %v2974_v10 = vsel %vm2951_vm8, %v2919_v4, %v2289_v20  ;;  %v2647_v57 = vsel %vm209_vm0, %v4318_v11, %v7229_v3  ;;  %v826_v4 = vld [vmem:[#allocation2 + $0x211] sm:$0xff]  ;;  %v774_v11 = vld [vmem:[#allocation2 + $0x228] sm:$0xff] }
 0x31d   : > { %2532 = vrot.lane.b32.xlu0 %v876_v29, %s4418_s8  ;;  %v2702_v59 = vsel %vm2676_vm3, %v2647_v57, %v7230_v36  ;;  %v828_v36 = vld [vmem:[#allocation2 + $0x229] sm:$0xff] }
 0x31e   : > { %v2075_v7 = vpop.permute.xlu1 %2074  ;;  %v2757_v12 = vsel %vm2731_vm4, %v2702_v59, %v7231_v62  ;;  %v4321_v59 = vld [vmem:[#allocation2 + $0x150] sm:$0xff] }
 0x31f   : > { %v2505_v6 = vpop.permute.xlu0 %2504  ;;  %v2920_v17 = vsel %vm2896_vm7, %v2865_v9, %v2075_v7  ;;  %v2812_v24 = vsel %vm2786_vm5, %v2757_v12, %v5561_v2  ;;  %v4319_v7 = vld [vmem:[#allocation2 + $0x138] sm:$0xff]  ;;  %v7239_v62 = vld [vmem:[#allocation80_spill] sm:$0xff] }
 0x320   : > { %v3029_v33 = vsel %vm3006_vm9, %v2974_v10, %v2505_v6  ;;  %2318 = vrot.lane.b32.xlu1 %v823_v44, %s4417_s7  ;;  %v7233_v10 = vld [vmem:[#allocation78_spill] sm:$0xff] }
 0x321   : > { %2534 = vrot.lane.b32.xlu0 %v877_v56, %s4418_s8  ;;  %4188 = vmatprep.mubr.msk.f32.mxu0 %vm3073_vm10, %v3029_v33  ;;  %v773_v9 = vld [vmem:[#allocation2 + $0x218] sm:$0xff] }
 0x322   : > { %v2291_v13 = vpop.permute.xlu1 %2290 }
 0x323   : > { %v2975_v48 = vsel %vm2951_vm8, %v2920_v17, %v2291_v13  ;;  %v2507_v37 = vpop.permute.xlu0 %2506 }
 0x324   : > { %v3030_v60 = vsel %vm3006_vm9, %v2975_v48, %v2507_v37  ;;  %1888 = vrot.lane.b32.xlu1 %v876_v29, %s4415_s10  ;;  %v879_v29 = vld [vmem:[#allocation2 + $0x202] sm:$0xff] }
 0x325   : > { %2104 = vrot.lane.b32.xlu0 %v770_v28, %s4416_s30  ;;  %4189 = vmatmul.mubr.msk.f32.gmra.mxu0 %vm3073_vm10, %v3030_v60  ;;  %v880_v28 = vld [vmem:[#allocation2 + $0x212] sm:$0xff]  ;;  %v4320_v60 = vld [vmem:[#allocation2 + $0x140] sm:$0xff] }
 0x326   : > { %v1861_v41 = vpop.permute.xlu1 %1860 }
 0x327   : > { %v2077_v26 = vpop.permute.xlu0 %2076  ;;  %v2866_v15 = vsel %vm2841_vm6, %v2811_v52, %v1861_v41  ;;  %v7235_v41 = vld [vmem:[#allocation30_spill] sm:$0xff] }
 0x328   : > { %1890 = vrot.lane.b32.xlu1 %v877_v56, %s4415_s10  ;;  %v2921_v35 = vsel %vm2896_vm7, %v2866_v15, %v2077_v26  ;;  %v7232_v56 = vld [vmem:[#allocation27_spill] sm:$0xff] }
 0x329   : > { %2320 = vrot.lane.b32.xlu0 %v824_v53, %s4417_s7  ;;  %v2648_v58 = vsel %vm209_vm0, %v4319_v7, %v7232_v56  ;;  %v2649_v53 = vsel %vm209_vm0, %v4320_v60, %v7235_v41  ;;  %v7243_v7 = vld [vmem:[#allocation83_spill] sm:$0xff] }
 0x32a   : > { %v1863_v43 = vpop.permute.xlu1 %1862  ;;  %v2703_v6 = vsel %vm2676_vm3, %v2648_v58, %v7233_v10  ;;  %v2704_v30 = vsel %vm2676_vm3, %v2649_v53, %v7236_v8  ;;  %v883_v10 = vld [vmem:[#allocation2 + $0x232] sm:$0xff]  ;;  %v776_v60 = vld [vmem:[#allocation2 + $0x240] sm:$0xff] }
 0x32b   : > { %v2293_v46 = vpop.permute.xlu0 %2292  ;;  %v2867_v16 = vsel %vm2841_vm6, %v2812_v24, %v1863_v43  ;;  %v2758_v33 = vsel %vm2731_vm4, %v2703_v6, %v7234_v50  ;;  %v2759_v27 = vsel %vm2731_vm4, %v2704_v30, %v7237_v47  ;;  %v775_v24 = vld [vmem:[#allocation2 + $0x230] sm:$0xff]  ;;  %v7244_v6 = vld [vmem:[#allocation134_spill] sm:$0xff]  ;;  %v4323_v30 = vld [vmem:[#allocation2 + $0x168] sm:$0xff] }
 0x32c   : > { %2106 = vrot.lane.b32.xlu1 %v771_v39, %s4416_s30  ;;  %v2976_v19 = vsel %vm2951_vm8, %v2921_v35, %v2293_v46  ;;  %v2813_v17 = vsel %vm2786_vm5, %v2758_v33, %v5556_v34  ;;  %v2814_v52 = vsel %vm2786_vm5, %v2759_v27, %v5569_v1  ;;  %v7238_v35 = vld [vmem:[#allocation29_spill] sm:$0xff]  ;;  %v830_v8 = vld [vmem:[#allocation2 + $0x241] sm:$0xff] }
 0x32d   : > { %2536 = vrot.lane.b32.xlu0 %v878_v22, %s4418_s8  ;;  %v7246_v47 = vld [vmem:[#allocation82_spill] sm:$0xff] }
 0x32e   : > { %v2079_v5 = vpop.permute.xlu1 %2078 }
 0x32f   : > { %v2509_v20 = vpop.permute.xlu0 %2508  ;;  %v2922_v45 = vsel %vm2896_vm7, %v2867_v16, %v2079_v5  ;;  %v2650_v5 = vsel %vm209_vm0, %v4321_v59, %v7238_v35  ;;  %v7250_v59 = vld [vmem:[#allocation85_spill] sm:$0xff] }
 0x330   : > { %v3031_v25 = vsel %vm3006_vm9, %v2976_v19, %v2509_v20  ;;  %2322 = vrot.lane.b32.xlu1 %v825_v21, %s4417_s7  ;;  %v2705_v12 = vsel %vm2676_vm3, %v2650_v5, %v7239_v62  ;;  %v7240_v19 = vld [vmem:[#allocation131_spill] sm:$0xff] }
 0x331   : > { %2538 = vrot.lane.b32.xlu0 %v879_v29, %s4418_s8  ;;  %4191 = vmatprep.mubr.msk.f32.mxu0 %vm3073_vm10, %v3031_v25  ;;  %v2760_v20 = vsel %vm2731_vm4, %v2705_v12, %v7240_v19  ;;  %v7241_v25 = vld [vmem:[#allocation178_spill] sm:$0xff]  ;;  %v885_v62 = vld [vmem:[#allocation2 + $0x24a] sm:$0xff] }
 0x332   : > { %v2295_v54 = vpop.permute.xlu1 %2294  ;;  %v2815_v16 = vsel %vm2786_vm5, %v2760_v20, %v7241_v25  ;;  %v7251_v12 = vld [vmem:[#allocation136_spill] sm:$0xff] }
 0x333   : > { %v2977_v44 = vsel %vm2951_vm8, %v2922_v45, %v2295_v54  ;;  %v2511_v38 = vpop.permute.xlu0 %2510  ;;  %v882_v54 = vld [vmem:[#allocation2 + $0x22a] sm:$0xff] }
 0x334   : > { %v3032_v51 = vsel %vm3006_vm9, %v2977_v44, %v2511_v38  ;;  %1892 = vrot.lane.b32.xlu1 %v878_v22, %s4415_s10  ;;  %v4322_v38 = vld [vmem:[#allocation2 + $0x158] sm:$0xff] }
 0x335   : > { %2108 = vrot.lane.b32.xlu0 %v772_v63, %s4416_s30  ;;  %4192 = vmatmul.mubr.msk.f32.gmra.mxu0 %vm3073_vm10, %v3032_v51  ;;  %v7242_v51 = vld [vmem:[#allocation32_spill] sm:$0xff] }
 0x336   : > { %v1865_v2 = vpop.permute.xlu1 %1864 }
 0x337   : > { %v2081_v55 = vpop.permute.xlu0 %2080  ;;  %v2868_v48 = vsel %vm2841_vm6, %v2813_v17, %v1865_v2  ;;  %v2651_v2 = vsel %vm209_vm0, %v4322_v38, %v7242_v51  ;;  %v778_v38 = vld [vmem:[#allocation2 + $0x258] sm:$0xff] }
 0x338   : > { %1894 = vrot.lane.b32.xlu1 %v879_v29, %s4415_s10  ;;  %v2923_v26 = vsel %vm2896_vm7, %v2868_v48, %v2081_v55  ;;  %v2706_v56 = vsel %vm2676_vm3, %v2651_v2, %v7243_v7 }
 0x339   : > { %2324 = vrot.lane.b32.xlu0 %v826_v4, %s4417_s7  ;;  %v829_v4 = vld [vmem:[#allocation2 + $0x231] sm:$0xff]  ;;  %v2761_v50 = vsel %vm2731_vm4, %v2706_v56, %v7244_v6 }
 0x33a   : > { %v1867_v13 = vpop.permute.xlu1 %1866  ;;  %v2816_v17 = vsel %vm2786_vm5, %v2761_v50, %v5576_v23  ;;  %v7252_v6 = vld [vmem:[#allocation33_spill] sm:$0xff] }
 0x33b   : > { %v2297_v37 = vpop.permute.xlu0 %2296  ;;  %v2869_v22 = vsel %vm2841_vm6, %v2814_v52, %v1867_v13  ;;  %v777_v52 = vld [vmem:[#allocation2 + $0x248] sm:$0xff] }
 0x33c   : > { %2110 = vrot.lane.b32.xlu1 %v773_v9, %s4416_s30  ;;  %v2978_v0 = vsel %vm2951_vm8, %v2923_v26, %v2297_v37  ;;  %v7245_v26 = vld [vmem:[#allocation31_spill] sm:$0xff] }
 0x33d   : > { %2540 = vrot.lane.b32.xlu0 %v880_v28, %s4418_s8 }
 0x33e   : > { %v2083_v34 = vpop.permute.xlu1 %2082 }
 0x33f   : > { %v2513_v39 = vpop.permute.xlu0 %2512  ;;  %v2924_v15 = vsel %vm2896_vm7, %v2869_v22, %v2083_v34  ;;  %v2652_v34 = vsel %vm209_vm0, %v4323_v30, %v7245_v26  ;;  %v886_v26 = vld [vmem:[#allocation2 + $0x25a] sm:$0xff] }
 0x340   : > { %v3033_v43 = vsel %vm3006_vm9, %v2978_v0, %v2513_v39  ;;  %2326 = vrot.lane.b32.xlu1 %v827_v32, %s4417_s7  ;;  %v2707_v27 = vsel %vm2676_vm3, %v2652_v34, %v7246_v47  ;;  %v7247_v0 = vld [vmem:[#allocation133_spill] sm:$0xff] }
 0x341   : > { %2542 = vrot.lane.b32.xlu0 %v881_v14, %s4418_s8  ;;  %4194 = vmatprep.mubr.msk.f32.mxu0 %vm3073_vm10, %v3033_v43  ;;  %v2762_v39 = vsel %vm2731_vm4, %v2707_v27, %v7247_v0  ;;  %v7248_v43 = vld [vmem:[#allocation179_spill] sm:$0xff] }
 0x342   : > { %v2299_v46 = vpop.permute.xlu1 %2298  ;;  %v2817_v22 = vsel %vm2786_vm5, %v2762_v39, %v7248_v43  ;;  %v4326_v39 = vld [vmem:[#allocation2 + $0x188] sm:$0xff] }
 0x343   : > { %v2979_v3 = vsel %vm2951_vm8, %v2924_v15, %v2299_v46  ;;  %v2515_v57 = vpop.permute.xlu0 %2514  ;;  %v884_v46 = vld [vmem:[#allocation2 + $0x242] sm:$0xff] }
 0x344   : > { %v3034_v21 = vsel %vm3006_vm9, %v2979_v3, %v2515_v57  ;;  %1896 = vrot.lane.b32.xlu1 %v880_v28, %s4415_s10  ;;  %v4324_v57 = vld [vmem:[#allocation2 + $0x170] sm:$0xff] }
 0x345   : > { %2112 = vrot.lane.b32.xlu0 %v774_v11, %s4416_s30  ;;  %4195 = vmatmul.mubr.msk.f32.gmra.mxu0 %vm3073_vm10, %v3034_v21  ;;  %v7249_v21 = vld [vmem:[#allocation34_spill] sm:$0xff] }
 0x346   : > { %v1869_v1 = vpop.permute.xlu1 %1868 }
 0x347   : > { %v2085_v29 = vpop.permute.xlu0 %2084  ;;  %v2870_v63 = vsel %vm2841_vm6, %v2815_v16, %v1869_v1  ;;  %v2653_v1 = vsel %vm209_vm0, %v4324_v57, %v7249_v21  ;;  %v7257_v57 = vld [vmem:[#allocation138_spill] sm:$0xff] }
 0x348   : > { %1898 = vrot.lane.b32.xlu1 %v881_v14, %s4415_s10  ;;  %v2925_v58 = vsel %vm2896_vm7, %v2870_v63, %v2085_v29  ;;  %v2708_v35 = vsel %vm2676_vm3, %v2653_v1, %v7250_v59 }
 0x349   : > { %2328 = vrot.lane.b32.xlu0 %v828_v36, %s4417_s7  ;;  %v831_v36 = vld [vmem:[#allocation2 + $0x249] sm:$0xff]  ;;  %v2763_v19 = vsel %vm2731_vm4, %v2708_v35, %v7251_v12 }
 0x34a   : > { %v1871_v45 = vpop.permute.xlu1 %1870  ;;  %v2818_v25 = vsel %vm2786_vm5, %v2763_v19, %v5583_v40 }
 0x34b   : > { %v2301_v44 = vpop.permute.xlu0 %2300  ;;  %v2871_v28 = vsel %vm2841_vm6, %v2816_v17, %v1871_v45 }
 0x34c   : > { %2114 = vrot.lane.b32.xlu1 %v775_v24, %s4416_s30  ;;  %v2980_v33 = vsel %vm2951_vm8, %v2925_v58, %v2301_v44  ;;  %v6300_v44 = vld [vmem:[%s6947_s2] ss:$0 sm:$0xff] }
 0x34d   : > { %2544 = vrot.lane.b32.xlu0 %v882_v54, %s4418_s8 }
 0x34e   : > { %v2087_v55 = vpop.permute.xlu1 %2086 }
 0x34f   : > { %v2517_v9 = vpop.permute.xlu0 %2516  ;;  %v2926_v48 = vsel %vm2896_vm7, %v2871_v28, %v2087_v55  ;;  %v832_v55 = vld [vmem:[#allocation2 + $0x259] sm:$0xff] }
 0x350   : > { %2330 = vrot.lane.b32.xlu1 %v829_v4, %s4417_s7  ;;  %v3035_v13 = vsel %vm3006_vm9, %v2980_v33, %v2517_v9 }
 0x351   : > { %2546 = vrot.lane.b32.xlu0 %v883_v10, %s4418_s8  ;;  %4197 = vmatprep.mubr.msk.f32.mxu1 %vm3073_vm10, %v3035_v13  ;;  %v7253_v13 = vld [vmem:[#allocation84_spill] sm:$0xff] }
 0x352   : > { %v2303_v37 = vpop.permute.xlu1 %2302 }
 0x353   : > { %v2981_v41 = vsel %vm2951_vm8, %v2926_v48, %v2303_v37  ;;  %v2519_v53 = vpop.permute.xlu0 %2518  ;;  %v7254_v48 = vld [vmem:[#allocation135_spill] sm:$0xff] }
 0x354   : > { %v3036_v32 = vsel %vm3006_vm9, %v2981_v41, %v2519_v53  ;;  %1900 = vrot.lane.b32.xlu1 %v882_v54, %s4415_s10 }
 0x355   : > { %2116 = vrot.lane.b32.xlu0 %v776_v60, %s4416_s30  ;;  %4198 = vmatmul.mubr.msk.f32.vlgmr.msra.gmra.mxu1 %vm3073_vm10, %v3036_v32  ;;  %v779_v32 = vld [vmem:[#allocation2 + $0x260] sm:$0xff] }
 0x356   : > { %v1873_v23 = vpop.permute.xlu1 %1872 }
 0x357   : > { %v2089_v14 = vpop.permute.xlu0 %2088  ;;  %v2872_v11 = vsel %vm2841_vm6, %v2817_v22, %v1873_v23  ;;  %v7256_v22 = vld [vmem:[#allocation87_spill] sm:$0xff] }
 0x358   : > { %1902 = vrot.lane.b32.xlu1 %v883_v10, %s4415_s10  ;;  %v2927_v5 = vsel %vm2896_vm7, %v2872_v11, %v2089_v14  ;;  %v4325_v10 = vld [vmem:[#allocation2 + $0x180] sm:$0xff] }
 0x359   : > { %2332 = vrot.lane.b32.xlu0 %v830_v8, %s4417_s7  ;;  %v2654_v50 = vsel %vm209_vm0, %v4325_v10, %v7252_v6  ;;  %v7259_v6 = vld [vmem:[#allocation86_spill] sm:$0xff] }
 0x35a   : > { %v1875_v15 = vpop.permute.xlu1 %1874  ;;  %v2709_v28 = vsel %vm2676_vm3, %v2654_v50, %v7253_v13 }
 0x35b   : > { %v2305_v3 = vpop.permute.xlu0 %2304  ;;  %v2873_v45 = vsel %vm2841_vm6, %v2818_v25, %v1875_v15  ;;  %v2764_v37 = vsel %vm2731_vm4, %v2709_v28, %v7254_v48  ;;  %v781_v48 = vld [vmem:[#allocation2 + $0x278] sm:$0xff] }
 0x35c   : > { %2118 = vrot.lane.b32.xlu1 %v777_v52, %s4416_s30  ;;  %v2982_v20 = vsel %vm2951_vm8, %v2927_v5, %v2305_v3  ;;  %v2819_v23 = vsel %vm2786_vm5, %v2764_v37, %v5578_v42  ;;  %v7255_v52 = vld [vmem:[#allocation36_spill] sm:$0xff]  ;;  %v833_v42 = vld [vmem:[#allocation2 + $0x261] sm:$0xff] }
 0x35d   : > { %2548 = vrot.lane.b32.xlu0 %v884_v46, %s4418_s8  ;;  %v2655_v43 = vsel %vm209_vm0, %v4326_v39, %v7255_v52  ;;  %v887_v3 = vld [vmem:[#allocation2 + $0x262] sm:$0xff]  ;;  %v7261_v37 = vld [vmem:[#allocation180_spill] sm:$0xff] }
 0x35e   : > { %v2091_v29 = vpop.permute.xlu1 %2090  ;;  %v2710_v15 = vsel %vm2676_vm3, %v2655_v43, %v7256_v22  ;;  %v889_v22 = vld [vmem:[#allocation2 + $0x27a] sm:$0xff] }
 0x35f   : > { %v2521_v24 = vpop.permute.xlu0 %2520  ;;  %v2928_v54 = vsel %vm2896_vm7, %v2873_v45, %v2091_v29  ;;  %v2765_v21 = vsel %vm2731_vm4, %v2710_v15, %v7257_v57  ;;  %v7264_v15 = vld [vmem:[#allocation140_spill] sm:$0xff] }
 0x360   : > { %v3037_v16 = vsel %vm3006_vm9, %v2982_v20, %v2521_v24  ;;  %2334 = vrot.lane.b32.xlu1 %v831_v36, %s4417_s7  ;;  %v2820_v59 = vsel %vm2786_vm5, %v2765_v21, %v5591_v61  ;;  %v780_v24 = vld [vmem:[#allocation2 + $0x270] sm:$0xff] }
 0x361   : > { %2550 = vrot.lane.b32.xlu0 %v885_v62, %s4418_s8  ;;  %4200 = vmatprep.mubr.msk.f32.mxu1 %vm3073_vm10, %v3037_v16 }
 0x362   : > { %v2307_v63 = vpop.permute.xlu1 %2306 }
 0x363   : > { %v2983_v40 = vsel %vm2951_vm8, %v2928_v54, %v2307_v63  ;;  %v2523_v51 = vpop.permute.xlu0 %2522 }
 0x364   : > { %v3038_v2 = vsel %vm3006_vm9, %v2983_v40, %v2523_v51  ;;  %v4157_v4 = vpop.f32.mrf.mxu0  ;;  %1904 = vrot.lane.b32.xlu1 %v884_v46, %s4415_s10 }
 0x365   : > { %v3312_v7 = vadd.f32 %v4157_v4, %v6300_v44  ;;  %2120 = vrot.lane.b32.xlu0 %v778_v38, %s4416_s30  ;;  %4201 = vmatmul.mubr.msk.f32.gmra.mxu1 %vm3073_vm10, %v3038_v2  ;;  %v834_v2 = vld [vmem:[#allocation2 + $0x271] sm:$0xff] }
 0x366   : > { %v3306_v56 = vpop.f32.mrf.mxu0  ;;  %v1877_v58 = vpop.permute.xlu1 %1876  ;;  %v4327_v4 = vld [vmem:[#allocation2 + $0x198] sm:$0xff] }
 0x367   : > { %3576 = vst.msk [vmem:[%s6309_s14 + $0x8] sm:$0xff] %vm2786_vm5, %v3312_v7  ;;  %v3743_v33 = vmul.f32 %v3312_v7, %v3312_v7  ;;  %v3307_v9 = vadd.f32 %v6300_v44, %v3306_v56  ;;  %v2093_v17 = vpop.permute.xlu0 %2092  ;;  %v3630_v60 = vsel %vm2786_vm5, %v3312_v7, 0.0  ;;  %v2874_v47 = vsel %vm2841_vm6, %v2819_v23, %v1877_v58  ;;  %v7258_v7 = vld [vmem:[#allocation35_spill] sm:$0xff] }
 0x368   : > { %1906 = vrot.lane.b32.xlu1 %v885_v62, %s4415_s10  ;;  %v2929_v46 = vsel %vm2896_vm7, %v2874_v47, %v2093_v17  ;;  %v2656_v56 = vsel %vm209_vm0, %v4327_v4, %v7258_v7  ;;  %v7260_v17 = vld [vmem:[#allocation137_spill] sm:$0xff] }
 0x369   : > { %3575 = vst.msk [vmem:[%s6309_s14] sm:$0xff] %vm2786_vm5, %v3307_v9  ;;  %v3629_v41 = vsel %vm2786_vm5, %v3307_v9, 0.0  ;;  %v3742_v53 = vmul.f32 %v3307_v9, %v3307_v9  ;;  %2336 = vrot.lane.b32.xlu0 %v832_v55, %s4417_s7  ;;  %v3797_v34 = vsel %vm2786_vm5, %v3743_v33, 0.0  ;;  %v2711_v50 = vsel %vm2676_vm3, %v2656_v56, %v7259_v6  ;;  %v7266_v56 = vld [vmem:[#allocation88_spill] sm:$0xff] }
 0x36a   : > { %v3631_v8 = vadd.f32 %v3630_v60, %v3629_v41  ;;  %v1879_v30 = vpop.permute.xlu1 %1878  ;;  %v2766_v13 = vsel %vm2731_vm4, %v2711_v50, %v7260_v17 }
 0x36b   : > { %v3796_v14 = vsel %vm2786_vm5, %v3742_v53, 0.0  ;;  %v2309_v27 = vpop.permute.xlu0 %2308  ;;  %v2875_v29 = vsel %vm2841_vm6, %v2820_v59, %v1879_v30  ;;  %v2821_v60 = vsel %vm2786_vm5, %v2766_v13, %v7261_v37  ;;  %v888_v53 = vld [vmem:[#allocation2 + $0x272] sm:$0xff] }
 0x36c   : > { %v3798_v0 = vadd.f32 %v3797_v34, %v3796_v14  ;;  %2122 = vrot.lane.b32.xlu1 %v779_v32, %s4416_s30  ;;  %v2984_v1 = vsel %vm2951_vm8, %v2929_v46, %v2309_v27  ;;  %v7262_v34 = vld [vmem:[#allocation38_spill] sm:$0xff] }
 0x36d   : > { %2552 = vrot.lane.b32.xlu0 %v886_v26, %s4418_s8  ;;  %v835_v27 = vld [vmem:[#allocation2 + $0x279] sm:$0xff] }
 0x36e   : > { %v2095_v11 = vpop.permute.xlu1 %2094 }
 0x36f   : > { %v2525_v36 = vpop.permute.xlu0 %2524  ;;  %v2930_v12 = vsel %vm2896_vm7, %v2875_v29, %v2095_v11 }
 0x370   : > { %v3039_v35 = vsel %vm3006_vm9, %v2984_v1, %v2525_v36  ;;  %2338 = vrot.lane.b32.xlu1 %v833_v42, %s4417_s7  ;;  %v4160_v5 = vpop.f32.mrf.mxu0 }
 0x371   : > { %v3322_v62 = vadd.f32 %v4160_v5, %v6300_v44  ;;  %2554 = vrot.lane.b32.xlu0 %v887_v3, %s4418_s8  ;;  %4203 = vmatprep.mubr.msk.f32.mxu1 %vm3073_vm10, %v3039_v35 }
 0x372   : > { %v2311_v19 = vpop.permute.xlu1 %2310  ;;  %v3316_v20 = vpop.f32.mrf.mxu0 }
 0x373   : > { %3578 = vst.msk [vmem:[%s6309_s14 + $0x18] sm:$0xff] %vm2786_vm5, %v3322_v62  ;;  %v2985_v61 = vsel %vm2951_vm8, %v2930_v12, %v2311_v19  ;;  %v3317_v25 = vadd.f32 %v6300_v44, %v3316_v20  ;;  %v2527_v16 = vpop.permute.xlu0 %2526  ;;  %v3745_v54 = vmul.f32 %v3322_v62, %v3322_v62  ;;  %v3634_v58 = vsel %vm2786_vm5, %v3322_v62, 0.0  ;;  %v782_v12 = vld [vmem:[#allocation2 + $0x288] sm:$0xff] }
 0x374   : > { %v3040_v45 = vsel %vm3006_vm9, %v2985_v61, %v2527_v16  ;;  %1908 = vrot.lane.b32.xlu1 %v886_v26, %s4415_s10  ;;  %v4328_v26 = vld [vmem:[#allocation2 + $0x1a0] sm:$0xff] }
 0x375   : > { %3577 = vst.msk [vmem:[%s6309_s14 + $0x10] sm:$0xff] %vm2786_vm5, %v3317_v25  ;;  %v3632_v63 = vsel %vm2786_vm5, %v3317_v25, 0.0  ;;  %v3744_v38 = vmul.f32 %v3317_v25, %v3317_v25  ;;  %2124 = vrot.lane.b32.xlu0 %v780_v24, %s4416_s30  ;;  %4204 = vmatmul.mubr.msk.f32.gmra.mxu1 %vm3073_vm10, %v3040_v45  ;;  %v3801_v28 = vsel %vm2786_vm5, %v3745_v54, 0.0  ;;  %v2657_v14 = vsel %vm209_vm0, %v4328_v26, %v7262_v34  ;;  %v837_v34 = vld [vmem:[#allocation2 + $0x291] sm:$0xff] }
 0x376   : > { %v3633_v40 = vadd.f32 %v3632_v63, %v3631_v8  ;;  %v1881_v51 = vpop.permute.xlu1 %1880 }
 0x377   : > { %v3799_v55 = vsel %vm2786_vm5, %v3744_v38, 0.0  ;;  %v2097_v10 = vpop.permute.xlu0 %2096  ;;  %v2876_v23 = vsel %vm2841_vm6, %v2821_v60, %v1881_v51  ;;  %v836_v38 = vld [vmem:[#allocation2 + $0x289] sm:$0xff] }
 0x378   : > { %v3800_v33 = vadd.f32 %v3799_v55, %v3798_v0  ;;  %1910 = vrot.lane.b32.xlu1 %v887_v3, %s4415_s10  ;;  %v3635_v9 = vadd.f32 %v3634_v58, %v3633_v40  ;;  %v7263_v0 = vld [vmem:[#allocation89_spill] sm:$0xff]  ;;  %v2931_v52 = vsel %vm2896_vm7, %v2876_v23, %v2097_v10  ;;  %v7267_v10 = vld [vmem:[#allocation139_spill] sm:$0xff] }
 0x379   : > { %2340 = vrot.lane.b32.xlu0 %v834_v2, %s4417_s7  ;;  %v2712_v39 = vsel %vm2676_vm3, %v2657_v14, %v7263_v0  ;;  %v4329_v51 = vld [vmem:[#allocation2 + $0x1b0] sm:$0xff]  ;;  %v7270_v14 = vld [vmem:[#allocation91_spill] sm:$0xff] }
 0x37a   : > { %v1883_v41 = vpop.permute.xlu1 %1882  ;;  %v3802_v32 = vadd.f32 %v3801_v28, %v3800_v33  ;;  %v2767_v46 = vsel %vm2731_vm4, %v2712_v39, %v7264_v15  ;;  %v7265_v2 = vld [vmem:[#allocation37_spill] sm:$0xff] }
 0x37b   : > { %v2313_v8 = vpop.permute.xlu0 %2312  ;;  %v2822_v21 = vsel %vm2786_vm5, %v2767_v46, %v5598_v31  ;;  %v2658_v4 = vsel %vm209_vm0, %v4329_v51, %v7265_v2  ;;  %v783_v33 = vld [vmem:[#allocation2 + $0x290] sm:$0xff] }
 0x37c   : > { %2126 = vrot.lane.b32.xlu1 %v781_v48, %s4416_s30  ;;  %v4163_v30 = vpop.f32.mrf.mxu0  ;;  %v2986_v11 = vsel %vm2951_vm8, %v2931_v52, %v2313_v8  ;;  %v2877_v36 = vsel %vm2841_vm6, %v2822_v21, %v1883_v41  ;;  %v2713_v58 = vsel %vm2676_vm3, %v2658_v4, %v7266_v56  ;;  %v890_v48 = vld [vmem:[#allocation2 + $0x28a] sm:$0xff]  ;;  %v891_v52 = vld [vmem:[#allocation2 + $0x292] sm:$0xff] }
 0x37d   : > { %v3332_v47 = vadd.f32 %v4163_v30, %v6300_v44  ;;  %2556 = vrot.lane.b32.xlu0 %v888_v53, %s4418_s8  ;;  %v2768_v6 = vsel %vm2731_vm4, %v2713_v58, %v7267_v10  ;;  %v7274_v2 = vld [vmem:[#allocation141_spill] sm:$0xff] }
 0x37e   : > { %v2099_v43 = vpop.permute.xlu1 %2098  ;;  %v3326_v42 = vpop.f32.mrf.mxu0 }
 0x37f   : > { %3580 = vst.msk [vmem:[%s6309_s14 + $0x28] sm:$0xff] %vm2786_vm5, %v3332_v47  ;;  %v3327_v3 = vadd.f32 %v6300_v44, %v3326_v42  ;;  %v2529_v57 = vpop.permute.xlu0 %2528  ;;  %v3747_v59 = vmul.f32 %v3332_v47, %v3332_v47  ;;  %v2932_v29 = vsel %vm2896_vm7, %v2877_v36, %v2099_v43  ;;  %v3638_v19 = vsel %vm2786_vm5, %v3332_v47, 0.0  ;;  %v7271_v43 = vld [vmem:[#allocation142_spill] sm:$0xff] }
 0x380   : > { %v3041_v1 = vsel %vm3006_vm9, %v2986_v11, %v2529_v57  ;;  %2342 = vrot.lane.b32.xlu1 %v835_v27, %s4417_s7 }
 0x381   : > { %3579 = vst.msk [vmem:[%s6309_s14 + $0x20] sm:$0xff] %vm2786_vm5, %v3327_v3  ;;  %v3636_v35 = vsel %vm2786_vm5, %v3327_v3, 0.0  ;;  %v3746_v5 = vmul.f32 %v3327_v3, %v3327_v3  ;;  %2558 = vrot.lane.b32.xlu0 %v889_v22, %s4418_s8  ;;  %4206 = vmatprep.mubr.msk.f32.mxu1 %vm3073_vm10, %v3041_v1  ;;  %v3805_v54 = vsel %vm2786_vm5, %v3747_v59, 0.0 }
 0x382   : > { %v3637_v62 = vadd.f32 %v3636_v35, %v3635_v9  ;;  %v2315_v31 = vpop.permute.xlu1 %2314  ;;  %v7268_v9 = vld [vmem:[#allocation181_spill] sm:$0xff] }
 0x383   : > { %v3803_v20 = vsel %vm2786_vm5, %v3746_v5, 0.0  ;;  %v2987_v24 = vsel %vm2951_vm8, %v2932_v29, %v2315_v31  ;;  %v2531_v61 = vpop.permute.xlu0 %2530  ;;  %v2823_v17 = vsel %vm2786_vm5, %v2768_v6, %v7268_v9  ;;  %v784_v29 = vld [vmem:[#allocation2 + $0x2a0] sm:$0xff] }
 0x384   : > { %v3804_v25 = vadd.f32 %v3803_v20, %v3802_v32  ;;  %v3042_v16 = vsel %vm3006_vm9, %v2987_v24, %v2531_v61  ;;  %1912 = vrot.lane.b32.xlu1 %v888_v53, %s4415_s10  ;;  %v3639_v45 = vadd.f32 %v3638_v19, %v3637_v62  ;;  %v4330_v53 = vld [vmem:[#allocation2 + $0x1b8] sm:$0xff]  ;;  %v7269_v32 = vld [vmem:[#allocation40_spill] sm:$0xff] }
 0x385   : > { %2128 = vrot.lane.b32.xlu0 %v782_v12, %s4416_s30  ;;  %4207 = vmatmul.mubr.msk.f32.gmra.mxu1 %vm3073_vm10, %v3042_v16  ;;  %v2659_v23 = vsel %vm209_vm0, %v4330_v53, %v7269_v32  ;;  %v4331_v16 = vld [vmem:[#allocation2 + $0x1c8] sm:$0xff] }
 0x386   : > { %v1885_v63 = vpop.permute.xlu1 %1884  ;;  %v3806_v40 = vadd.f32 %v3805_v54, %v3804_v25  ;;  %v2714_v47 = vsel %vm2676_vm3, %v2659_v23, %v7270_v14  ;;  %v838_v25 = vld [vmem:[#allocation2 + $0x2a1] sm:$0xff]  ;;  %v839_v32 = vld [vmem:[#allocation2 + $0x2a9] sm:$0xff]  ;;  %v7276_v23 = vld [vmem:[#allocation93_spill] sm:$0xff] }
 0x387   : > { %v2101_v7 = vpop.permute.xlu0 %2100  ;;  %v2878_v37 = vsel %vm2841_vm6, %v2823_v17, %v1885_v63  ;;  %v2769_v42 = vsel %vm2731_vm4, %v2714_v47, %v7271_v43  ;;  %v7277_v14 = vld [vmem:[#allocation144_spill] sm:$0xff] }
 0x388   : > { %1914 = vrot.lane.b32.xlu1 %v889_v22, %s4415_s10  ;;  %v4166_v55 = vpop.f32.mrf.mxu0  ;;  %v2933_v27 = vsel %vm2896_vm7, %v2878_v37, %v2101_v7  ;;  %v2824_v3 = vsel %vm2786_vm5, %v2769_v42, %v5605_v49 }
 0x389   : > { %v3342_v50 = vadd.f32 %v4166_v55, %v6300_v44  ;;  %2344 = vrot.lane.b32.xlu0 %v836_v38, %s4417_s7  ;;  %v785_v55 = vld [vmem:[#allocation2 + $0x2a8] sm:$0xff] }
 0x38a   : > { %v1887_v13 = vpop.permute.xlu1 %1886  ;;  %v3336_v28 = vpop.f32.mrf.mxu0 }
 0x38b   : > { %3582 = vst.msk [vmem:[%s6309_s14 + $0x38] sm:$0xff] %vm2786_vm5, %v3342_v50  ;;  %v3337_v60 = vadd.f32 %v6300_v44, %v3336_v28  ;;  %v2317_v41 = vpop.permute.xlu0 %2316  ;;  %v3749_v8 = vmul.f32 %v3342_v50, %v3342_v50  ;;  %v3642_v22 = vsel %vm2786_vm5, %v3342_v50, 0.0  ;;  %v2879_v59 = vsel %vm2841_vm6, %v2824_v3, %v1887_v13 }
 0x38c   : > { %2130 = vrot.lane.b32.xlu1 %v783_v33, %s4416_s30  ;;  %v2988_v46 = vsel %vm2951_vm8, %v2933_v27, %v2317_v41  ;;  %v892_v33 = vld [vmem:[#allocation2 + $0x2a2] sm:$0xff] }
 0x38d   : > { %3581 = vst.msk [vmem:[%s6309_s14 + $0x30] sm:$0xff] %vm2786_vm5, %v3337_v60  ;;  %v3640_v30 = vsel %vm2786_vm5, %v3337_v60, 0.0  ;;  %v3748_v26 = vmul.f32 %v3337_v60, %v3337_v60  ;;  %2560 = vrot.lane.b32.xlu0 %v890_v48, %s4418_s8  ;;  %v3809_v36 = vsel %vm2786_vm5, %v3749_v8, 0.0  ;;  %v4332_v60 = vld [vmem:[#allocation2 + $0x1d0] sm:$0xff]  ;;  %v7275_v41 = vld [vmem:[#allocation42_spill] sm:$0xff] }
 0x38e   : > { %v3641_v0 = vadd.f32 %v3640_v30, %v3639_v45  ;;  %v2103_v39 = vpop.permute.xlu1 %2102  ;;  %v7272_v45 = vld [vmem:[#allocation39_spill] sm:$0xff]  ;;  %v2661_v53 = vsel %vm209_vm0, %v4332_v60, %v7275_v41 }
 0x38f   : > { %v3807_v15 = vsel %vm2786_vm5, %v3748_v26, 0.0  ;;  %v2533_v11 = vpop.permute.xlu0 %2532  ;;  %v2934_v35 = vsel %vm2896_vm7, %v2879_v59, %v2103_v39  ;;  %v2660_v54 = vsel %vm209_vm0, %v4331_v16, %v7272_v45  ;;  %v2716_v8 = vsel %vm2676_vm3, %v2661_v53, %v7276_v23  ;;  %v7278_v39 = vld [vmem:[#allocation183_spill] sm:$0xff] }
 0x390   : > { %v3808_v57 = vadd.f32 %v3807_v15, %v3806_v40  ;;  %v3043_v21 = vsel %vm3006_vm9, %v2988_v46, %v2533_v11  ;;  %2346 = vrot.lane.b32.xlu1 %v837_v34, %s4417_s7  ;;  %v3643_v1 = vadd.f32 %v3642_v22, %v3641_v0  ;;  %v7273_v40 = vld [vmem:[#allocation90_spill] sm:$0xff]  ;;  %v2771_v47 = vsel %vm2731_vm4, %v2716_v8, %v7277_v14  ;;  %v893_v46 = vld [vmem:[#allocation2 + $0x2aa] sm:$0xff] }
 0x391   : > { %2562 = vrot.lane.b32.xlu0 %v891_v52, %s4418_s8  ;;  %4209 = vmatprep.mubr.msk.f32.mxu1 %vm3073_vm10, %v3043_v21  ;;  %v2715_v51 = vsel %vm2676_vm3, %v2660_v54, %v7273_v40 }
 0x392   : > { %v2319_v5 = vpop.permute.xlu1 %2318  ;;  %v3810_v49 = vadd.f32 %v3809_v36, %v3808_v57  ;;  %v2770_v4 = vsel %vm2731_vm4, %v2715_v51, %v7274_v2  ;;  %v7282_v51 = vld [vmem:[#allocation182_spill] sm:$0xff] }
 0x393   : > { %v2989_v62 = vsel %vm2951_vm8, %v2934_v35, %v2319_v5  ;;  %v2535_v31 = vpop.permute.xlu0 %2534  ;;  %v2825_v10 = vsel %vm2786_vm5, %v2770_v4, %v5600_v18 }
 0x394   : > { %v3044_v12 = vsel %vm3006_vm9, %v2989_v62, %v2535_v31  ;;  %1916 = vrot.lane.b32.xlu1 %v890_v48, %s4415_s10  ;;  %v4169_v19 = vpop.f32.mrf.mxu0  ;;  %v4333_v31 = vld [vmem:[#allocation2 + $0x1e0] sm:$0xff] }
 0x395   : > { %v3352_v20 = vadd.f32 %v4169_v19, %v6300_v44  ;;  %2132 = vrot.lane.b32.xlu0 %v784_v29, %s4416_s30  ;;  %4210 = vmatmul.mubr.msk.f32.gmra.mxu1 %vm3073_vm10, %v3044_v12  ;;  %v7279_v12 = vld [vmem:[#allocation41_spill] sm:$0xff] }
 0x396   : > { %v1889_v24 = vpop.permute.xlu1 %1888  ;;  %v3346_v61 = vpop.f32.mrf.mxu0  ;;  %v2662_v19 = vsel %vm209_vm0, %v4333_v31, %v7279_v12  ;;  %v7290_v12 = vld [vmem:[#allocation184_spill] sm:$0xff] }
 0x397   : > { %3584 = vst.msk [vmem:[%s6309_s14 + $0x48] sm:$0xff] %vm2786_vm5, %v3352_v20  ;;  %v3347_v63 = vadd.f32 %v6300_v44, %v3346_v61  ;;  %v2105_v38 = vpop.permute.xlu0 %2104  ;;  %v3751_v7 = vmul.f32 %v3352_v20, %v3352_v20  ;;  %v3646_v9 = vsel %vm2786_vm5, %v3352_v20, 0.0  ;;  %v2880_v17 = vsel %vm2841_vm6, %v2825_v10, %v1889_v24  ;;  %v4334_v10 = vld [vmem:[#allocation2 + $0x1e8] sm:$0xff] }
 0x398   : > { %1918 = vrot.lane.b32.xlu1 %v891_v52, %s4415_s10  ;;  %v2935_v30 = vsel %vm2896_vm7, %v2880_v17, %v2105_v38  ;;  %v2826_v52 = vsel %vm2786_vm5, %v2771_v47, %v7278_v39  ;;  %s196_s10 = sand.u32 1, %s4400_s16  }
 0x399   : > { %3583 = vst.msk [vmem:[%s6309_s14 + $0x40] sm:$0xff] %vm2786_vm5, %v3347_v63  ;;  %v3644_v56 = vsel %vm2786_vm5, %v3347_v63, 0.0  ;;  %v3750_v58 = vmul.f32 %v3347_v63, %v3347_v63  ;;  %2348 = vrot.lane.b32.xlu0 %v838_v25, %s4417_s7  ;;  %v3813_v18 = vsel %vm2786_vm5, %v3751_v7, 0.0  ;;  %v7280_v25 = vld [vmem:[#allocation92_spill] sm:$0xff]  ;;  %v7281_v63 = vld [vmem:[#allocation143_spill] sm:$0xff]  ;;  %s4023_s20 = sshll.u32 %s196_s10, 1 }
 0x39a   : > { %v3645_v6 = vadd.f32 %v3644_v56, %v3643_v1  ;;  %v1891_v50 = vpop.permute.xlu1 %1890  ;;  %v2717_v16 = vsel %vm2676_vm3, %v2662_v19, %v7280_v25  ;;  %s198_s23 = scalar_lea.vmem [#allocation3], %s4023_s20 }
 0x39b   : > { %v3811_v13 = vsel %vm2786_vm5, %v3750_v58, 0.0  ;;  %v2321_v28 = vpop.permute.xlu0 %2320  ;;  %v2881_v22 = vsel %vm2841_vm6, %v2826_v52, %v1891_v50  ;;  %v2772_v38 = vsel %vm2731_vm4, %v2717_v16, %v7281_v63  ;;  %s3935_s29 = sshll.u32 %s198_s23, 4  ;;  %s3936_s29 = int_to_ptr.vmem [resolvable:$true] %s3935_s29 }
 0x39c   : > { %v3812_v48 = vadd.f32 %v3811_v13, %v3810_v49  ;;  %2134 = vrot.lane.b32.xlu1 %v785_v55, %s4416_s30  ;;  %v3647_v37 = vadd.f32 %v3646_v9, %v3645_v6  ;;  %v2990_v27 = vsel %vm2951_vm8, %v2935_v30, %v2321_v28  ;;  %v2827_v2 = vsel %vm2786_vm5, %v2772_v38, %v7282_v51  ;;  %v7283_v6 = vld [vmem:[#allocation44_spill] sm:$0xff]  ;;  %v7284_v9 = vld [vmem:[#allocation95_spill] sm:$0xff]  ;;  %p4355_p0 = scmp.lt.s32.totalorder %s3936_s29, %s4353_s9 }
 0x39d   : > { %2564 = vrot.lane.b32.xlu0 %v892_v33, %s4418_s8  ;;  %v2663_v50 = vsel %vm209_vm0, %v4334_v10, %v7283_v6 }
 0x39e   : > { %v2107_v26 = vpop.permute.xlu1 %2106  ;;  %v3814_v34 = vadd.f32 %v3813_v18, %v3812_v48  ;;  %v2718_v17 = vsel %vm2676_vm3, %v2663_v50, %v7284_v9 }
 0x39f   : > { %v2537_v0 = vpop.permute.xlu0 %2536  ;;  %v2936_v11 = vsel %vm2896_vm7, %v2881_v22, %v2107_v26 }
 0x3a0   : > { %v3045_v43 = vsel %vm3006_vm9, %v2990_v27, %v2537_v0  ;;  %2350 = vrot.lane.b32.xlu1 %v839_v32, %s4417_s7  ;;  %v4172_v42 = vpop.f32.mrf.mxu0  ;;  %v7286_v32 = vld [vmem:[#allocation185_spill] sm:$0xff]  ;;  %s3919_s7 = scalar_lea.sflag [#allocation4], %s196_s10 }
 0x3a1   : > { %v3362_v15 = vadd.f32 %v4172_v42, %v6300_v44  ;;  %4212 = vmatprep.mubr.msk.f32.mxu1 %vm3073_vm10, %v3045_v43 }
 0x3a2   : > { %v2323_v3 = vpop.permute.xlu1 %2322  ;;  %v3356_v57 = vpop.f32.mrf.mxu0 }
 0x3a3   : > { %3586 = vst.msk [vmem:[%s6309_s14 + $0x58] sm:$0xff] %vm2786_vm5, %v3362_v15  ;;  %v2991_v21 = vsel %vm2951_vm8, %v2936_v11, %v2323_v3  ;;  %v3357_v1 = vadd.f32 %v6300_v44, %v3356_v57  ;;  %v2539_v36 = vpop.permute.xlu0 %2538  ;;  %v3753_v35 = vmul.f32 %v3362_v15, %v3362_v15  ;;  %v3650_v20 = vsel %vm2786_vm5, %v3362_v15, 0.0 }
 0x3a4   : > { %v3046_v59 = vsel %vm3006_vm9, %v2991_v21, %v2539_v36  ;;  %2566 = vrot.lane.b32.xlu1 %v893_v46, %s4418_s8  ;;  %v4335_v21 = vld [vmem:[#allocation2 + $0x1f8] sm:$0xff]  ;;  %s4348_s8 = scalar_lea.vmem %s3936_s29, 32 }
 0x3a5   : > { %3585 = vst.msk [vmem:[%s6309_s14 + $0x50] sm:$0xff] %vm2786_vm5, %v3357_v1  ;;  %v3648_v5 = vsel %vm2786_vm5, %v3357_v1, 0.0  ;;  %v3752_v29 = vmul.f32 %v3357_v1, %v3357_v1  ;;  %4213 = vmatmul.mubr.msk.f32.gmra.mxu1 %vm3073_vm10, %v3046_v59  ;;  %v3817_v40 = vsel %vm2786_vm5, %v3753_v35, 0.0  ;;  %v7287_v1 = vld [vmem:[#allocation43_spill] sm:$0xff]  ;;  %v7288_v35 = vld [vmem:[#allocation94_spill] sm:$0xff]  ;;  %p4349_p11 = scmp.ne.s32.totalorder %s3936_s29, %s4348_s8  ;;  %p4356_p1 = scmp.lt.s32.totalorder %s4354_s11, %s4348_s8 }
 0x3a6   : > { %v3649_v49 = vadd.f32 %v3648_v5, %v3647_v37  ;;  %v1893_v62 = vpop.permute.xlu1 %1892  ;;  %v7285_v37 = vld [vmem:[#allocation146_spill] sm:$0xff]  ;;  %v2664_v36 = vsel %vm209_vm0, %v4335_v21, %v7287_v1 }
 0x3a7   : > { %v3815_v24 = vsel %vm2786_vm5, %v3752_v29, 0.0  ;;  %v2109_v61 = vpop.permute.xlu0 %2108  ;;  %v2882_v56 = vsel %vm2841_vm6, %v2827_v2, %v1893_v62  ;;  %v2773_v60 = vsel %vm2731_vm4, %v2718_v17, %v7285_v37  ;;  %v2719_v5 = vsel %vm2676_vm3, %v2664_v36, %v7288_v35  ;;  %v7292_v2 = vld [vmem:[#allocation97_spill] sm:$0xff]  ;;  %v7294_v17 = vld [vmem:[#allocation187_spill] sm:$0xff]  ;;  %v7298_v21 = vld [vmem:[#allocation186_spill] sm:$0xff]  ;;  %p4350_p12 = pnand %p4349_p11, %p4483_p5  ;;  %p4357_p2 = por %p4356_p1, %p4355_p0 }
 0x3a8   : > { %v3816_v45 = vadd.f32 %v3815_v24, %v3814_v34  ;;  %v3651_v54 = vadd.f32 %v3650_v20, %v3649_v49  ;;  %v2937_v13 = vsel %vm2896_vm7, %v2882_v56, %v2109_v61  ;;  %v2828_v23 = vsel %vm2786_vm5, %v2773_v60, %v7286_v32  ;;  %v7289_v49 = vld [vmem:[#allocation145_spill] sm:$0xff] }
 0x3a9   : > { %v2774_v62 = vsel %vm2731_vm4, %v2719_v5, %v7289_v49  ;;  %p4351_p13 = pneg %p4350_p12 }
 0x3aa   : > { %v1895_v4 = vpop.permute.xlu1 %1894  ;;  %v3818_v7 = vadd.f32 %v3817_v40, %v3816_v45  ;;  %v2829_v19 = vsel %vm2786_vm5, %v2774_v62, %v7290_v12  ;;  %v4336_v45 = vld [vmem:[#allocation2 + $0x200] sm:$0xff]  ;;  %v4338_v12 = vld [vmem:[#allocation2 + $0x218] sm:$0xff] }
 0x3ab   : > { %v2325_v58 = vpop.permute.xlu0 %2324  ;;  %v2883_v30 = vsel %vm2841_vm6, %v2828_v23, %v1895_v4  ;;  %p4358_p3 = pnand %p4357_p2, %p4351_p13 }
 0x3ac   : > { %v4175_v55 = vpop.f32.mrf.mxu0  ;;  %v2992_v41 = vsel %vm2951_vm8, %v2937_v13, %v2325_v58 }
 0x3ad   : > { %v3372_v33 = vadd.f32 %v4175_v55, %v6300_v44  ;;  %v7293_v55 = vld [vmem:[#allocation148_spill] sm:$0xff] }
 0x3ae   : > { %v2111_v28 = vpop.permute.xlu1 %2110  ;;  %v3366_v48 = vpop.f32.mrf.mxu0 }
 0x3af   : > { %3588 = vst.msk [vmem:[%s6309_s14 + $0x68] sm:$0xff] %vm2786_vm5, %v3372_v33  ;;  %v3367_v53 = vadd.f32 %v6300_v44, %v3366_v48  ;;  %v2541_v18 = vpop.permute.xlu0 %2540  ;;  %v3755_v26 = vmul.f32 %v3372_v33, %v3372_v33  ;;  %v2938_v47 = vsel %vm2896_vm7, %v2883_v30, %v2111_v28  ;;  %v3654_v39 = vsel %vm2786_vm5, %v3372_v33, 0.0 }
 0x3b0   : > { %v3047_v8 = vsel %vm3006_vm9, %v2992_v41, %v2541_v18 }
 0x3b1   : > { %3587 = vst.msk [vmem:[%s6309_s14 + $0x60] sm:$0xff] %vm2786_vm5, %v3367_v53  ;;  %v3652_v34 = vsel %vm2786_vm5, %v3367_v53, 0.0  ;;  %v3754_v14 = vmul.f32 %v3367_v53, %v3367_v53  ;;  %4215 = vmatprep.mubr.msk.f32.mxu1 %vm3073_vm10, %v3047_v8  ;;  %v3821_v11 = vsel %vm2786_vm5, %v3755_v26, 0.0 }
 0x3b2   : > { %v3653_v27 = vadd.f32 %v3652_v34, %v3651_v54  ;;  %v2327_v0 = vpop.permute.xlu1 %2326  ;;  %v7291_v54 = vld [vmem:[#allocation46_spill] sm:$0xff] }
 0x3b3   : > { %v3819_v52 = vsel %vm2786_vm5, %v3754_v14, 0.0  ;;  %v2993_v43 = vsel %vm2951_vm8, %v2938_v47, %v2327_v0  ;;  %v2543_v42 = vpop.permute.xlu0 %2542  ;;  %v2665_v63 = vsel %vm209_vm0, %v4336_v45, %v7291_v54  ;;  %v7295_v0 = vld [vmem:[#allocation45_spill] sm:$0xff] }
 0x3b4   : > { %v3820_v22 = vadd.f32 %v3819_v52, %v3818_v7  ;;  %v3048_v15 = vsel %vm3006_vm9, %v2993_v43, %v2543_v42  ;;  %v3655_v46 = vadd.f32 %v3654_v39, %v3653_v27  ;;  %v2720_v4 = vsel %vm2676_vm3, %v2665_v63, %v7292_v2  ;;  %v4337_v27 = vld [vmem:[#allocation2 + $0x210] sm:$0xff]  ;;  %v7301_v63 = vld [vmem:[#allocation150_spill] sm:$0xff] }
 0x3b5   : > { %4216 = vmatmul.mubr.msk.f32.gmra.mxu1 %vm3073_vm10, %v3048_v15  ;;  %v2775_v10 = vsel %vm2731_vm4, %v2720_v4, %v7293_v55  ;;  %v2666_v39 = vsel %vm209_vm0, %v4337_v27, %v7295_v0  ;;  %v7296_v42 = vld [vmem:[#allocation96_spill] sm:$0xff]  ;;  %v7297_v15 = vld [vmem:[#allocation147_spill] sm:$0xff]  ;;  %v7302_v2 = vld [vmem:[#allocation189_spill] sm:$0xff] }
 0x3b6   : > { %v1897_v3 = vpop.permute.xlu1 %1896  ;;  %v3822_v57 = vadd.f32 %v3821_v11, %v3820_v22  ;;  %v2830_v13 = vsel %vm2786_vm5, %v2775_v10, %v7294_v17  ;;  %v2721_v22 = vsel %vm2676_vm3, %v2666_v39, %v7296_v42  ;;  %v7305_v27 = vld [vmem:[#allocation149_spill] sm:$0xff] }
 0x3b7   : > { %v2113_v59 = vpop.permute.xlu0 %2112  ;;  %v2884_v61 = vsel %vm2841_vm6, %v2829_v19, %v1897_v3  ;;  %v7299_v19 = vld [vmem:[#allocation48_spill] sm:$0xff] }
 0x3b8   : > { %v4178_v29 = vpop.f32.mrf.mxu0  ;;  %v2939_v7 = vsel %vm2896_vm7, %v2884_v61, %v2113_v59  ;;  %v7300_v61 = vld [vmem:[#allocation99_spill] sm:$0xff] }
 0x3b9   : > { %v3382_v31 = vadd.f32 %v4178_v29, %v6300_v44 }
 0x3ba   : > { %v1899_v20 = vpop.permute.xlu1 %1898  ;;  %v3376_v24 = vpop.f32.mrf.mxu0 }
 0x3bb   : > { %3590 = vst.msk [vmem:[%s6309_s14 + $0x78] sm:$0xff] %vm2786_vm5, %v3382_v31  ;;  %v3377_v25 = vadd.f32 %v6300_v44, %v3376_v24  ;;  %v2329_v16 = vpop.permute.xlu0 %2328  ;;  %v3757_v38 = vmul.f32 %v3382_v31, %v3382_v31  ;;  %v3658_v6 = vsel %vm2786_vm5, %v3382_v31, 0.0  ;;  %v2885_v41 = vsel %vm2841_vm6, %v2830_v13, %v1899_v20 }
 0x3bc   : > { %v2994_v33 = vsel %vm2951_vm8, %v2939_v7, %v2329_v16  ;;  %v2667_v20 = vsel %vm209_vm0, %v4338_v12, %v7299_v19 }
 0x3bd   : > { %3589 = vst.msk [vmem:[%s6309_s14 + $0x70] sm:$0xff] %vm2786_vm5, %v3377_v25  ;;  %v3656_v40 = vsel %vm2786_vm5, %v3377_v25, 0.0  ;;  %v3756_v51 = vmul.f32 %v3377_v25, %v3377_v25  ;;  %v3825_v60 = vsel %vm2786_vm5, %v3757_v38, 0.0  ;;  %v2722_v25 = vsel %vm2676_vm3, %v2667_v20, %v7300_v61  ;;  %v7310_v20 = vld [vmem:[#allocation191_spill] sm:$0xff] }
 0x3be   : > { %v3657_v56 = vadd.f32 %v3656_v40, %v3655_v46  ;;  %v2115_v58 = vpop.permute.xlu1 %2114  ;;  %v2776_v46 = vsel %vm2731_vm4, %v2721_v22, %v7297_v15  ;;  %v2777_v38 = vsel %vm2731_vm4, %v2722_v25, %v7301_v63 }
 0x3bf   : > { %v3823_v50 = vsel %vm2786_vm5, %v3756_v51, 0.0  ;;  %v2545_v9 = vpop.permute.xlu0 %2544  ;;  %v2940_v53 = vsel %vm2896_vm7, %v2885_v41, %v2115_v58  ;;  %v2831_v1 = vsel %vm2786_vm5, %v2776_v46, %v7298_v21  ;;  %v2832_v4 = vsel %vm2786_vm5, %v2777_v38, %v7302_v2 }
 0x3c0   : > { %v3824_v28 = vadd.f32 %v3823_v50, %v3822_v57  ;;  %v3049_v48 = vsel %vm3006_vm9, %v2994_v33, %v2545_v9  ;;  %v3659_v37 = vadd.f32 %v3658_v6, %v3657_v56 }
 0x3c1   : > { %4218 = vmatprep.mubr.msk.f32.mxu1 %vm3073_vm10, %v3049_v48 }
 0x3c2   : > { %v2331_v18 = vpop.permute.xlu1 %2330  ;;  %v3826_v32 = vadd.f32 %v3825_v60, %v3824_v28 }
 0x3c3   : > { %v2995_v23 = vsel %vm2951_vm8, %v2940_v53, %v2331_v18  ;;  %v2547_v8 = vpop.permute.xlu0 %2546  ;;  %v4339_v53 = vld [vmem:[#allocation2 + $0x228] sm:$0xff] }
 0x3c4   : > { %v3050_v30 = vsel %vm3006_vm9, %v2995_v23, %v2547_v8  ;;  %v4181_v26 = vpop.f32.mrf.mxu0  ;;  %v7303_v18 = vld [vmem:[#allocation47_spill] sm:$0xff] }
 0x3c5   : > { %v3392_v34 = vadd.f32 %v4181_v26, %v6300_v44  ;;  %4219 = vmatmul.mubr.msk.f32.gmra.mxu1 %vm3073_vm10, %v3050_v30  ;;  %v7304_v26 = vld [vmem:[#allocation98_spill] sm:$0xff] }
 0x3c6   : > { %v1901_v14 = vpop.permute.xlu1 %1900  ;;  %v3386_v47 = vpop.f32.mrf.mxu0 }
 0x3c7   : > { %3592 = vst.msk [vmem:[%s6309_s14 + $0x88] sm:$0xff] %vm2786_vm5, %v3392_v34  ;;  %v3387_v52 = vadd.f32 %v6300_v44, %v3386_v47  ;;  %v2117_v43 = vpop.permute.xlu0 %2116  ;;  %v3759_v11 = vmul.f32 %v3392_v34, %v3392_v34  ;;  %v3662_v35 = vsel %vm2786_vm5, %v3392_v34, 0.0  ;;  %v2886_v5 = vsel %vm2841_vm6, %v2831_v1, %v1901_v14 }
 0x3c8   : > { %v2941_v16 = vsel %vm2896_vm7, %v2886_v5, %v2117_v43 }
 0x3c9   : > { %3591 = vst.msk [vmem:[%s6309_s14 + $0x80] sm:$0xff] %vm2786_vm5, %v3387_v52  ;;  %v3660_v3 = vsel %vm2786_vm5, %v3387_v52, 0.0  ;;  %v3758_v57 = vmul.f32 %v3387_v52, %v3387_v52  ;;  %v3829_v24 = vsel %vm2786_vm5, %v3759_v11, 0.0  ;;  %v7306_v52 = vld [vmem:[#allocation188_spill] sm:$0xff] }
 0x3ca   : > { %v3661_v36 = vadd.f32 %v3660_v3, %v3659_v37  ;;  %v1903_v59 = vpop.permute.xlu1 %1902  ;;  %v4340_v3 = vld [vmem:[#allocation2 + $0x230] sm:$0xff] }
 0x3cb   : > { %v3827_v29 = vsel %vm2786_vm5, %v3758_v57, 0.0  ;;  %v2333_v49 = vpop.permute.xlu0 %2332  ;;  %v2887_v58 = vsel %vm2841_vm6, %v2832_v4, %v1903_v59  ;;  %v7307_v57 = vld [vmem:[#allocation50_spill] sm:$0xff] }
 0x3cc   : > { %v3828_v62 = vadd.f32 %v3827_v29, %v3826_v32  ;;  %v3663_v31 = vadd.f32 %v3662_v35, %v3661_v36  ;;  %v2996_v40 = vsel %vm2951_vm8, %v2941_v16, %v2333_v49  ;;  %v2668_v32 = vsel %vm209_vm0, %v4339_v53, %v7303_v18  ;;  %v7308_v36 = vld [vmem:[#allocation101_spill] sm:$0xff]  ;;  %v7309_v49 = vld [vmem:[#allocation152_spill] sm:$0xff]  ;;  %v7313_v18 = vld [vmem:[#allocation151_spill] sm:$0xff] }
 0x3cd   : > { %v2723_v34 = vsel %vm2676_vm3, %v2668_v32, %v7304_v26  ;;  %v2669_v21 = vsel %vm209_vm0, %v4340_v3, %v7307_v57 }
 0x3ce   : > { %v2119_v45 = vpop.permute.xlu1 %2118  ;;  %v3830_v54 = vadd.f32 %v3829_v24, %v3828_v62  ;;  %v2778_v0 = vsel %vm2731_vm4, %v2723_v34, %v7305_v27  ;;  %v2724_v59 = vsel %vm2676_vm3, %v2669_v21, %v7308_v36  ;;  %v7317_v36 = vld [vmem:[#allocation154_spill] sm:$0xff] }
 0x3cf   : > { %v2549_v51 = vpop.permute.xlu0 %2548  ;;  %v2942_v10 = vsel %vm2896_vm7, %v2887_v58, %v2119_v45  ;;  %v2833_v43 = vsel %vm2786_vm5, %v2778_v0, %v7306_v52  ;;  %v2779_v62 = vsel %vm2731_vm4, %v2724_v59, %v7309_v49  ;;  %v7318_v49 = vld [vmem:[#allocation193_spill] sm:$0xff] }
 0x3d0   : > { %v3051_v7 = vsel %vm3006_vm9, %v2996_v40, %v2549_v51  ;;  %v4184_v56 = vpop.f32.mrf.mxu0  ;;  %v2834_v24 = vsel %vm2786_vm5, %v2779_v62, %v7310_v20 }
 0x3d1   : > { %v3402_v55 = vadd.f32 %v4184_v56, %v6300_v44  ;;  %4221 = vmatprep.mubr.msk.f32.mxu1 %vm3073_vm10, %v3051_v7 }
 0x3d2   : > { %v2335_v6 = vpop.permute.xlu1 %2334  ;;  %v3396_v50 = vpop.f32.mrf.mxu0 }
 0x3d3   : > { %3594 = vst.msk [vmem:[%s6309_s14 + $0x98] sm:$0xff] %vm2786_vm5, %v3402_v55  ;;  %v2997_v33 = vsel %vm2951_vm8, %v2942_v10, %v2335_v6  ;;  %v3397_v9 = vadd.f32 %v6300_v44, %v3396_v50  ;;  %v2551_v17 = vpop.permute.xlu0 %2550  ;;  %v3761_v28 = vmul.f32 %v3402_v55, %v3402_v55  ;;  %v3666_v23 = vsel %vm2786_vm5, %v3402_v55, 0.0 }
 0x3d4   : > { %v3052_v13 = vsel %vm3006_vm9, %v2997_v33, %v2551_v17  ;;  %v4341_v17 = vld [vmem:[#allocation2 + $0x240] sm:$0xff] }
 0x3d5   : > { %3593 = vst.msk [vmem:[%s6309_s14 + $0x90] sm:$0xff] %vm2786_vm5, %v3397_v9  ;;  %v3664_v48 = vsel %vm2786_vm5, %v3397_v9, 0.0  ;;  %v3760_v37 = vmul.f32 %v3397_v9, %v3397_v9  ;;  %4222 = vmatmul.mubr.msk.f32.gmra.mxu1 %vm3073_vm10, %v3052_v13  ;;  %v3833_v39 = vsel %vm2786_vm5, %v3761_v28, 0.0  ;;  %v7311_v13 = vld [vmem:[#allocation49_spill] sm:$0xff] }
 0x3d6   : > { %v3665_v60 = vadd.f32 %v3664_v48, %v3663_v31  ;;  %v1905_v41 = vpop.permute.xlu1 %1904  ;;  %v2670_v28 = vsel %vm209_vm0, %v4341_v17, %v7311_v13 }
 0x3d7   : > { %v3831_v8 = vsel %vm2786_vm5, %v3760_v37, 0.0  ;;  %v2121_v30 = vpop.permute.xlu0 %2120  ;;  %v2888_v15 = vsel %vm2841_vm6, %v2833_v43, %v1905_v41  ;;  %v4342_v43 = vld [vmem:[#allocation2 + $0x248] sm:$0xff] }
 0x3d8   : > { %v3832_v14 = vadd.f32 %v3831_v8, %v3830_v54  ;;  %v3667_v47 = vadd.f32 %v3666_v23, %v3665_v60  ;;  %v2943_v35 = vsel %vm2896_vm7, %v2888_v15, %v2121_v30  ;;  %v7312_v60 = vld [vmem:[#allocation100_spill] sm:$0xff]  ;;  %v7314_v23 = vld [vmem:[#allocation190_spill] sm:$0xff] }
 0x3d9   : > { %v2725_v41 = vsel %vm2676_vm3, %v2670_v28, %v7312_v60  ;;  %v4344_v60 = vld [vmem:[#allocation2 + $0x260] sm:$0xff] }
 0x3da   : > { %v1907_v42 = vpop.permute.xlu1 %1906  ;;  %v3834_v22 = vadd.f32 %v3833_v39, %v3832_v14  ;;  %v2780_v32 = vsel %vm2731_vm4, %v2725_v41, %v7313_v18  ;;  %v7323_v41 = vld [vmem:[#allocation54_spill] sm:$0xff] }
 0x3db   : > { %v2337_v46 = vpop.permute.xlu0 %2336  ;;  %v2889_v25 = vsel %vm2841_vm6, %v2834_v24, %v1907_v42  ;;  %v2835_v8 = vsel %vm2786_vm5, %v2780_v32, %v7314_v23  ;;  %v7315_v42 = vld [vmem:[#allocation52_spill] sm:$0xff]  ;;  %v7324_v23 = vld [vmem:[#allocation105_spill] sm:$0xff] }
 0x3dc   : > { %v4187_v11 = vpop.f32.mrf.mxu0  ;;  %v2998_v31 = vsel %vm2951_vm8, %v2943_v35, %v2337_v46 }
 0x3dd   : > { %v3412_v1 = vadd.f32 %v4187_v11, %v6300_v44  ;;  %v7316_v11 = vld [vmem:[#allocation103_spill] sm:$0xff] }
 0x3de   : > { %v2123_v5 = vpop.permute.xlu1 %2122  ;;  %v3406_v29 = vpop.f32.mrf.mxu0 }
 0x3df   : > { %3596 = vst.msk [vmem:[%s6309_s14 + $0xa8] sm:$0xff] %vm2786_vm5, %v3412_v1  ;;  %v3407_v12 = vadd.f32 %v6300_v44, %v3406_v29  ;;  %v2553_v19 = vpop.permute.xlu0 %2552  ;;  %v3763_v16 = vmul.f32 %v3412_v1, %v3412_v1  ;;  %v2944_v63 = vsel %vm2896_vm7, %v2889_v25, %v2123_v5  ;;  %v3670_v51 = vsel %vm2786_vm5, %v3412_v1, 0.0 }
 0x3e0   : > { %v3053_v61 = vsel %vm3006_vm9, %v2998_v31, %v2553_v19 }
 0x3e1   : > { %3595 = vst.msk [vmem:[%s6309_s14 + $0xa0] sm:$0xff] %vm2786_vm5, %v3407_v12  ;;  %v3668_v45 = vsel %vm2786_vm5, %v3407_v12, 0.0  ;;  %v3762_v54 = vmul.f32 %v3407_v12, %v3407_v12  ;;  %4224 = vmatprep.mubr.msk.f32.mxu1 %vm3073_vm10, %v3053_v61  ;;  %v3837_v10 = vsel %vm2786_vm5, %v3763_v16, 0.0 }
 0x3e2   : > { %v3669_v38 = vadd.f32 %v3668_v45, %v3667_v47  ;;  %v2339_v40 = vpop.permute.xlu1 %2338 }
 0x3e3   : > { %v3835_v2 = vsel %vm2786_vm5, %v3762_v54, 0.0  ;;  %v2999_v4 = vsel %vm2951_vm8, %v2944_v63, %v2339_v40  ;;  %v2555_v7 = vpop.permute.xlu0 %2554  ;;  %v4343_v63 = vld [vmem:[#allocation2 + $0x258] sm:$0xff] }
 0x3e4   : > { %v3836_v56 = vadd.f32 %v3835_v2, %v3834_v22  ;;  %v3054_v58 = vsel %vm3006_vm9, %v2999_v4, %v2555_v7  ;;  %v3671_v55 = vadd.f32 %v3670_v51, %v3669_v38  ;;  %v2671_v22 = vsel %vm209_vm0, %v4342_v43, %v7315_v42  ;;  %v7319_v38 = vld [vmem:[#allocation51_spill] sm:$0xff]  ;;  %v7320_v4 = vld [vmem:[#allocation102_spill] sm:$0xff] }
 0x3e5   : > { %v4190_v6 = vpop.f32.mrf.mxu0  ;;  %4225 = vmatmul.mubr.msk.f32.gmra.mxu1 %vm3073_vm10, %v3054_v58  ;;  %v2726_v3 = vsel %vm2676_vm3, %v2671_v22, %v7316_v11  ;;  %v2672_v40 = vsel %vm209_vm0, %v4343_v63, %v7319_v38  ;;  %v7321_v58 = vld [vmem:[#allocation153_spill] sm:$0xff] }
 0x3e6   : > { %v3422_v50 = vadd.f32 %v4190_v6, %v6300_v44  ;;  %v1909_v33 = vpop.permute.xlu1 %1908  ;;  %v3838_v9 = vadd.f32 %v3837_v10, %v3836_v56  ;;  %v2781_v59 = vsel %vm2731_vm4, %v2726_v3, %v7317_v36  ;;  %v2727_v7 = vsel %vm2676_vm3, %v2672_v40, %v7320_v4  ;;  %v7322_v10 = vld [vmem:[#allocation192_spill] sm:$0xff] }
 0x3e7   : > { %v2125_v48 = vpop.permute.xlu0 %2124  ;;  %v3416_v37 = vpop.f32.mrf.mxu0  ;;  %v2890_v47 = vsel %vm2841_vm6, %v2835_v8, %v1909_v33  ;;  %v2836_v62 = vsel %vm2786_vm5, %v2781_v59, %v7318_v49 }
 0x3e8   : > { %3598 = vst.msk [vmem:[%s6309_s14 + $0xb8] sm:$0xff] %vm2786_vm5, %v3422_v50  ;;  %v3417_v53 = vadd.f32 %v6300_v44, %v3416_v37  ;;  %v3765_v30 = vmul.f32 %v3422_v50, %v3422_v50  ;;  %v3674_v39 = vsel %vm2786_vm5, %v3422_v50, 0.0  ;;  %v2945_v21 = vsel %vm2896_vm7, %v2890_v47, %v2125_v48 }
 0x3ea   : > { %3597 = vst.msk [vmem:[%s6309_s14 + $0xb0] sm:$0xff] %vm2786_vm5, %v3417_v53  ;;  %v3672_v26 = vsel %vm2786_vm5, %v3417_v53, 0.0  ;;  %v3764_v34 = vmul.f32 %v3417_v53, %v3417_v53  ;;  %v1911_v14 = vpop.permute.xlu1 %1910  ;;  %v3841_v57 = vsel %vm2786_vm5, %v3765_v30, 0.0  ;;  %v2673_v53 = vsel %vm209_vm0, %v4344_v60, %v7323_v41 }
 0x3eb   : > { %v3673_v27 = vadd.f32 %v3672_v26, %v3671_v55  ;;  %v2341_v0 = vpop.permute.xlu0 %2340  ;;  %v2891_v12 = vsel %vm2841_vm6, %v2836_v62, %v1911_v14  ;;  %v2782_v55 = vsel %vm2731_vm4, %v2727_v7, %v7321_v58  ;;  %v2728_v8 = vsel %vm2676_vm3, %v2673_v53, %v7324_v23  ;;  %v7325_v14 = vld [vmem:[#allocation156_spill] sm:$0xff] }
 0x3ec   : > { %v3839_v52 = vsel %vm2786_vm5, %v3764_v34, 0.0  ;;  %v3000_v35 = vsel %vm2951_vm8, %v2945_v21, %v2341_v0  ;;  %v2837_v6 = vsel %vm2786_vm5, %v2782_v55, %v7322_v10  ;;  %v2783_v47 = vsel %vm2731_vm4, %v2728_v8, %v7325_v14  ;;  %v7334_v53 = vld [vmem:[#allocation196_spill] sm:$0xff] }
 0x3ed   : > { %v3840_v15 = vadd.f32 %v3839_v52, %v3838_v9  ;;  %v3675_v46 = vadd.f32 %v3674_v39, %v3673_v27  ;;  %v7326_v52 = vld [vmem:[#allocation195_spill] sm:$0xff] }
 0x3ee   : > { %v2127_v1 = vpop.permute.xlu1 %2126  ;;  %v2838_v43 = vsel %vm2786_vm5, %v2783_v47, %v7326_v52 }
 0x3ef   : > { %v2557_v5 = vpop.permute.xlu0 %2556  ;;  %v3842_v29 = vadd.f32 %v3841_v57, %v3840_v15  ;;  %v2946_v19 = vsel %vm2896_vm7, %v2891_v12, %v2127_v1  ;;  %v6737_v1 = vld [vmem:[%s6947_s2] ss:$0 sm:$0xff] }
 0x3f0   : > { %v3055_v31 = vsel %vm3006_vm9, %v3000_v35, %v2557_v5  ;;  %v4346_v35 = vld [vmem:[#allocation2 + $0x270] sm:$0xff] }
 0x3f1   : > { %4227 = vmatprep.mubr.msk.f32.mxu1 %vm3073_vm10, %v3055_v31  ;;  %v7327_v5 = vld [vmem:[#allocation53_spill] sm:$0xff]  ;;  %v7328_v31 = vld [vmem:[#allocation104_spill] sm:$0xff] }
 0x3f2   : > { %v2343_v20 = vpop.permute.xlu1 %2342 }
 0x3f3   : > { %v3001_v24 = vsel %vm2951_vm8, %v2946_v19, %v2343_v20  ;;  %v2559_v61 = vpop.permute.xlu0 %2558  ;;  %v7329_v20 = vld [vmem:[#allocation155_spill] sm:$0xff] }
 0x3f4   : > { %v3056_v25 = vsel %vm3006_vm9, %v3001_v24, %v2559_v61  ;;  %v7330_v61 = vld [vmem:[#allocation194_spill] sm:$0xff] }
 0x3f5   : > { %v4193_v16 = vpop.f32.mrf.mxu0  ;;  %4228 = vmatmul.mubr.msk.f32.gmra.mxu1 %vm3073_vm10, %v3056_v25 }
 0x3f6   : > { %v3432_v45 = vadd.f32 %v4193_v16, %v6300_v44  ;;  %v1913_v54 = vpop.permute.xlu1 %1912 }
 0x3f7   : > { %v2129_v51 = vpop.permute.xlu0 %2128  ;;  %v3426_v2 = vpop.f32.mrf.mxu0  ;;  %v2892_v13 = vsel %vm2841_vm6, %v2837_v6, %v1913_v54 }
 0x3f8   : > { %3600 = vst.msk [vmem:[%s6309_s14 + $0xc8] sm:$0xff] %vm2786_vm5, %v3432_v45  ;;  %v3427_v56 = vadd.f32 %v6300_v44, %v3426_v2  ;;  %v3767_v50 = vmul.f32 %v3432_v45, %v3432_v45  ;;  %v3678_v37 = vsel %vm2786_vm5, %v3432_v45, 0.0  ;;  %v2947_v26 = vsel %vm2896_vm7, %v2892_v13, %v2129_v51 }
 0x3fa   : > { %3599 = vst.msk [vmem:[%s6309_s14 + $0xc0] sm:$0xff] %vm2786_vm5, %v3427_v56  ;;  %v3676_v33 = vsel %vm2786_vm5, %v3427_v56, 0.0  ;;  %v3766_v9 = vmul.f32 %v3427_v56, %v3427_v56  ;;  %v1915_v17 = vpop.permute.xlu1 %1914  ;;  %v3845_v30 = vsel %vm2786_vm5, %v3767_v50, 0.0 }
 0x3fb   : > { %v3677_v28 = vadd.f32 %v3676_v33, %v3675_v46  ;;  %v2345_v48 = vpop.permute.xlu0 %2344  ;;  %v2893_v22 = vsel %vm2841_vm6, %v2838_v43, %v1915_v17  ;;  %v7331_v17 = vld [vmem:[#allocation55_spill] sm:$0xff] }
 0x3fc   : > { %v3843_v44 = vsel %vm2786_vm5, %v3766_v9, 0.0  ;;  %v3002_v27 = vsel %vm2951_vm8, %v2947_v26, %v2345_v48  ;;  %v4347_v9 = vld [vmem:[#allocation2 + $0x278] sm:$0xff] }
 0x3fd   : > { %v3844_v18 = vadd.f32 %v3843_v44, %v3842_v29  ;;  %v3679_v32 = vadd.f32 %v3678_v37, %v3677_v28  ;;  %v2674_v29 = vsel %vm209_vm0, %v4346_v35, %v7327_v5  ;;  %v2675_v13 = vsel %vm209_vm0, %v4347_v9, %v7331_v17  ;;  %v7332_v48 = vld [vmem:[#allocation106_spill] sm:$0xff]  ;;  %v7333_v44 = vld [vmem:[#allocation157_spill] sm:$0xff] }
 0x3fe   : > { %v2131_v34 = vpop.permute.xlu1 %2130  ;;  %v2729_v12 = vsel %vm2676_vm3, %v2674_v29, %v7328_v31  ;;  %v2730_v37 = vsel %vm2676_vm3, %v2675_v13, %v7332_v48 }
 0x3ff   : > { %v2561_v0 = vpop.permute.xlu0 %2560  ;;  %v3846_v39 = vadd.f32 %v3845_v30, %v3844_v18  ;;  %v2948_v15 = vsel %vm2896_vm7, %v2893_v22, %v2131_v34  ;;  %v2784_v24 = vsel %vm2731_vm4, %v2729_v12, %v7329_v20  ;;  %v2785_v60 = vsel %vm2731_vm4, %v2730_v37, %v7333_v44 }
 0x400   : > { %v3057_v42 = vsel %vm3006_vm9, %v3002_v27, %v2561_v0  ;;  %v2839_v25 = vsel %vm2786_vm5, %v2784_v24, %v7330_v61  ;;  %v2840_v18 = vsel %vm2786_vm5, %v2785_v60, %v7334_v53 }
 0x401   : > { %4230 = vmatprep.mubr.msk.f32.mxu1 %vm3073_vm10, %v3057_v42 }
 0x402   : > { %v2347_v46 = vpop.permute.xlu1 %2346 }
 0x403   : > { %v3003_v11 = vsel %vm2951_vm8, %v2948_v15, %v2347_v46  ;;  %v2563_v3 = vpop.permute.xlu0 %2562 }
 0x404   : > { %v3058_v57 = vsel %vm3006_vm9, %v3003_v11, %v2563_v3 }
 0x405   : > { %v4196_v21 = vpop.f32.mrf.mxu0  ;;  %4231 = vmatmul.mubr.msk.f32.gmra.mxu1 %vm3073_vm10, %v3058_v57 }
 0x406   : > { %v3442_v36 = vadd.f32 %v6737_v1, %v4196_v21  ;;  %v1917_v59 = vpop.permute.xlu1 %1916 }
 0x407   : > { %v2133_v49 = vpop.permute.xlu0 %2132  ;;  %v3436_v62 = vpop.f32.mrf.mxu0  ;;  %v2894_v38 = vsel %vm2841_vm6, %v2839_v25, %v1917_v59 }
 0x408   : > { %3602 = vst.msk [vmem:[%s6309_s14 + $0xd8] sm:$0xff] %vm2786_vm5, %v3442_v36  ;;  %v3437_v19 = vadd.f32 %v6737_v1, %v3436_v62  ;;  %v3769_v16 = vmul.f32 %v3442_v36, %v3442_v36  ;;  %v3682_v2 = vsel %vm2786_vm5, %v3442_v36, 0.0  ;;  %v2949_v55 = vsel %vm2896_vm7, %v2894_v38, %v2133_v49 }
 0x40a   : > { %3601 = vst.msk [vmem:[%s6309_s14 + $0xd0] sm:$0xff] %vm2786_vm5, %v3437_v19  ;;  %v3680_v45 = vsel %vm2786_vm5, %v3437_v19, 0.0  ;;  %v3768_v54 = vmul.f32 %v3437_v19, %v3437_v19  ;;  %v1919_v63 = vpop.permute.xlu1 %1918  ;;  %v3849_v58 = vsel %vm2786_vm5, %v3769_v16, 0.0 }
 0x40b   : > { %v3681_v40 = vadd.f32 %v3680_v45, %v3679_v32  ;;  %v2349_v51 = vpop.permute.xlu0 %2348  ;;  %v2895_v32 = vsel %vm2841_vm6, %v2840_v18, %v1919_v63 }
 0x40c   : > { %v3847_v4 = vsel %vm2786_vm5, %v3768_v54, 0.0  ;;  %v3004_v6 = vsel %vm2951_vm8, %v2949_v55, %v2349_v51 }
 0x40d   : > { %v3848_v7 = vadd.f32 %v3847_v4, %v3846_v39  ;;  %v3683_v56 = vadd.f32 %v3682_v2, %v3681_v40 }
 0x40e   : > { %v2135_v10 = vpop.permute.xlu1 %2134 }
 0x40f   : > { %v2565_v50 = vpop.permute.xlu0 %2564  ;;  %v3850_v33 = vadd.f32 %v3849_v58, %v3848_v7  ;;  %v2950_v23 = vsel %vm2896_vm7, %v2895_v32, %v2135_v10 }
 0x410   : > { %v3059_v28 = vsel %vm3006_vm9, %v3004_v6, %v2565_v50 }
 0x411   : > { %4233 = vmatprep.mubr.msk.f32.mxu1 %vm3073_vm10, %v3059_v28 }
 0x412   : > { %v2351_v41 = vpop.permute.xlu1 %2350 }
 0x413   : > { %v3005_v30 = vsel %vm2951_vm8, %v2950_v23, %v2351_v41 }
 0x415   : > { %v4199_v8 = vpop.f32.mrf.mxu1 }
 0x416   : > { %v3452_v26 = vadd.f32 %v6737_v1, %v4199_v8  ;;  %v2567_v34 = vpop.permute.xlu1 %2566 }
 0x417   : > { %v3060_v14 = vsel %vm3006_vm9, %v3005_v30, %v2567_v34  ;;  %v3446_v47 = vpop.f32.mrf.mxu1 }
 0x418   : > { %3604 = vst.msk [vmem:[%s6309_s14 + $0xe8] sm:$0xff] %vm2786_vm5, %v3452_v26  ;;  %v3447_v27 = vadd.f32 %v6737_v1, %v3446_v47  ;;  %4234 = vmatmul.mubr.msk.f32.gmra.mxu1 %vm3073_vm10, %v3060_v14  ;;  %v3771_v0 = vmul.f32 %v3452_v26, %v3452_v26  ;;  %v3686_v42 = vsel %vm2786_vm5, %v3452_v26, 0.0 }
 0x41a   : > { %3603 = vst.msk [vmem:[%s6309_s14 + $0xe0] sm:$0xff] %vm2786_vm5, %v3447_v27  ;;  %v3684_v39 = vsel %vm2786_vm5, %v3447_v27, 0.0  ;;  %v3770_v52 = vmul.f32 %v3447_v27, %v3447_v27  ;;  %v3853_v11 = vsel %vm2786_vm5, %v3771_v0, 0.0 }
 0x41b   : > { %v3685_v43 = vadd.f32 %v3684_v39, %v3683_v56 }
 0x41c   : > { %v3851_v22 = vsel %vm2786_vm5, %v3770_v52, 0.0 }
 0x41d   : > { %v3852_v15 = vadd.f32 %v3851_v22, %v3850_v33  ;;  %v3687_v46 = vadd.f32 %v3686_v42, %v3685_v43 }
 0x41f   : > { %v3854_v3 = vadd.f32 %v3853_v11, %v3852_v15 }
 0x425   : > { %v4202_v57 = vpop.f32.mrf.mxu1 }
 0x426   : > { %v3462_v21 = vadd.f32 %v6737_v1, %v4202_v57 }
 0x427   : > { %v3456_v36 = vpop.f32.mrf.mxu1 }
 0x428   : > { %3606 = vst.msk [vmem:[%s6309_s14 + $0xf8] sm:$0xff] %vm2786_vm5, %v3462_v21  ;;  %v3457_v59 = vadd.f32 %v6737_v1, %v3456_v36  ;;  %v3773_v35 = vmul.f32 %v3462_v21, %v3462_v21  ;;  %v3690_v62 = vsel %vm2786_vm5, %v3462_v21, 0.0 }
 0x42a   : > { %3605 = vst.msk [vmem:[%s6309_s14 + $0xf0] sm:$0xff] %vm2786_vm5, %v3457_v59  ;;  %v3688_v5 = vsel %vm2786_vm5, %v3457_v59, 0.0  ;;  %v3772_v29 = vmul.f32 %v3457_v59, %v3457_v59  ;;  %v3857_v20 = vsel %vm2786_vm5, %v3773_v35, 0.0 }
 0x42b   : > { %v3689_v49 = vadd.f32 %v3688_v5, %v3687_v46 }
 0x42c   : > { %v3855_v31 = vsel %vm2786_vm5, %v3772_v29, 0.0 }
 0x42d   : > { %v3856_v12 = vadd.f32 %v3855_v31, %v3854_v3  ;;  %v3691_v19 = vadd.f32 %v3690_v62, %v3689_v49 }
 0x42f   : > { %v3858_v24 = vadd.f32 %v3857_v20, %v3856_v12 }
 0x435   : > { %v4205_v61 = vpop.f32.mrf.mxu1 }
 0x436   : > { %v3472_v25 = vadd.f32 %v6737_v1, %v4205_v61 }
 0x437   : > { %v3466_v16 = vpop.f32.mrf.mxu1 }
 0x438   : > { %3608 = vst.msk [vmem:[%s6309_s14 + $0x108] sm:$0xff] %vm2786_vm5, %v3472_v25  ;;  %v3467_v45 = vadd.f32 %v6737_v1, %v3466_v16  ;;  %v3775_v54 = vmul.f32 %v3472_v25, %v3472_v25  ;;  %v3694_v51 = vsel %vm2786_vm5, %v3472_v25, 0.0 }
 0x43a   : > { %3607 = vst.msk [vmem:[%s6309_s14 + $0x100] sm:$0xff] %vm2786_vm5, %v3467_v45  ;;  %v3692_v63 = vsel %vm2786_vm5, %v3467_v45, 0.0  ;;  %v3774_v38 = vmul.f32 %v3467_v45, %v3467_v45  ;;  %v3861_v56 = vsel %vm2786_vm5, %v3775_v54, 0.0 }
 0x43b   : > { %v3693_v40 = vadd.f32 %v3692_v63, %v3691_v19 }
 0x43c   : > { %v3859_v2 = vsel %vm2786_vm5, %v3774_v38, 0.0 }
 0x43d   : > { %v3860_v4 = vadd.f32 %v3859_v2, %v3858_v24  ;;  %v3695_v7 = vadd.f32 %v3694_v51, %v3693_v40 }
 0x43f   : > { %v3862_v58 = vadd.f32 %v3861_v56, %v3860_v4 }
 0x445   : > { %v4208_v55 = vpop.f32.mrf.mxu1 }
 0x446   : > { %v3482_v10 = vadd.f32 %v6737_v1, %v4208_v55 }
 0x447   : > { %v3476_v6 = vpop.f32.mrf.mxu1 }
 0x448   : > { %3610 = vst.msk [vmem:[%s6309_s14 + $0x118] sm:$0xff] %vm2786_vm5, %v3482_v10  ;;  %v3477_v50 = vadd.f32 %v6737_v1, %v3476_v6  ;;  %v3777_v33 = vmul.f32 %v3482_v10, %v3482_v10  ;;  %v3698_v28 = vsel %vm2786_vm5, %v3482_v10, 0.0 }
 0x44a   : > { %3609 = vst.msk [vmem:[%s6309_s14 + $0x110] sm:$0xff] %vm2786_vm5, %v3477_v50  ;;  %v3696_v9 = vsel %vm2786_vm5, %v3477_v50, 0.0  ;;  %v3776_v17 = vmul.f32 %v3477_v50, %v3477_v50  ;;  %v3865_v60 = vsel %vm2786_vm5, %v3777_v33, 0.0 }
 0x44b   : > { %v3697_v13 = vadd.f32 %v3696_v9, %v3695_v7 }
 0x44c   : > { %v3863_v48 = vsel %vm2786_vm5, %v3776_v17, 0.0 }
 0x44d   : > { %v3864_v37 = vadd.f32 %v3863_v48, %v3862_v58  ;;  %v3699_v44 = vadd.f32 %v3698_v28, %v3697_v13 }
 0x44f   : > { %v3866_v41 = vadd.f32 %v3865_v60, %v3864_v37 }
 0x455   : > { %v4211_v53 = vpop.f32.mrf.mxu1 }
 0x456   : > { %v3492_v18 = vadd.f32 %v6737_v1, %v4211_v53 }
 0x457   : > { %v3486_v32 = vpop.f32.mrf.mxu1 }
 0x458   : > { %3612 = vst.msk [vmem:[%s6309_s14 + $0x128] sm:$0xff] %vm2786_vm5, %v3492_v18  ;;  %v3487_v23 = vadd.f32 %v6737_v1, %v3486_v32  ;;  %v3779_v8 = vmul.f32 %v3492_v18, %v3492_v18  ;;  %v3702_v14 = vsel %vm2786_vm5, %v3492_v18, 0.0 }
 0x45a   : > { %3611 = vst.msk [vmem:[%s6309_s14 + $0x120] sm:$0xff] %vm2786_vm5, %v3487_v23  ;;  %v3700_v30 = vsel %vm2786_vm5, %v3487_v23, 0.0  ;;  %v3778_v26 = vmul.f32 %v3487_v23, %v3487_v23  ;;  %v3869_v39 = vsel %vm2786_vm5, %v3779_v8, 0.0 }
 0x45b   : > { %v3701_v34 = vadd.f32 %v3700_v30, %v3699_v44 }
 0x45c   : > { %v3867_v47 = vsel %vm2786_vm5, %v3778_v26, 0.0 }
 0x45d   : > { %v3868_v27 = vadd.f32 %v3867_v47, %v3866_v41  ;;  %v3703_v0 = vadd.f32 %v3702_v14, %v3701_v34 }
 0x45f   : > { %v3870_v52 = vadd.f32 %v3869_v39, %v3868_v27 }
 0x465   : > { %v4214_v43 = vpop.f32.mrf.mxu1 }
 0x466   : > { %v3502_v42 = vadd.f32 %v6737_v1, %v4214_v43 }
 0x467   : > { %v3496_v22 = vpop.f32.mrf.mxu1 }
 0x468   : > { %3614 = vst.msk [vmem:[%s6309_s14 + $0x138] sm:$0xff] %vm2786_vm5, %v3502_v42  ;;  %v3497_v15 = vadd.f32 %v6737_v1, %v3496_v22  ;;  %v3781_v46 = vmul.f32 %v3502_v42, %v3502_v42  ;;  %v3706_v21 = vsel %vm2786_vm5, %v3502_v42, 0.0 }
 0x46a   : > { %3613 = vst.msk [vmem:[%s6309_s14 + $0x130] sm:$0xff] %vm2786_vm5, %v3497_v15  ;;  %v3704_v11 = vsel %vm2786_vm5, %v3497_v15, 0.0  ;;  %v3780_v3 = vmul.f32 %v3497_v15, %v3497_v15  ;;  %v3873_v5 = vsel %vm2786_vm5, %v3781_v46, 0.0 }
 0x46b   : > { %v3705_v57 = vadd.f32 %v3704_v11, %v3703_v0 }
 0x46c   : > { %v3871_v36 = vsel %vm2786_vm5, %v3780_v3, 0.0 }
 0x46d   : > { %v3872_v59 = vadd.f32 %v3871_v36, %v3870_v52  ;;  %v3707_v35 = vadd.f32 %v3706_v21, %v3705_v57 }
 0x46f   : > { %v3874_v29 = vadd.f32 %v3873_v5, %v3872_v59 }
 0x475   : > { %v4217_v49 = vpop.f32.mrf.mxu1 }
 0x476   : > { %v3512_v62 = vadd.f32 %v6737_v1, %v4217_v49 }
 0x477   : > { %v3506_v31 = vpop.f32.mrf.mxu1 }
 0x478   : > { %3616 = vst.msk [vmem:[%s6309_s14 + $0x148] sm:$0xff] %vm2786_vm5, %v3512_v62  ;;  %v3507_v12 = vadd.f32 %v6737_v1, %v3506_v31  ;;  %v3783_v19 = vmul.f32 %v3512_v62, %v3512_v62  ;;  %v3710_v25 = vsel %vm2786_vm5, %v3512_v62, 0.0 }
 0x47a   : > { %3615 = vst.msk [vmem:[%s6309_s14 + $0x140] sm:$0xff] %vm2786_vm5, %v3507_v12  ;;  %v3708_v20 = vsel %vm2786_vm5, %v3507_v12, 0.0  ;;  %v3782_v24 = vmul.f32 %v3507_v12, %v3507_v12  ;;  %v3877_v63 = vsel %vm2786_vm5, %v3783_v19, 0.0 }
 0x47b   : > { %v3709_v61 = vadd.f32 %v3708_v20, %v3707_v35 }
 0x47c   : > { %v3875_v16 = vsel %vm2786_vm5, %v3782_v24, 0.0 }
 0x47d   : > { %v3876_v45 = vadd.f32 %v3875_v16, %v3874_v29  ;;  %v3711_v54 = vadd.f32 %v3710_v25, %v3709_v61 }
 0x47f   : > { %v3878_v38 = vadd.f32 %v3877_v63, %v3876_v45 }
 0x485   : > { %v4220_v40 = vpop.f32.mrf.mxu1 }
 0x486   : > { %v3522_v51 = vadd.f32 %v6737_v1, %v4220_v40 }
 0x487   : > { %v3516_v2 = vpop.f32.mrf.mxu1 }
 0x488   : > { %3618 = vst.msk [vmem:[%s6309_s14 + $0x158] sm:$0xff] %vm2786_vm5, %v3522_v51  ;;  %v3517_v4 = vadd.f32 %v6737_v1, %v3516_v2  ;;  %v3785_v7 = vmul.f32 %v3522_v51, %v3522_v51  ;;  %v3714_v10 = vsel %vm2786_vm5, %v3522_v51, 0.0 }
 0x48a   : > { %3617 = vst.msk [vmem:[%s6309_s14 + $0x150] sm:$0xff] %vm2786_vm5, %v3517_v4  ;;  %v3712_v56 = vsel %vm2786_vm5, %v3517_v4, 0.0  ;;  %v3784_v58 = vmul.f32 %v3517_v4, %v3517_v4  ;;  %v3881_v9 = vsel %vm2786_vm5, %v3785_v7, 0.0 }
 0x48b   : > { %v3713_v55 = vadd.f32 %v3712_v56, %v3711_v54 }
 0x48c   : > { %v3879_v6 = vsel %vm2786_vm5, %v3784_v58, 0.0 }
 0x48d   : > { %v3880_v50 = vadd.f32 %v3879_v6, %v3878_v38  ;;  %v3715_v33 = vadd.f32 %v3714_v10, %v3713_v55 }
 0x48f   : > { %v3882_v17 = vadd.f32 %v3881_v9, %v3880_v50 }
 0x495   : > { %v4223_v13 = vpop.f32.mrf.mxu1 }
 0x496   : > { %v3532_v28 = vadd.f32 %v6737_v1, %v4223_v13 }
 0x497   : > { %v3526_v48 = vpop.f32.mrf.mxu1 }
 0x498   : > { %3620 = vst.msk [vmem:[%s6309_s14 + $0x168] sm:$0xff] %vm2786_vm5, %v3532_v28  ;;  %v3527_v37 = vadd.f32 %v6737_v1, %v3526_v48  ;;  %v3787_v0 = vmul.f32 %v3532_v28, %v3532_v28  ;;  %v3718_v22 = vsel %vm2786_vm5, %v3532_v28, 0.0 }
 0x49a   : > { %3619 = vst.msk [vmem:[%s6309_s14 + $0x160] sm:$0xff] %vm2786_vm5, %v3527_v37  ;;  %v3786_v30 = vmul.f32 %v3527_v37, %v3527_v37  ;;  %v3716_v26 = vsel %vm2786_vm5, %v3527_v37, 0.0  ;;  %v3885_v11 = vsel %vm2786_vm5, %v3787_v0, 0.0 }
 0x49b   : > { %v3717_v47 = vadd.f32 %v3716_v26, %v3715_v33 }
 0x49c   : > { %v3883_v34 = vsel %vm2786_vm5, %v3786_v30, 0.0 }
 0x49d   : > { %v3884_v43 = vadd.f32 %v3883_v34, %v3882_v17  ;;  %v3719_v46 = vadd.f32 %v3718_v22, %v3717_v47 }
 0x49f   : > { %v3886_v21 = vadd.f32 %v3885_v11, %v3884_v43 }
 0x4a5   : > { %v4226_v44 = vpop.f32.mrf.mxu1 }
 0x4a6   : > { %v3542_v60 = vadd.f32 %v6737_v1, %v4226_v44 }
 0x4a7   : > { %v3536_v41 = vpop.f32.mrf.mxu1 }
 0x4a8   : > { %3622 = vst.msk [vmem:[%s6309_s14 + $0x178] sm:$0xff] %vm2786_vm5, %v3542_v60  ;;  %v3537_v53 = vadd.f32 %v6737_v1, %v3536_v41  ;;  %v3789_v36 = vmul.f32 %v3542_v60, %v3542_v60  ;;  %v3722_v5 = vsel %vm2786_vm5, %v3542_v60, 0.0 }
 0x4aa   : > { %3621 = vst.msk [vmem:[%s6309_s14 + $0x170] sm:$0xff] %vm2786_vm5, %v3537_v53  ;;  %v3788_v39 = vmul.f32 %v3537_v53, %v3537_v53  ;;  %v3720_v15 = vsel %vm2786_vm5, %v3537_v53, 0.0  ;;  %v3889_v62 = vsel %vm2786_vm5, %v3789_v36, 0.0 }
 0x4ab   : > { %v3721_v57 = vadd.f32 %v3720_v15, %v3719_v46 }
 0x4ac   : > { %v3887_v3 = vsel %vm2786_vm5, %v3788_v39, 0.0 }
 0x4ad   : > { %v3888_v35 = vadd.f32 %v3887_v3, %v3886_v21  ;;  %v3723_v49 = vadd.f32 %v3722_v5, %v3721_v57 }
 0x4af   : > { %v3890_v19 = vadd.f32 %v3889_v62, %v3888_v35 }
 0x4b5   : > { %v4229_v18 = vpop.f32.mrf.mxu1 }
 0x4b6   : > { %v3552_v32 = vadd.f32 %v6737_v1, %v4229_v18 }
 0x4b7   : > { %v3546_v23 = vpop.f32.mrf.mxu1 }
 0x4b8   : > { %3624 = vst.msk [vmem:[%s6309_s14 + $0x188] sm:$0xff] %vm2786_vm5, %v3552_v32  ;;  %v3547_v8 = vadd.f32 %v6737_v1, %v3546_v23  ;;  %v3791_v20 = vmul.f32 %v3552_v32, %v3552_v32  ;;  %v3726_v25 = vsel %vm2786_vm5, %v3552_v32, 0.0 }
 0x4ba   : > { %3623 = vst.msk [vmem:[%s6309_s14 + $0x180] sm:$0xff] %vm2786_vm5, %v3547_v8  ;;  %v3790_v59 = vmul.f32 %v3547_v8, %v3547_v8  ;;  %v3724_v29 = vsel %vm2786_vm5, %v3547_v8, 0.0  ;;  %v3893_v54 = vsel %vm2786_vm5, %v3791_v20, 0.0 }
 0x4bb   : > { %v3725_v12 = vadd.f32 %v3724_v29, %v3723_v49 }
 0x4bc   : > { %v3891_v31 = vsel %vm2786_vm5, %v3790_v59, 0.0 }
 0x4bd   : > { %v3892_v61 = vadd.f32 %v3891_v31, %v3890_v19  ;;  %v3727_v45 = vadd.f32 %v3726_v25, %v3725_v12 }
 0x4bf   : > { %v3894_v40 = vadd.f32 %v3893_v54, %v3892_v61 }
 0x4c5   : > { %v4232_v14 = vpop.f32.mrf.mxu1 }
 0x4c6   : > { %v3562_v27 = vadd.f32 %v6737_v1, %v4232_v14 }
 0x4c7   : > { %v3556_v52 = vpop.f32.mrf.mxu1 }
 0x4c8   : > { %3626 = vst.msk [vmem:[%s6309_s14 + $0x198] sm:$0xff] %vm2786_vm5, %v3562_v27  ;;  %v3557_v42 = vadd.f32 %v6737_v1, %v3556_v52  ;;  %v3793_v2 = vmul.f32 %v3562_v27, %v3562_v27  ;;  %v3730_v58 = vsel %vm2786_vm5, %v3562_v27, 0.0 }
 0x4ca   : > { %3625 = vst.msk [vmem:[%s6309_s14 + $0x190] sm:$0xff] %vm2786_vm5, %v3557_v42  ;;  %v3792_v24 = vmul.f32 %v3557_v42, %v3557_v42  ;;  %v3728_v16 = vsel %vm2786_vm5, %v3557_v42, 0.0  ;;  %v3897_v6 = vsel %vm2786_vm5, %v3793_v2, 0.0 }
 0x4cb   : > { %v3729_v38 = vadd.f32 %v3728_v16, %v3727_v45 }
 0x4cc   : > { %v3895_v63 = vsel %vm2786_vm5, %v3792_v24, 0.0 }
 0x4cd   : > { %v3896_v7 = vadd.f32 %v3895_v63, %v3894_v40  ;;  %v3731_v10 = vadd.f32 %v3730_v58, %v3729_v38 }
 0x4cf   : > { %v3898_v13 = vadd.f32 %v3897_v6, %v3896_v7 }
 0x4d8   : > { %v4235_v51 = vpop.f32.mrf.mxu1 }
 0x4d9   : > { %v3572_v4 = vadd.f32 %v6737_v1, %v4235_v51 }
 0x4da   : > { %v3566_v56 = vpop.f32.mrf.mxu1 }
 0x4db   : > { %3628 = vst.msk [vmem:[%s6309_s14 + $0x1a8] sm:$0xff] %vm2786_vm5, %v3572_v4  ;;  %v3567_v55 = vadd.f32 %v6737_v1, %v3566_v56  ;;  %v3795_v50 = vmul.f32 %v3572_v4, %v3572_v4  ;;  %v3734_v28 = vsel %vm2786_vm5, %v3572_v4, 0.0 }
 0x4dd   : > { %3627 = vst.msk [vmem:[%s6309_s14 + $0x1a0] sm:$0xff] %vm2786_vm5, %v3567_v55  ;;  %v3732_v33 = vsel %vm2786_vm5, %v3567_v55, 0.0  ;;  %v3794_v9 = vmul.f32 %v3567_v55, %v3567_v55  ;;  %v3901_v1 = vsel %vm2786_vm5, %v3795_v50, 0.0 }
 0x4de   : > { %v3733_v17 = vadd.f32 %v3732_v33, %v3731_v10 }
 0x4df   : > { %v3899_v48 = vsel %vm2786_vm5, %v3794_v9, 0.0 }
 0x4e0   : > { %v3735_v37 = vadd.f32 %v3734_v28, %v3733_v17  ;;  %v3900_v44 = vadd.f32 %v3899_v48, %v3898_v13 }
 0x4e2   : > { %v3736_v60 = vrot.slane %v3735_v37, 4  ;;  %v3902_v41 = vadd.f32 %v3901_v1, %v3900_v44 }
 0x4e4   : > { %v3737_v53 = vadd.f32 %v3736_v60, %v3735_v37  ;;  %v3903_v18 = vrot.slane %v3902_v41, 4 }
 0x4e6   : > { %v3738_v32 = vrot.slane %v3737_v53, 2  ;;  %v3904_v23 = vadd.f32 %v3903_v18, %v3902_v41 }
 0x4e8   : > { %v3739_v8 = vadd.f32 %v3738_v32, %v3737_v53  ;;  %v3905_v30 = vrot.slane %v3904_v23, 2 }
 0x4ea   : > { %v3740_v26 = vrot.slane %v3739_v8, 1  ;;  %v3906_v34 = vadd.f32 %v3905_v30, %v3904_v23 }
 0x4ec   : > { %v3907_v14 = vrot.slane %v3906_v34, 1  ;;  %v3741_v47 = vadd.f32 %v3740_v26, %v3739_v8 }
 0x4ee   : > { %v3908_v27 = vadd.f32 %v3907_v14, %v3906_v34 }
 0x4f0   : > { %v3910_v0 = vsel %vm3909_vm11, %v3741_v47, %v3908_v27 }
 0x4f1   : > { %3912 = vst.msk [vmem:[%s198_s23] sm:$0x3] %vm3911_vm12, %v3910_v0 }
 0x4f2   : > { %4361 = shalt.err (!%p4358_p3)
}
 0x4f3   : > { %s4362_s12 = scalar_lea.hbm %s6910_s6, 32  ;;  %s4366_s27 = scalar_lea.hbm %s6949_s4, 64 }
 0x4f4   : > { %p4363_p4 = scmp.ne.s32.totalorder %s6910_s6, %s4362_s12  ;;  %p4367_p9 = scmp.lt.s32.totalorder %s6910_s6, %s6949_s4 }
 0x4f5   : > { %p4368_p10 = scmp.lt.s32.totalorder %s4366_s27, %s4362_s12 }
 0x4f6   : > { %p4364_p7 = pnand %p4363_p4, %p4483_p5 }
 0x4f7   : > { %p4369_p11 = por %p4368_p10, %p4367_p9 }
 0x4f8   : > { %p4365_p8 = pneg %p4364_p7 }
 0x4fa   : > { %p4370_p12 = pnand %p4369_p11, %p4365_p8 }
 0x4fc   : > { %4373 = shalt.err (!%p4370_p12)
}
 0x4fd   : > { %4247 = dma.vmem_to_hbm [thread:$0]  (%p4483_p5), %s3936_s29, 32, %s6910_s6, %s3919_s7  }
 0x4fe PF: > { %p4253_p13 = scmp.ge.s32.totalorder %s4408_s18, 2  ;;  %s3955_s20 = sand.u32 1, %s4396_s15  }
 0x4ff   : > { %s3956_s22 = scalar_lea.sflag [#allocation4], %s3955_s20 }
 0x500   : > { %p4250_p0 = pnand %p4253_p13, %p4487_p6 }
 0x502   : > { %p4251_p1 = pneg %p4250_p0 }
 0x504   : > { %4391 = dma.done.wait (%p4251_p1), %s3956_s22, 32  }
 0x505   : > { %4393 = vsyncadd (%p4251_p1), %s3956_s22, 4294967264  ;;  %p15_p2 = scmp.ge.s32.totalorder %s4470_s21, 4   ;;  %s7335_s15 = smov %s4400_s16 }
 0x506   : > { %s7336_s16 = smov %s4404_s17  ;;  %s7337_s17 = smov %s4481_s24 }
 0x507   : > { %s7338_s18 = smov %s4470_s21  ;;  %17 = sbr.rel (!%p15_p2) target bundleno = 3 (0x3), region = 81 }
 0x50c   :  { %3961 = vsyncpa [#allocation4], 1 }
 0x50d   :  { %3963 = vsyncpa [#allocation4 + $0x1], 1 }

</bundles_post_ra>
